<compile_context>
chip_gen: v7x
topology: tpu7x:2x2x1
jax: 0.10.0
libtpu: 0.0.40
codegen_flags: <defaults>
</compile_context>

<pallas_src>
import functools

import jax
import jax.numpy as jnp
from jax.experimental import pallas as pl
from jax.experimental.pallas import tpu as pltpu


# ---------------------------------------------------------------------------
# Pallas kernels
# ---------------------------------------------------------------------------
def _mm_fused_kernel(w_ref, a_ref, o_ref, *, act, bn):
    """o = [BN]( W @ act(A) ),  W:(Cout,K) bf16, A:(K,tm) bf16, o:(Cout,tm) f32."""
    a = a_ref[...]
    if act == "relu":
        a = jnp.maximum(a, 0)
    elif act == "lrelu":
        a = jnp.where(a > 0, a, 0.2 * a)
    o = jnp.dot(w_ref[...], a, preferred_element_type=jnp.float32)
    if bn:
        # Training-mode BatchNorm2d (gamma=1, beta=0), biased variance, f32 stats.
        mean = jnp.mean(o, axis=1, keepdims=True)
        var = jnp.mean(jnp.square(o - mean), axis=1, keepdims=True)
        o = (o - mean) * jax.lax.rsqrt(var + 1e-5)
    o_ref[...] = o


def _bn_kernel(x_ref, o_ref):
    x = x_ref[...]
    mean = jnp.mean(x, axis=1, keepdims=True)
    var = jnp.mean(jnp.square(x - mean), axis=1, keepdims=True)
    o_ref[...] = (x - mean) * jax.lax.rsqrt(var + 1e-5)


def _bias_tanh_kernel(x_ref, b_ref, o_ref):
    o_ref[...] = jnp.tanh(x_ref[...] + b_ref[...])


# ---------------------------------------------------------------------------
# Pallas wrappers
# ---------------------------------------------------------------------------
def _pick_tm(m, bn):
    """Largest multiple-of-128 tile dividing M (cap 1024); full M if BN is fused."""
    if bn or m < 256 or m % 128 != 0:
        return m
    for cand in (1024, 896, 768, 640, 512, 384, 256, 128):
        if cand <= m and m % cand == 0:
            return cand
    return m


def pallas_matmul_cm(w_mat, a_t, act="none", bn=False):
    """Channel-major matmul: (Cout, M) = [BN]( W(Cout,K) @ act(A^T)(K,M) )."""
    cout, k = w_mat.shape
    k2, m = a_t.shape
    assert k == k2
    tm = _pick_tm(m, bn)
    assert (not bn) or tm == m  # fused BN needs the full M in one block
    grid = (m // tm,)
    sem = ("arbitrary",) if bn else ("parallel",)
    return pl.pallas_call(
        functools.partial(_mm_fused_kernel, act=act, bn=bn),
        out_shape=jax.ShapeDtypeStruct((cout, m), jnp.float32),
        grid=grid,
        in_specs=[
            pl.BlockSpec((cout, k), lambda i: (0, 0)),
            pl.BlockSpec((k, tm), lambda i: (0, i)),
        ],
        out_specs=pl.BlockSpec((cout, tm), lambda i: (0, i)),
        compiler_params=pltpu.CompilerParams(dimension_semantics=sem),
    )(w_mat, a_t)


def batchnorm_cm(x):
    """BatchNorm2d on channel-major (C, N, H, W) activations — no transposes."""
    c, n, h, w = x.shape
    m = n * h * w
    y = pl.pallas_call(
        _bn_kernel,
        out_shape=jax.ShapeDtypeStruct((c, m), jnp.float32),
        grid=(1,),
        in_specs=[pl.BlockSpec((c, m), lambda i: (0, 0))],
        out_specs=pl.BlockSpec((c, m), lambda i: (0, 0)),
    )(x.reshape(c, m))
    return y.reshape(c, n, h, w)


def bias_tanh_cm(x, bias):
    """tanh(x + bias[c]) on channel-major (C, N, H, W) activations."""
    c, n, h, w = x.shape
    m = n * h * w
    y = pl.pallas_call(
        _bias_tanh_kernel,
        out_shape=jax.ShapeDtypeStruct((c, m), jnp.float32),
        grid=(1,),
        in_specs=[
            pl.BlockSpec((c, m), lambda i: (0, 0)),
            pl.BlockSpec((c, 1), lambda i: (0, 0)),
        ],
        out_specs=pl.BlockSpec((c, m), lambda i: (0, 0)),
    )(x.reshape(c, m), bias.reshape(c, 1))
    return y.reshape(c, n, h, w)


# ---------------------------------------------------------------------------
# Conv2d / ConvTranspose2d (k=4, s=2, p=1) — channel-major, lane-dense matmuls
# ---------------------------------------------------------------------------
def conv_down(x, w_mat, act, bn):
    """Conv2d(4,2,1,bias=False) with fused pre-act and optional fused BN.

    x: (Cin, N, H, W) channel-major; w_mat: (Cout, Cin*16) bf16.
    Returns (Cout, N, H/2, W/2) f32.
    """
    cin, n, h, wd = x.shape
    cout = w_mat.shape[0]
    oh, ow = h // 2, wd // 2
    xp = jnp.pad(x, ((0, 0), (0, 0), (1, 1), (1, 1)))
    pats = [xp[:, :, kh:kh + 2 * oh:2, kw:kw + 2 * ow:2]
            for kh in range(4) for kw in range(4)]
    # (Cin, 16, N, OH, OW) -> A^T:(Cin*16, M) with K ordered (cin, kh, kw)
    a_t = jnp.stack(pats, axis=1).reshape(cin * 16, n * oh * ow).astype(jnp.bfloat16)
    o = pallas_matmul_cm(w_mat, a_t, act=act, bn=bn)      # (Cout, M)
    return o.reshape(cout, n, oh, ow)


# out row o = 2*i + kh - 1  =>  per output parity a: (kh, input shift)
_PHASE_TAPS = {0: ((1, 0), (3, -1)), 1: ((2, 0), (0, 1))}


def conv_up(x, w_mat_t, act):
    """ConvTranspose2d(4,2,1,bias=False) with fused pre-act.

    x: (Cin, N, H, W) channel-major; w_mat_t: (Cout*16, Cin) bf16.
    Returns (Cout, N, 2H, 2W) f32, via gather-based phase col2im.
    """
    cin, n, h, wd = x.shape
    cout = w_mat_t.shape[0] // 16
    a_t = x.reshape(cin, n * h * wd).astype(jnp.bfloat16)
    y = pallas_matmul_cm(w_mat_t, a_t, act=act, bn=False)   # (Cout*16, M)
    y = y.reshape(cout, 4, 4, n, h, wd)
    yp = jnp.pad(y, ((0, 0), (0, 0), (0, 0), (0, 0), (1, 1), (1, 1)))
    phase_rows = []
    for a in (0, 1):
        row = []
        for b in (0, 1):
            acc = None
            for kh, sh in _PHASE_TAPS[a]:
                for kw, sw in _PHASE_TAPS[b]:
                    t = yp[:, kh, kw, :, 1 + sh:1 + sh + h, 1 + sw:1 + sw + wd]
                    acc = t if acc is None else acc + t
            row.append(acc)                                  # (Cout, N, H, W)
        phase_rows.append(jnp.stack(row, axis=0))
    ph = jnp.stack(phase_rows, axis=0)                       # (2, 2, Cout, N, H, W)
    # out[c, nb, 2m+a, 2n+b] = ph[a, b, c, nb, m, n]
    return ph.transpose(2, 3, 4, 0, 5, 1).reshape(cout, n, 2 * h, 2 * wd)


# ---------------------------------------------------------------------------
# UnetGenerator parameters + forward (num_downs=5 structure)
# ---------------------------------------------------------------------------
def init_unet_params(key, input_nc, output_nc, num_downs, ngf):
    assert num_downs == 5, "this script instantiates the num_downs=5 structure"

    def nrm(k, shape):
        return jax.random.normal(k, shape, jnp.float32) * 0.02

    def down_mat(w):   # Conv2d weight (Cout, Cin, 4, 4) -> (Cout, Cin*16) bf16
        return w.reshape(w.shape[0], -1).astype(jnp.bfloat16)

    def up_mat(w):     # ConvT weight (Cin, Cout, 4, 4) -> (Cout*16, Cin) bf16
        cin, cout = w.shape[0], w.shape[1]
        return w.transpose(1, 2, 3, 0).reshape(cout * 16, cin).astype(jnp.bfloat16)

    ks = jax.random.split(key, 16)
    blocks = []
    # outermost: outer=output_nc, inner=ngf, input=input_nc (upconv has bias)
    blocks.append(dict(
        type="outermost",
        dw=down_mat(nrm(ks[0], (ngf, input_nc, 4, 4))),
        uw=up_mat(nrm(ks[1], (ngf * 2, output_nc, 4, 4))),
        ub=nrm(ks[2], (output_nc,)),
    ))
    # three intermediate blocks: (outer, inner) = (ngf, 2ngf), (2ngf, 4ngf), (4ngf, 8ngf)
    dims = [(ngf, ngf * 2), (ngf * 2, ngf * 4), (ngf * 4, ngf * 8)]
    for i, (outer, inner) in enumerate(dims):
        blocks.append(dict(
            type="middle",
            dw=down_mat(nrm(ks[3 + 2 * i], (inner, outer, 4, 4))),
            uw=up_mat(nrm(ks[4 + 2 * i], (inner * 2, outer, 4, 4))),
        ))
    # innermost: outer = inner = 8*ngf
    blocks.append(dict(
        type="innermost",
        dw=down_mat(nrm(ks[10], (ngf * 8, ngf * 8, 4, 4))),
        uw=up_mat(nrm(ks[11], (ngf * 8, ngf * 8, 4, 4))),
    ))
    return blocks


def unet_forward(blocks, x_nchw):
    x = x_nchw.transpose(1, 0, 2, 3).astype(jnp.float32)   # -> channel-major (C,N,H,W)

    def run(idx, h):
        blk = blocks[idx]
        if blk["type"] == "outermost":
            d = conv_down(h, blk["dw"], act="none", bn=False)   # downconv
            s = run(idx + 1, d)                                 # submodule
            u = conv_up(s, blk["uw"], act="relu")               # uprelu + upconv
            return bias_tanh_cm(u, blk["ub"])                   # + bias, Tanh
        elif blk["type"] == "innermost":
            d = conv_down(h, blk["dw"], act="lrelu", bn=False)  # lrelu + downconv
            u = conv_up(d, blk["uw"], act="relu")               # relu + upconv
            u = batchnorm_cm(u)                                 # upnorm
            return jnp.concatenate([h, u], axis=0)              # skip (channel axis)
        else:  # middle
            d = conv_down(h, blk["dw"], act="lrelu", bn=True)   # lrelu+conv+downnorm (fused)
            s = run(idx + 1, d)                                 # submodule
            u = conv_up(s, blk["uw"], act="relu")               # relu + upconv
            u = batchnorm_cm(u)                                 # upnorm
            return jnp.concatenate([h, u], axis=0)              # skip (channel axis)

    y = run(0, x)
    return y.transpose(1, 0, 2, 3)                              # back to NCHW


# ---------------------------------------------------------------------------
if __name__ == "__main__":
    # Small deterministic config: UnetGenerator(input_nc=3, output_nc=3,
    # num_downs=5, ngf=8), input (2, 3, 32, 32)  -> output (2, 3, 32, 32)
    input_nc, output_nc, num_downs, ngf = 3, 3, 5, 8
    N, H, W = 2, 32, 32

    key = jax.random.PRNGKey(0)
    k_params, k_x = jax.random.split(key)
    blocks = init_unet_params(k_params, input_nc, output_nc, num_downs, ngf)
    x = jax.random.normal(k_x, (N, input_nc, H, W), jnp.float32)

    fwd = jax.jit(lambda inp: unet_forward(blocks, inp))
    out = fwd(x)
    out = jax.block_until_ready(out)
    assert out.shape == (N, output_nc, H, W), out.shape
    assert bool(jnp.all(jnp.isfinite(out)))
    print("KERNEL_OK")
</pallas_src>

<mosaic_0001>
module attributes {stable_mosaic.version = 11 : i64} {
  func.func @_mm_fused_kernel(%arg0: i32, %arg1: memref<8x48xbf16, #tpu.memory_space<vmem>>, %arg2: memref<48x512xbf16, #tpu.memory_space<vmem>>, %arg3: memref<8x512xf32, #tpu.memory_space<vmem>>) attributes {dimension_semantics = [#tpu.dimension_semantics<parallel>], iteration_bounds = array<i64: 1>, scalar_prefetch = 0 : i64, scratch_operands = 0 : i64, tpu.core_type = #tpu.core_type<tc>, window_params = [{pipeline_mode = #tpu.pipeline_mode<synchronous>, transform_indices = @transform_0, window_bounds = array<i64: 8, 48>}, {transform_indices = @transform_1, window_bounds = array<i64: 48, 512>}, {transform_indices = @transform_2, window_bounds = array<i64: 8, 512>}]} {
    %c0 = arith.constant 0 : index
    %c0_0 = arith.constant 0 : index
    %0 = vector.load %arg2[%c0, %c0_0] : memref<48x512xbf16, #tpu.memory_space<vmem>>, vector<48x512xbf16>
    %c0_1 = arith.constant 0 : index
    %c0_2 = arith.constant 0 : index
    %1 = vector.load %arg1[%c0_1, %c0_2] : memref<8x48xbf16, #tpu.memory_space<vmem>>, vector<8x48xbf16>
    %cst = arith.constant dense<0.000000e+00> : vector<8x512xf32>
    %2 = tpu.matmul %1, %0, %cst {dimension_numbers = #tpu.dot_dimension_numbers<[1], [0], [0], [1], [0, 0, 1, 1], [], []>} : vector<8x48xbf16>, vector<48x512xbf16>, vector<8x512xf32> -> vector<8x512xf32>
    %c0_3 = arith.constant 0 : index
    %c0_4 = arith.constant 0 : index
    %3 = vector.load %arg3[%c0_3, %c0_4] : memref<8x512xf32, #tpu.memory_space<vmem>>, vector<8x512xf32>
    tpu.vector_store %arg3[%c0_3, %c0_4], %2 {strides = array<i32>} : memref<8x512xf32, #tpu.memory_space<vmem>>, vector<8x512xf32>,
    return
  }
  func.func @transform_0(%arg0: i32) -> (i32, i32) {
    %c0_i32 = arith.constant 0 : i32
    %c0_i32_0 = arith.constant 0 : i32
    %c0_i32_1 = arith.constant 0 : i32
    return %c0_i32, %c0_i32_0 : i32, i32
  }
  func.func @transform_1(%arg0: i32) -> (i32, i32) {
    %c0_i32 = arith.constant 0 : i32
    %c0_i32_0 = arith.constant 0 : i32
    return %c0_i32, %arg0 : i32, i32
  }
  func.func @transform_2(%arg0: i32) -> (i32, i32) {
    %c0_i32 = arith.constant 0 : i32
    %c0_i32_0 = arith.constant 0 : i32
    return %c0_i32, %arg0 : i32, i32
  }
}

module attributes {stable_mosaic.version = 11 : i64} {
  func.func @_mm_fused_kernel(%arg0: i32, %arg1: memref<16x128xbf16, #tpu.memory_space<vmem>>, %arg2: memref<128x128xbf16, #tpu.memory_space<vmem>>, %arg3: memref<16x128xf32, #tpu.memory_space<vmem>>) attributes {dimension_semantics = [#tpu.dimension_semantics<arbitrary>], iteration_bounds = array<i64: 1>, scalar_prefetch = 0 : i64, scratch_operands = 0 : i64, tpu.core_type = #tpu.core_type<tc>, window_params = [{pipeline_mode = #tpu.pipeline_mode<synchronous>, transform_indices = @transform_0, window_bounds = array<i64: 16, 128>}, {transform_indices = @transform_1, window_bounds = array<i64: 128, 128>}, {transform_indices = @transform_2, window_bounds = array<i64: 16, 128>}]} {
    %c0 = arith.constant 0 : index
    %c0_0 = arith.constant 0 : index
    %0 = vector.load %arg2[%c0, %c0_0] : memref<128x128xbf16, #tpu.memory_space<vmem>>, vector<128x128xbf16>
    %cst = arith.constant 0.000000e+00 : bf16
    %1 = vector.broadcast %cst : bf16 to vector<128x128xbf16>
    %2 = arith.cmpf ogt, %0, %1 : vector<128x128xbf16>
    %cst_1 = arith.constant 2.001950e-01 : bf16
    %3 = vector.broadcast %cst_1 : bf16 to vector<128x128xbf16>
    %4 = arith.mulf %3, %0 : vector<128x128xbf16>
    %5 = arith.select %2, %0, %4 : vector<128x128xi1>, vector<128x128xbf16>
    %c0_2 = arith.constant 0 : index
    %c0_3 = arith.constant 0 : index
    %6 = vector.load %arg1[%c0_2, %c0_3] : memref<16x128xbf16, #tpu.memory_space<vmem>>, vector<16x128xbf16>
    %cst_4 = arith.constant dense<0.000000e+00> : vector<16x128xf32>
    %7 = tpu.matmul %6, %5, %cst_4 {dimension_numbers = #tpu.dot_dimension_numbers<[1], [0], [0], [1], [0, 0, 1, 1], [], []>} : vector<16x128xbf16>, vector<128x128xbf16>, vector<16x128xf32> -> vector<16x128xf32>
    %cst_5 = arith.constant dense<0.000000e+00> : vector<16xf32>
    %8 = vector.multi_reduction <add>, %7, %cst_5 [1] : vector<16x128xf32> to vector<16xf32>
    %9 = vector.shape_cast %8 : vector<16xf32> to vector<16x1xf32>
    %cst_6 = arith.constant 1.280000e+02 : f32
    %10 = vector.broadcast %cst_6 : f32 to vector<16x1xf32>
    %11 = arith.divf %9, %10 : vector<16x1xf32>
    %12 = vector.broadcast %11 : vector<16x1xf32> to vector<16x128xf32>
    %13 = arith.subf %7, %12 : vector<16x128xf32>
    %14 = arith.mulf %13, %13 : vector<16x128xf32>
    %cst_7 = arith.constant dense<0.000000e+00> : vector<16xf32>
    %15 = vector.multi_reduction <add>, %14, %cst_7 [1] : vector<16x128xf32> to vector<16xf32>
    %16 = vector.shape_cast %15 : vector<16xf32> to vector<16x1xf32>
    %cst_8 = arith.constant 1.280000e+02 : f32
    %17 = vector.broadcast %cst_8 : f32 to vector<16x1xf32>
    %18 = arith.divf %16, %17 : vector<16x1xf32>
    %19 = vector.broadcast %11 : vector<16x1xf32> to vector<16x128xf32>
    %20 = arith.subf %7, %19 : vector<16x128xf32>
    %cst_9 = arith.constant 9.99999974E-6 : f32
    %21 = vector.broadcast %cst_9 : f32 to vector<16x1xf32>
    %22 = arith.addf %18, %21 : vector<16x1xf32>
    %23 = math.rsqrt %22 : vector<16x1xf32>
    %24 = vector.broadcast %23 : vector<16x1xf32> to vector<16x128xf32>
    %25 = arith.mulf %20, %24 : vector<16x128xf32>
    %c0_10 = arith.constant 0 : index
    %c0_11 = arith.constant 0 : index
    %26 = vector.load %arg3[%c0_10, %c0_11] : memref<16x128xf32, #tpu.memory_space<vmem>>, vector<16x128xf32>
    tpu.vector_store %arg3[%c0_10, %c0_11], %25 {strides = array<i32>} : memref<16x128xf32, #tpu.memory_space<vmem>>, vector<16x128xf32>,
    return
  }
  func.func @transform_0(%arg0: i32) -> (i32, i32) {
    %c0_i32 = arith.constant 0 : i32
    %c0_i32_0 = arith.constant 0 : i32
    %c0_i32_1 = arith.constant 0 : i32
    return %c0_i32, %c0_i32_0 : i32, i32
  }
  func.func @transform_1(%arg0: i32) -> (i32, i32) {
    %c0_i32 = arith.constant 0 : i32
    %c0_i32_0 = arith.constant 0 : i32
    return %c0_i32, %arg0 : i32, i32
  }
  func.func @transform_2(%arg0: i32) -> (i32, i32) {
    %c0_i32 = arith.constant 0 : i32
    %c0_i32_0 = arith.constant 0 : i32
    return %c0_i32, %arg0 : i32, i32
  }
}

module attributes {stable_mosaic.version = 11 : i64} {
  func.func @_mm_fused_kernel(%arg0: i32, %arg1: memref<32x256xbf16, #tpu.memory_space<vmem>>, %arg2: memref<256x32xbf16, #tpu.memory_space<vmem>>, %arg3: memref<32x32xf32, #tpu.memory_space<vmem>>) attributes {dimension_semantics = [#tpu.dimension_semantics<arbitrary>], iteration_bounds = array<i64: 1>, scalar_prefetch = 0 : i64, scratch_operands = 0 : i64, tpu.core_type = #tpu.core_type<tc>, window_params = [{pipeline_mode = #tpu.pipeline_mode<synchronous>, transform_indices = @transform_0, window_bounds = array<i64: 32, 256>}, {transform_indices = @transform_1, window_bounds = array<i64: 256, 32>}, {transform_indices = @transform_2, window_bounds = array<i64: 32, 32>}]} {
    %c0 = arith.constant 0 : index
    %c0_0 = arith.constant 0 : index
    %0 = vector.load %arg2[%c0, %c0_0] : memref<256x32xbf16, #tpu.memory_space<vmem>>, vector<256x32xbf16>
    %cst = arith.constant 0.000000e+00 : bf16
    %1 = vector.broadcast %cst : bf16 to vector<256x32xbf16>
    %2 = arith.cmpf ogt, %0, %1 : vector<256x32xbf16>
    %cst_1 = arith.constant 2.001950e-01 : bf16
    %3 = vector.broadcast %cst_1 : bf16 to vector<256x32xbf16>
    %4 = arith.mulf %3, %0 : vector<256x32xbf16>
    %5 = arith.select %2, %0, %4 : vector<256x32xi1>, vector<256x32xbf16>
    %c0_2 = arith.constant 0 : index
    %c0_3 = arith.constant 0 : index
    %6 = vector.load %arg1[%c0_2, %c0_3] : memref<32x256xbf16, #tpu.memory_space<vmem>>, vector<32x256xbf16>
    %cst_4 = arith.constant dense<0.000000e+00> : vector<32x32xf32>
    %7 = tpu.matmul %6, %5, %cst_4 {dimension_numbers = #tpu.dot_dimension_numbers<[1], [0], [0], [1], [0, 0, 1, 1], [], []>} : vector<32x256xbf16>, vector<256x32xbf16>, vector<32x32xf32> -> vector<32x32xf32>
    %cst_5 = arith.constant dense<0.000000e+00> : vector<32xf32>
    %8 = vector.multi_reduction <add>, %7, %cst_5 [1] : vector<32x32xf32> to vector<32xf32>
    %9 = vector.shape_cast %8 : vector<32xf32> to vector<32x1xf32>
    %cst_6 = arith.constant 3.200000e+01 : f32
    %10 = vector.broadcast %cst_6 : f32 to vector<32x1xf32>
    %11 = arith.divf %9, %10 : vector<32x1xf32>
    %12 = vector.broadcast %11 : vector<32x1xf32> to vector<32x32xf32>
    %13 = arith.subf %7, %12 : vector<32x32xf32>
    %14 = arith.mulf %13, %13 : vector<32x32xf32>
    %cst_7 = arith.constant dense<0.000000e+00> : vector<32xf32>
    %15 = vector.multi_reduction <add>, %14, %cst_7 [1] : vector<32x32xf32> to vector<32xf32>
    %16 = vector.shape_cast %15 : vector<32xf32> to vector<32x1xf32>
    %cst_8 = arith.constant 3.200000e+01 : f32
    %17 = vector.broadcast %cst_8 : f32 to vector<32x1xf32>
    %18 = arith.divf %16, %17 : vector<32x1xf32>
    %19 = vector.broadcast %11 : vector<32x1xf32> to vector<32x32xf32>
    %20 = arith.subf %7, %19 : vector<32x32xf32>
    %cst_9 = arith.constant 9.99999974E-6 : f32
    %21 = vector.broadcast %cst_9 : f32 to vector<32x1xf32>
    %22 = arith.addf %18, %21 : vector<32x1xf32>
    %23 = math.rsqrt %22 : vector<32x1xf32>
    %24 = vector.broadcast %23 : vector<32x1xf32> to vector<32x32xf32>
    %25 = arith.mulf %20, %24 : vector<32x32xf32>
    %c0_10 = arith.constant 0 : index
    %c0_11 = arith.constant 0 : index
    %26 = vector.load %arg3[%c0_10, %c0_11] : memref<32x32xf32, #tpu.memory_space<vmem>>, vector<32x32xf32>
    tpu.vector_store %arg3[%c0_10, %c0_11], %25 {strides = array<i32>} : memref<32x32xf32, #tpu.memory_space<vmem>>, vector<32x32xf32>,
    return
  }
  func.func @transform_0(%arg0: i32) -> (i32, i32) {
    %c0_i32 = arith.constant 0 : i32
    %c0_i32_0 = arith.constant 0 : i32
    %c0_i32_1 = arith.constant 0 : i32
    return %c0_i32, %c0_i32_0 : i32, i32
  }
  func.func @transform_1(%arg0: i32) -> (i32, i32) {
    %c0_i32 = arith.constant 0 : i32
    %c0_i32_0 = arith.constant 0 : i32
    return %c0_i32, %arg0 : i32, i32
  }
  func.func @transform_2(%arg0: i32) -> (i32, i32) {
    %c0_i32 = arith.constant 0 : i32
    %c0_i32_0 = arith.constant 0 : i32
    return %c0_i32, %arg0 : i32, i32
  }
}

module attributes {stable_mosaic.version = 11 : i64} {
  func.func @_mm_fused_kernel(%arg0: i32, %arg1: memref<64x512xbf16, #tpu.memory_space<vmem>>, %arg2: memref<512x8xbf16, #tpu.memory_space<vmem>>, %arg3: memref<64x8xf32, #tpu.memory_space<vmem>>) attributes {dimension_semantics = [#tpu.dimension_semantics<arbitrary>], iteration_bounds = array<i64: 1>, scalar_prefetch = 0 : i64, scratch_operands = 0 : i64, tpu.core_type = #tpu.core_type<tc>, window_params = [{pipeline_mode = #tpu.pipeline_mode<synchronous>, transform_indices = @transform_0, window_bounds = array<i64: 64, 512>}, {transform_indices = @transform_1, window_bounds = array<i64: 512, 8>}, {transform_indices = @transform_2, window_bounds = array<i64: 64, 8>}]} {
    %c0 = arith.constant 0 : index
    %c0_0 = arith.constant 0 : index
    %0 = vector.load %arg2[%c0, %c0_0] : memref<512x8xbf16, #tpu.memory_space<vmem>>, vector<512x8xbf16>
    %cst = arith.constant 0.000000e+00 : bf16
    %1 = vector.broadcast %cst : bf16 to vector<512x8xbf16>
    %2 = arith.cmpf ogt, %0, %1 : vector<512x8xbf16>
    %cst_1 = arith.constant 2.001950e-01 : bf16
    %3 = vector.broadcast %cst_1 : bf16 to vector<512x8xbf16>
    %4 = arith.mulf %3, %0 : vector<512x8xbf16>
    %5 = arith.select %2, %0, %4 : vector<512x8xi1>, vector<512x8xbf16>
    %c0_2 = arith.constant 0 : index
    %c0_3 = arith.constant 0 : index
    %6 = vector.load %arg1[%c0_2, %c0_3] : memref<64x512xbf16, #tpu.memory_space<vmem>>, vector<64x512xbf16>
    %cst_4 = arith.constant dense<0.000000e+00> : vector<64x8xf32>
    %7 = tpu.matmul %6, %5, %cst_4 {dimension_numbers = #tpu.dot_dimension_numbers<[1], [0], [0], [1], [0, 0, 1, 1], [], []>} : vector<64x512xbf16>, vector<512x8xbf16>, vector<64x8xf32> -> vector<64x8xf32>
    %cst_5 = arith.constant dense<0.000000e+00> : vector<64xf32>
    %8 = vector.multi_reduction <add>, %7, %cst_5 [1] : vector<64x8xf32> to vector<64xf32>
    %9 = vector.shape_cast %8 : vector<64xf32> to vector<64x1xf32>
    %cst_6 = arith.constant 8.000000e+00 : f32
    %10 = vector.broadcast %cst_6 : f32 to vector<64x1xf32>
    %11 = arith.divf %9, %10 : vector<64x1xf32>
    %12 = vector.broadcast %11 : vector<64x1xf32> to vector<64x8xf32>
    %13 = arith.subf %7, %12 : vector<64x8xf32>
    %14 = arith.mulf %13, %13 : vector<64x8xf32>
    %cst_7 = arith.constant dense<0.000000e+00> : vector<64xf32>
    %15 = vector.multi_reduction <add>, %14, %cst_7 [1] : vector<64x8xf32> to vector<64xf32>
    %16 = vector.shape_cast %15 : vector<64xf32> to vector<64x1xf32>
    %cst_8 = arith.constant 8.000000e+00 : f32
    %17 = vector.broadcast %cst_8 : f32 to vector<64x1xf32>
    %18 = arith.divf %16, %17 : vector<64x1xf32>
    %19 = vector.broadcast %11 : vector<64x1xf32> to vector<64x8xf32>
    %20 = arith.subf %7, %19 : vector<64x8xf32>
    %cst_9 = arith.constant 9.99999974E-6 : f32
    %21 = vector.broadcast %cst_9 : f32 to vector<64x1xf32>
    %22 = arith.addf %18, %21 : vector<64x1xf32>
    %23 = math.rsqrt %22 : vector<64x1xf32>
    %24 = vector.broadcast %23 : vector<64x1xf32> to vector<64x8xf32>
    %25 = arith.mulf %20, %24 : vector<64x8xf32>
    %c0_10 = arith.constant 0 : index
    %c0_11 = arith.constant 0 : index
    %26 = vector.load %arg3[%c0_10, %c0_11] : memref<64x8xf32, #tpu.memory_space<vmem>>, vector<64x8xf32>
    tpu.vector_store %arg3[%c0_10, %c0_11], %25 {strides = array<i32>} : memref<64x8xf32, #tpu.memory_space<vmem>>, vector<64x8xf32>,
    return
  }
  func.func @transform_0(%arg0: i32) -> (i32, i32) {
    %c0_i32 = arith.constant 0 : i32
    %c0_i32_0 = arith.constant 0 : i32
    %c0_i32_1 = arith.constant 0 : i32
    return %c0_i32, %c0_i32_0 : i32, i32
  }
  func.func @transform_1(%arg0: i32) -> (i32, i32) {
    %c0_i32 = arith.constant 0 : i32
    %c0_i32_0 = arith.constant 0 : i32
    return %c0_i32, %arg0 : i32, i32
  }
  func.func @transform_2(%arg0: i32) -> (i32, i32) {
    %c0_i32 = arith.constant 0 : i32
    %c0_i32_0 = arith.constant 0 : i32
    return %c0_i32, %arg0 : i32, i32
  }
}

module attributes {stable_mosaic.version = 11 : i64} {
  func.func @_mm_fused_kernel(%arg0: i32, %arg1: memref<64x1024xbf16, #tpu.memory_space<vmem>>, %arg2: memref<1024x2xbf16, #tpu.memory_space<vmem>>, %arg3: memref<64x2xf32, #tpu.memory_space<vmem>>) attributes {dimension_semantics = [#tpu.dimension_semantics<parallel>], iteration_bounds = array<i64: 1>, scalar_prefetch = 0 : i64, scratch_operands = 0 : i64, tpu.core_type = #tpu.core_type<tc>, window_params = [{pipeline_mode = #tpu.pipeline_mode<synchronous>, transform_indices = @transform_0, window_bounds = array<i64: 64, 1024>}, {transform_indices = @transform_1, window_bounds = array<i64: 1024, 2>}, {transform_indices = @transform_2, window_bounds = array<i64: 64, 2>}]} {
    %c0 = arith.constant 0 : index
    %c0_0 = arith.constant 0 : index
    %0 = vector.load %arg2[%c0, %c0_0] : memref<1024x2xbf16, #tpu.memory_space<vmem>>, vector<1024x2xbf16>
    %cst = arith.constant 0.000000e+00 : bf16
    %1 = vector.broadcast %cst : bf16 to vector<1024x2xbf16>
    %2 = arith.cmpf ogt, %0, %1 : vector<1024x2xbf16>
    %cst_1 = arith.constant 2.001950e-01 : bf16
    %3 = vector.broadcast %cst_1 : bf16 to vector<1024x2xbf16>
    %4 = arith.mulf %3, %0 : vector<1024x2xbf16>
    %5 = arith.select %2, %0, %4 : vector<1024x2xi1>, vector<1024x2xbf16>
    %c0_2 = arith.constant 0 : index
    %c0_3 = arith.constant 0 : index
    %6 = vector.load %arg1[%c0_2, %c0_3] : memref<64x1024xbf16, #tpu.memory_space<vmem>>, vector<64x1024xbf16>
    %cst_4 = arith.constant dense<0.000000e+00> : vector<64x2xf32>
    %7 = tpu.matmul %6, %5, %cst_4 {dimension_numbers = #tpu.dot_dimension_numbers<[1], [0], [0], [1], [0, 0, 1, 1], [], []>} : vector<64x1024xbf16>, vector<1024x2xbf16>, vector<64x2xf32> -> vector<64x2xf32>
    %c0_5 = arith.constant 0 : index
    %c0_6 = arith.constant 0 : index
    %8 = vector.load %arg3[%c0_5, %c0_6] : memref<64x2xf32, #tpu.memory_space<vmem>>, vector<64x2xf32>
    tpu.vector_store %arg3[%c0_5, %c0_6], %7 {strides = array<i32>} : memref<64x2xf32, #tpu.memory_space<vmem>>, vector<64x2xf32>,
    return
  }
  func.func @transform_0(%arg0: i32) -> (i32, i32) {
    %c0_i32 = arith.constant 0 : i32
    %c0_i32_0 = arith.constant 0 : i32
    %c0_i32_1 = arith.constant 0 : i32
    return %c0_i32, %c0_i32_0 : i32, i32
  }
  func.func @transform_1(%arg0: i32) -> (i32, i32) {
    %c0_i32 = arith.constant 0 : i32
    %c0_i32_0 = arith.constant 0 : i32
    return %c0_i32, %arg0 : i32, i32
  }
  func.func @transform_2(%arg0: i32) -> (i32, i32) {
    %c0_i32 = arith.constant 0 : i32
    %c0_i32_0 = arith.constant 0 : i32
    return %c0_i32, %arg0 : i32, i32
  }
}

module attributes {stable_mosaic.version = 11 : i64} {
  func.func @_mm_fused_kernel(%arg0: i32, %arg1: memref<1024x64xbf16, #tpu.memory_space<vmem>>, %arg2: memref<64x2xbf16, #tpu.memory_space<vmem>>, %arg3: memref<1024x2xf32, #tpu.memory_space<vmem>>) attributes {dimension_semantics = [#tpu.dimension_semantics<parallel>], iteration_bounds = array<i64: 1>, scalar_prefetch = 0 : i64, scratch_operands = 0 : i64, tpu.core_type = #tpu.core_type<tc>, window_params = [{pipeline_mode = #tpu.pipeline_mode<synchronous>, transform_indices = @transform_0, window_bounds = array<i64: 1024, 64>}, {transform_indices = @transform_1, window_bounds = array<i64: 64, 2>}, {transform_indices = @transform_2, window_bounds = array<i64: 1024, 2>}]} {
    %c0 = arith.constant 0 : index
    %c0_0 = arith.constant 0 : index
    %0 = vector.load %arg2[%c0, %c0_0] : memref<64x2xbf16, #tpu.memory_space<vmem>>, vector<64x2xbf16>
    %cst = arith.constant 0.000000e+00 : bf16
    %1 = vector.broadcast %cst : bf16 to vector<64x2xbf16>
    %2 = arith.maximumf %0, %1 : vector<64x2xbf16>
    %c0_1 = arith.constant 0 : index
    %c0_2 = arith.constant 0 : index
    %3 = vector.load %arg1[%c0_1, %c0_2] : memref<1024x64xbf16, #tpu.memory_space<vmem>>, vector<1024x64xbf16>
    %cst_3 = arith.constant dense<0.000000e+00> : vector<1024x2xf32>
    %4 = tpu.matmul %3, %2, %cst_3 {dimension_numbers = #tpu.dot_dimension_numbers<[1], [0], [0], [1], [0, 0, 1, 1], [], []>} : vector<1024x64xbf16>, vector<64x2xbf16>, vector<1024x2xf32> -> vector<1024x2xf32>
    %c0_4 = arith.constant 0 : index
    %c0_5 = arith.constant 0 : index
    %5 = vector.load %arg3[%c0_4, %c0_5] : memref<1024x2xf32, #tpu.memory_space<vmem>>, vector<1024x2xf32>
    tpu.vector_store %arg3[%c0_4, %c0_5], %4 {strides = array<i32>} : memref<1024x2xf32, #tpu.memory_space<vmem>>, vector<1024x2xf32>,
    return
  }
  func.func @transform_0(%arg0: i32) -> (i32, i32) {
    %c0_i32 = arith.constant 0 : i32
    %c0_i32_0 = arith.constant 0 : i32
    %c0_i32_1 = arith.constant 0 : i32
    return %c0_i32, %c0_i32_0 : i32, i32
  }
  func.func @transform_1(%arg0: i32) -> (i32, i32) {
    %c0_i32 = arith.constant 0 : i32
    %c0_i32_0 = arith.constant 0 : i32
    return %c0_i32, %arg0 : i32, i32
  }
  func.func @transform_2(%arg0: i32) -> (i32, i32) {
    %c0_i32 = arith.constant 0 : i32
    %c0_i32_0 = arith.constant 0 : i32
    return %c0_i32, %arg0 : i32, i32
  }
}

module attributes {stable_mosaic.version = 11 : i64} {
  func.func @_bn_kernel(%arg0: i32, %arg1: memref<64x8xf32, #tpu.memory_space<vmem>>, %arg2: memref<64x8xf32, #tpu.memory_space<vmem>>) attributes {dimension_semantics = [#tpu.dimension_semantics<arbitrary>], iteration_bounds = array<i64: 1>, scalar_prefetch = 0 : i64, scratch_operands = 0 : i64, tpu.core_type = #tpu.core_type<tc>, window_params = [{pipeline_mode = #tpu.pipeline_mode<synchronous>, transform_indices = @transform_0, window_bounds = array<i64: 64, 8>}, {pipeline_mode = #tpu.pipeline_mode<synchronous>, transform_indices = @transform_1, window_bounds = array<i64: 64, 8>}]} {
    %c0 = arith.constant 0 : index
    %c0_0 = arith.constant 0 : index
    %0 = vector.load %arg1[%c0, %c0_0] : memref<64x8xf32, #tpu.memory_space<vmem>>, vector<64x8xf32>
    %cst = arith.constant dense<0.000000e+00> : vector<64xf32>
    %1 = vector.multi_reduction <add>, %0, %cst [1] : vector<64x8xf32> to vector<64xf32>
    %2 = vector.shape_cast %1 : vector<64xf32> to vector<64x1xf32>
    %cst_1 = arith.constant 8.000000e+00 : f32
    %3 = vector.broadcast %cst_1 : f32 to vector<64x1xf32>
    %4 = arith.divf %2, %3 : vector<64x1xf32>
    %5 = vector.broadcast %4 : vector<64x1xf32> to vector<64x8xf32>
    %6 = arith.subf %0, %5 : vector<64x8xf32>
    %7 = arith.mulf %6, %6 : vector<64x8xf32>
    %cst_2 = arith.constant dense<0.000000e+00> : vector<64xf32>
    %8 = vector.multi_reduction <add>, %7, %cst_2 [1] : vector<64x8xf32> to vector<64xf32>
    %9 = vector.shape_cast %8 : vector<64xf32> to vector<64x1xf32>
    %cst_3 = arith.constant 8.000000e+00 : f32
    %10 = vector.broadcast %cst_3 : f32 to vector<64x1xf32>
    %11 = arith.divf %9, %10 : vector<64x1xf32>
    %12 = vector.broadcast %4 : vector<64x1xf32> to vector<64x8xf32>
    %13 = arith.subf %0, %12 : vector<64x8xf32>
    %cst_4 = arith.constant 9.99999974E-6 : f32
    %14 = vector.broadcast %cst_4 : f32 to vector<64x1xf32>
    %15 = arith.addf %11, %14 : vector<64x1xf32>
    %16 = math.rsqrt %15 : vector<64x1xf32>
    %17 = vector.broadcast %16 : vector<64x1xf32> to vector<64x8xf32>
    %18 = arith.mulf %13, %17 : vector<64x8xf32>
    %c0_5 = arith.constant 0 : index
    %c0_6 = arith.constant 0 : index
    %19 = vector.load %arg2[%c0_5, %c0_6] : memref<64x8xf32, #tpu.memory_space<vmem>>, vector<64x8xf32>
    tpu.vector_store %arg2[%c0_5, %c0_6], %18 {strides = array<i32>} : memref<64x8xf32, #tpu.memory_space<vmem>>, vector<64x8xf32>,
    return
  }
  func.func @transform_0(%arg0: i32) -> (i32, i32) {
    %c0_i32 = arith.constant 0 : i32
    %c0_i32_0 = arith.constant 0 : i32
    %c0_i32_1 = arith.constant 0 : i32
    return %c0_i32, %c0_i32_0 : i32, i32
  }
  func.func @transform_1(%arg0: i32) -> (i32, i32) {
    %c0_i32 = arith.constant 0 : i32
    %c0_i32_0 = arith.constant 0 : i32
    %c0_i32_1 = arith.constant 0 : i32
    return %c0_i32, %c0_i32_0 : i32, i32
  }
}

module attributes {stable_mosaic.version = 11 : i64} {
  func.func @_mm_fused_kernel(%arg0: i32, %arg1: memref<512x128xbf16, #tpu.memory_space<vmem>>, %arg2: memref<128x8xbf16, #tpu.memory_space<vmem>>, %arg3: memref<512x8xf32, #tpu.memory_space<vmem>>) attributes {dimension_semantics = [#tpu.dimension_semantics<parallel>], iteration_bounds = array<i64: 1>, scalar_prefetch = 0 : i64, scratch_operands = 0 : i64, tpu.core_type = #tpu.core_type<tc>, window_params = [{pipeline_mode = #tpu.pipeline_mode<synchronous>, transform_indices = @transform_0, window_bounds = array<i64: 512, 128>}, {transform_indices = @transform_1, window_bounds = array<i64: 128, 8>}, {transform_indices = @transform_2, window_bounds = array<i64: 512, 8>}]} {
    %c0 = arith.constant 0 : index
    %c0_0 = arith.constant 0 : index
    %0 = vector.load %arg2[%c0, %c0_0] : memref<128x8xbf16, #tpu.memory_space<vmem>>, vector<128x8xbf16>
    %cst = arith.constant 0.000000e+00 : bf16
    %1 = vector.broadcast %cst : bf16 to vector<128x8xbf16>
    %2 = arith.maximumf %0, %1 : vector<128x8xbf16>
    %c0_1 = arith.constant 0 : index
    %c0_2 = arith.constant 0 : index
    %3 = vector.load %arg1[%c0_1, %c0_2] : memref<512x128xbf16, #tpu.memory_space<vmem>>, vector<512x128xbf16>
    %cst_3 = arith.constant dense<0.000000e+00> : vector<512x8xf32>
    %4 = tpu.matmul %3, %2, %cst_3 {dimension_numbers = #tpu.dot_dimension_numbers<[1], [0], [0], [1], [0, 0, 1, 1], [], []>} : vector<512x128xbf16>, vector<128x8xbf16>, vector<512x8xf32> -> vector<512x8xf32>
    %c0_4 = arith.constant 0 : index
    %c0_5 = arith.constant 0 : index
    %5 = vector.load %arg3[%c0_4, %c0_5] : memref<512x8xf32, #tpu.memory_space<vmem>>, vector<512x8xf32>
    tpu.vector_store %arg3[%c0_4, %c0_5], %4 {strides = array<i32>} : memref<512x8xf32, #tpu.memory_space<vmem>>, vector<512x8xf32>,
    return
  }
  func.func @transform_0(%arg0: i32) -> (i32, i32) {
    %c0_i32 = arith.constant 0 : i32
    %c0_i32_0 = arith.constant 0 : i32
    %c0_i32_1 = arith.constant 0 : i32
    return %c0_i32, %c0_i32_0 : i32, i32
  }
  func.func @transform_1(%arg0: i32) -> (i32, i32) {
    %c0_i32 = arith.constant 0 : i32
    %c0_i32_0 = arith.constant 0 : i32
    return %c0_i32, %arg0 : i32, i32
  }
  func.func @transform_2(%arg0: i32) -> (i32, i32) {
    %c0_i32 = arith.constant 0 : i32
    %c0_i32_0 = arith.constant 0 : i32
    return %c0_i32, %arg0 : i32, i32
  }
}

module attributes {stable_mosaic.version = 11 : i64} {
  func.func @_bn_kernel(%arg0: i32, %arg1: memref<32x32xf32, #tpu.memory_space<vmem>>, %arg2: memref<32x32xf32, #tpu.memory_space<vmem>>) attributes {dimension_semantics = [#tpu.dimension_semantics<arbitrary>], iteration_bounds = array<i64: 1>, scalar_prefetch = 0 : i64, scratch_operands = 0 : i64, tpu.core_type = #tpu.core_type<tc>, window_params = [{pipeline_mode = #tpu.pipeline_mode<synchronous>, transform_indices = @transform_0, window_bounds = array<i64: 32, 32>}, {pipeline_mode = #tpu.pipeline_mode<synchronous>, transform_indices = @transform_1, window_bounds = array<i64: 32, 32>}]} {
    %c0 = arith.constant 0 : index
    %c0_0 = arith.constant 0 : index
    %0 = vector.load %arg1[%c0, %c0_0] : memref<32x32xf32, #tpu.memory_space<vmem>>, vector<32x32xf32>
    %cst = arith.constant dense<0.000000e+00> : vector<32xf32>
    %1 = vector.multi_reduction <add>, %0, %cst [1] : vector<32x32xf32> to vector<32xf32>
    %2 = vector.shape_cast %1 : vector<32xf32> to vector<32x1xf32>
    %cst_1 = arith.constant 3.200000e+01 : f32
    %3 = vector.broadcast %cst_1 : f32 to vector<32x1xf32>
    %4 = arith.divf %2, %3 : vector<32x1xf32>
    %5 = vector.broadcast %4 : vector<32x1xf32> to vector<32x32xf32>
    %6 = arith.subf %0, %5 : vector<32x32xf32>
    %7 = arith.mulf %6, %6 : vector<32x32xf32>
    %cst_2 = arith.constant dense<0.000000e+00> : vector<32xf32>
    %8 = vector.multi_reduction <add>, %7, %cst_2 [1] : vector<32x32xf32> to vector<32xf32>
    %9 = vector.shape_cast %8 : vector<32xf32> to vector<32x1xf32>
    %cst_3 = arith.constant 3.200000e+01 : f32
    %10 = vector.broadcast %cst_3 : f32 to vector<32x1xf32>
    %11 = arith.divf %9, %10 : vector<32x1xf32>
    %12 = vector.broadcast %4 : vector<32x1xf32> to vector<32x32xf32>
    %13 = arith.subf %0, %12 : vector<32x32xf32>
    %cst_4 = arith.constant 9.99999974E-6 : f32
    %14 = vector.broadcast %cst_4 : f32 to vector<32x1xf32>
    %15 = arith.addf %11, %14 : vector<32x1xf32>
    %16 = math.rsqrt %15 : vector<32x1xf32>
    %17 = vector.broadcast %16 : vector<32x1xf32> to vector<32x32xf32>
    %18 = arith.mulf %13, %17 : vector<32x32xf32>
    %c0_5 = arith.constant 0 : index
    %c0_6 = arith.constant 0 : index
    %19 = vector.load %arg2[%c0_5, %c0_6] : memref<32x32xf32, #tpu.memory_space<vmem>>, vector<32x32xf32>
    tpu.vector_store %arg2[%c0_5, %c0_6], %18 {strides = array<i32>} : memref<32x32xf32, #tpu.memory_space<vmem>>, vector<32x32xf32>,
    return
  }
  func.func @transform_0(%arg0: i32) -> (i32, i32) {
    %c0_i32 = arith.constant 0 : i32
    %c0_i32_0 = arith.constant 0 : i32
    %c0_i32_1 = arith.constant 0 : i32
    return %c0_i32, %c0_i32_0 : i32, i32
  }
  func.func @transform_1(%arg0: i32) -> (i32, i32) {
    %c0_i32 = arith.constant 0 : i32
    %c0_i32_0 = arith.constant 0 : i32
    %c0_i32_1 = arith.constant 0 : i32
    return %c0_i32, %c0_i32_0 : i32, i32
  }
}

module attributes {stable_mosaic.version = 11 : i64} {
  func.func @_mm_fused_kernel(%arg0: i32, %arg1: memref<256x64xbf16, #tpu.memory_space<vmem>>, %arg2: memref<64x32xbf16, #tpu.memory_space<vmem>>, %arg3: memref<256x32xf32, #tpu.memory_space<vmem>>) attributes {dimension_semantics = [#tpu.dimension_semantics<parallel>], iteration_bounds = array<i64: 1>, scalar_prefetch = 0 : i64, scratch_operands = 0 : i64, tpu.core_type = #tpu.core_type<tc>, window_params = [{pipeline_mode = #tpu.pipeline_mode<synchronous>, transform_indices = @transform_0, window_bounds = array<i64: 256, 64>}, {transform_indices = @transform_1, window_bounds = array<i64: 64, 32>}, {transform_indices = @transform_2, window_bounds = array<i64: 256, 32>}]} {
    %c0 = arith.constant 0 : index
    %c0_0 = arith.constant 0 : index
    %0 = vector.load %arg2[%c0, %c0_0] : memref<64x32xbf16, #tpu.memory_space<vmem>>, vector<64x32xbf16>
    %cst = arith.constant 0.000000e+00 : bf16
    %1 = vector.broadcast %cst : bf16 to vector<64x32xbf16>
    %2 = arith.maximumf %0, %1 : vector<64x32xbf16>
    %c0_1 = arith.constant 0 : index
    %c0_2 = arith.constant 0 : index
    %3 = vector.load %arg1[%c0_1, %c0_2] : memref<256x64xbf16, #tpu.memory_space<vmem>>, vector<256x64xbf16>
    %cst_3 = arith.constant dense<0.000000e+00> : vector<256x32xf32>
    %4 = tpu.matmul %3, %2, %cst_3 {dimension_numbers = #tpu.dot_dimension_numbers<[1], [0], [0], [1], [0, 0, 1, 1], [], []>} : vector<256x64xbf16>, vector<64x32xbf16>, vector<256x32xf32> -> vector<256x32xf32>
    %c0_4 = arith.constant 0 : index
    %c0_5 = arith.constant 0 : index
    %5 = vector.load %arg3[%c0_4, %c0_5] : memref<256x32xf32, #tpu.memory_space<vmem>>, vector<256x32xf32>
    tpu.vector_store %arg3[%c0_4, %c0_5], %4 {strides = array<i32>} : memref<256x32xf32, #tpu.memory_space<vmem>>, vector<256x32xf32>,
    return
  }
  func.func @transform_0(%arg0: i32) -> (i32, i32) {
    %c0_i32 = arith.constant 0 : i32
    %c0_i32_0 = arith.constant 0 : i32
    %c0_i32_1 = arith.constant 0 : i32
    return %c0_i32, %c0_i32_0 : i32, i32
  }
  func.func @transform_1(%arg0: i32) -> (i32, i32) {
    %c0_i32 = arith.constant 0 : i32
    %c0_i32_0 = arith.constant 0 : i32
    return %c0_i32, %arg0 : i32, i32
  }
  func.func @transform_2(%arg0: i32) -> (i32, i32) {
    %c0_i32 = arith.constant 0 : i32
    %c0_i32_0 = arith.constant 0 : i32
    return %c0_i32, %arg0 : i32, i32
  }
}

module attributes {stable_mosaic.version = 11 : i64} {
  func.func @_bn_kernel(%arg0: i32, %arg1: memref<16x128xf32, #tpu.memory_space<vmem>>, %arg2: memref<16x128xf32, #tpu.memory_space<vmem>>) attributes {dimension_semantics = [#tpu.dimension_semantics<arbitrary>], iteration_bounds = array<i64: 1>, scalar_prefetch = 0 : i64, scratch_operands = 0 : i64, tpu.core_type = #tpu.core_type<tc>, window_params = [{pipeline_mode = #tpu.pipeline_mode<synchronous>, transform_indices = @transform_0, window_bounds = array<i64: 16, 128>}, {pipeline_mode = #tpu.pipeline_mode<synchronous>, transform_indices = @transform_1, window_bounds = array<i64: 16, 128>}]} {
    %c0 = arith.constant 0 : index
    %c0_0 = arith.constant 0 : index
    %0 = vector.load %arg1[%c0, %c0_0] : memref<16x128xf32, #tpu.memory_space<vmem>>, vector<16x128xf32>
    %cst = arith.constant dense<0.000000e+00> : vector<16xf32>
    %1 = vector.multi_reduction <add>, %0, %cst [1] : vector<16x128xf32> to vector<16xf32>
    %2 = vector.shape_cast %1 : vector<16xf32> to vector<16x1xf32>
    %cst_1 = arith.constant 1.280000e+02 : f32
    %3 = vector.broadcast %cst_1 : f32 to vector<16x1xf32>
    %4 = arith.divf %2, %3 : vector<16x1xf32>
    %5 = vector.broadcast %4 : vector<16x1xf32> to vector<16x128xf32>
    %6 = arith.subf %0, %5 : vector<16x128xf32>
    %7 = arith.mulf %6, %6 : vector<16x128xf32>
    %cst_2 = arith.constant dense<0.000000e+00> : vector<16xf32>
    %8 = vector.multi_reduction <add>, %7, %cst_2 [1] : vector<16x128xf32> to vector<16xf32>
    %9 = vector.shape_cast %8 : vector<16xf32> to vector<16x1xf32>
    %cst_3 = arith.constant 1.280000e+02 : f32
    %10 = vector.broadcast %cst_3 : f32 to vector<16x1xf32>
    %11 = arith.divf %9, %10 : vector<16x1xf32>
    %12 = vector.broadcast %4 : vector<16x1xf32> to vector<16x128xf32>
    %13 = arith.subf %0, %12 : vector<16x128xf32>
    %cst_4 = arith.constant 9.99999974E-6 : f32
    %14 = vector.broadcast %cst_4 : f32 to vector<16x1xf32>
    %15 = arith.addf %11, %14 : vector<16x1xf32>
    %16 = math.rsqrt %15 : vector<16x1xf32>
    %17 = vector.broadcast %16 : vector<16x1xf32> to vector<16x128xf32>
    %18 = arith.mulf %13, %17 : vector<16x128xf32>
    %c0_5 = arith.constant 0 : index
    %c0_6 = arith.constant 0 : index
    %19 = vector.load %arg2[%c0_5, %c0_6] : memref<16x128xf32, #tpu.memory_space<vmem>>, vector<16x128xf32>
    tpu.vector_store %arg2[%c0_5, %c0_6], %18 {strides = array<i32>} : memref<16x128xf32, #tpu.memory_space<vmem>>, vector<16x128xf32>,
    return
  }
  func.func @transform_0(%arg0: i32) -> (i32, i32) {
    %c0_i32 = arith.constant 0 : i32
    %c0_i32_0 = arith.constant 0 : i32
    %c0_i32_1 = arith.constant 0 : i32
    return %c0_i32, %c0_i32_0 : i32, i32
  }
  func.func @transform_1(%arg0: i32) -> (i32, i32) {
    %c0_i32 = arith.constant 0 : i32
    %c0_i32_0 = arith.constant 0 : i32
    %c0_i32_1 = arith.constant 0 : i32
    return %c0_i32, %c0_i32_0 : i32, i32
  }
}

module attributes {stable_mosaic.version = 11 : i64} {
  func.func @_mm_fused_kernel(%arg0: i32, %arg1: memref<128x32xbf16, #tpu.memory_space<vmem>>, %arg2: memref<32x128xbf16, #tpu.memory_space<vmem>>, %arg3: memref<128x128xf32, #tpu.memory_space<vmem>>) attributes {dimension_semantics = [#tpu.dimension_semantics<parallel>], iteration_bounds = array<i64: 1>, scalar_prefetch = 0 : i64, scratch_operands = 0 : i64, tpu.core_type = #tpu.core_type<tc>, window_params = [{pipeline_mode = #tpu.pipeline_mode<synchronous>, transform_indices = @transform_0, window_bounds = array<i64: 128, 32>}, {transform_indices = @transform_1, window_bounds = array<i64: 32, 128>}, {transform_indices = @transform_2, window_bounds = array<i64: 128, 128>}]} {
    %c0 = arith.constant 0 : index
    %c0_0 = arith.constant 0 : index
    %0 = vector.load %arg2[%c0, %c0_0] : memref<32x128xbf16, #tpu.memory_space<vmem>>, vector<32x128xbf16>
    %cst = arith.constant 0.000000e+00 : bf16
    %1 = vector.broadcast %cst : bf16 to vector<32x128xbf16>
    %2 = arith.maximumf %0, %1 : vector<32x128xbf16>
    %c0_1 = arith.constant 0 : index
    %c0_2 = arith.constant 0 : index
    %3 = vector.load %arg1[%c0_1, %c0_2] : memref<128x32xbf16, #tpu.memory_space<vmem>>, vector<128x32xbf16>
    %cst_3 = arith.constant dense<0.000000e+00> : vector<128x128xf32>
    %4 = tpu.matmul %3, %2, %cst_3 {dimension_numbers = #tpu.dot_dimension_numbers<[1], [0], [0], [1], [0, 0, 1, 1], [], []>} : vector<128x32xbf16>, vector<32x128xbf16>, vector<128x128xf32> -> vector<128x128xf32>
    %c0_4 = arith.constant 0 : index
    %c0_5 = arith.constant 0 : index
    %5 = vector.load %arg3[%c0_4, %c0_5] : memref<128x128xf32, #tpu.memory_space<vmem>>, vector<128x128xf32>
    tpu.vector_store %arg3[%c0_4, %c0_5], %4 {strides = array<i32>} : memref<128x128xf32, #tpu.memory_space<vmem>>, vector<128x128xf32>,
    return
  }
  func.func @transform_0(%arg0: i32) -> (i32, i32) {
    %c0_i32 = arith.constant 0 : i32
    %c0_i32_0 = arith.constant 0 : i32
    %c0_i32_1 = arith.constant 0 : i32
    return %c0_i32, %c0_i32_0 : i32, i32
  }
  func.func @transform_1(%arg0: i32) -> (i32, i32) {
    %c0_i32 = arith.constant 0 : i32
    %c0_i32_0 = arith.constant 0 : i32
    return %c0_i32, %arg0 : i32, i32
  }
  func.func @transform_2(%arg0: i32) -> (i32, i32) {
    %c0_i32 = arith.constant 0 : i32
    %c0_i32_0 = arith.constant 0 : i32
    return %c0_i32, %arg0 : i32, i32
  }
}

module attributes {stable_mosaic.version = 11 : i64} {
  func.func @_bn_kernel(%arg0: i32, %arg1: memref<8x512xf32, #tpu.memory_space<vmem>>, %arg2: memref<8x512xf32, #tpu.memory_space<vmem>>) attributes {dimension_semantics = [#tpu.dimension_semantics<arbitrary>], iteration_bounds = array<i64: 1>, scalar_prefetch = 0 : i64, scratch_operands = 0 : i64, tpu.core_type = #tpu.core_type<tc>, window_params = [{pipeline_mode = #tpu.pipeline_mode<synchronous>, transform_indices = @transform_0, window_bounds = array<i64: 8, 512>}, {pipeline_mode = #tpu.pipeline_mode<synchronous>, transform_indices = @transform_1, window_bounds = array<i64: 8, 512>}]} {
    %c0 = arith.constant 0 : index
    %c0_0 = arith.constant 0 : index
    %0 = vector.load %arg1[%c0, %c0_0] : memref<8x512xf32, #tpu.memory_space<vmem>>, vector<8x512xf32>
    %cst = arith.constant dense<0.000000e+00> : vector<8xf32>
    %1 = vector.multi_reduction <add>, %0, %cst [1] : vector<8x512xf32> to vector<8xf32>
    %2 = vector.shape_cast %1 : vector<8xf32> to vector<8x1xf32>
    %cst_1 = arith.constant 5.120000e+02 : f32
    %3 = vector.broadcast %cst_1 : f32 to vector<8x1xf32>
    %4 = arith.divf %2, %3 : vector<8x1xf32>
    %5 = vector.broadcast %4 : vector<8x1xf32> to vector<8x512xf32>
    %6 = arith.subf %0, %5 : vector<8x512xf32>
    %7 = arith.mulf %6, %6 : vector<8x512xf32>
    %cst_2 = arith.constant dense<0.000000e+00> : vector<8xf32>
    %8 = vector.multi_reduction <add>, %7, %cst_2 [1] : vector<8x512xf32> to vector<8xf32>
    %9 = vector.shape_cast %8 : vector<8xf32> to vector<8x1xf32>
    %cst_3 = arith.constant 5.120000e+02 : f32
    %10 = vector.broadcast %cst_3 : f32 to vector<8x1xf32>
    %11 = arith.divf %9, %10 : vector<8x1xf32>
    %12 = vector.broadcast %4 : vector<8x1xf32> to vector<8x512xf32>
    %13 = arith.subf %0, %12 : vector<8x512xf32>
    %cst_4 = arith.constant 9.99999974E-6 : f32
    %14 = vector.broadcast %cst_4 : f32 to vector<8x1xf32>
    %15 = arith.addf %11, %14 : vector<8x1xf32>
    %16 = math.rsqrt %15 : vector<8x1xf32>
    %17 = vector.broadcast %16 : vector<8x1xf32> to vector<8x512xf32>
    %18 = arith.mulf %13, %17 : vector<8x512xf32>
    %c0_5 = arith.constant 0 : index
    %c0_6 = arith.constant 0 : index
    %19 = vector.load %arg2[%c0_5, %c0_6] : memref<8x512xf32, #tpu.memory_space<vmem>>, vector<8x512xf32>
    tpu.vector_store %arg2[%c0_5, %c0_6], %18 {strides = array<i32>} : memref<8x512xf32, #tpu.memory_space<vmem>>, vector<8x512xf32>,
    return
  }
  func.func @transform_0(%arg0: i32) -> (i32, i32) {
    %c0_i32 = arith.constant 0 : i32
    %c0_i32_0 = arith.constant 0 : i32
    %c0_i32_1 = arith.constant 0 : i32
    return %c0_i32, %c0_i32_0 : i32, i32
  }
  func.func @transform_1(%arg0: i32) -> (i32, i32) {
    %c0_i32 = arith.constant 0 : i32
    %c0_i32_0 = arith.constant 0 : i32
    %c0_i32_1 = arith.constant 0 : i32
    return %c0_i32, %c0_i32_0 : i32, i32
  }
}

module attributes {stable_mosaic.version = 11 : i64} {
  func.func @_mm_fused_kernel(%arg0: i32, %arg1: memref<48x16xbf16, #tpu.memory_space<vmem>>, %arg2: memref<16x512xbf16, #tpu.memory_space<vmem>>, %arg3: memref<48x512xf32, #tpu.memory_space<vmem>>) attributes {dimension_semantics = [#tpu.dimension_semantics<parallel>], iteration_bounds = array<i64: 1>, scalar_prefetch = 0 : i64, scratch_operands = 0 : i64, tpu.core_type = #tpu.core_type<tc>, window_params = [{pipeline_mode = #tpu.pipeline_mode<synchronous>, transform_indices = @transform_0, window_bounds = array<i64: 48, 16>}, {transform_indices = @transform_1, window_bounds = array<i64: 16, 512>}, {transform_indices = @transform_2, window_bounds = array<i64: 48, 512>}]} {
    %c0 = arith.constant 0 : index
    %c0_0 = arith.constant 0 : index
    %0 = vector.load %arg2[%c0, %c0_0] : memref<16x512xbf16, #tpu.memory_space<vmem>>, vector<16x512xbf16>
    %cst = arith.constant 0.000000e+00 : bf16
    %1 = vector.broadcast %cst : bf16 to vector<16x512xbf16>
    %2 = arith.maximumf %0, %1 : vector<16x512xbf16>
    %c0_1 = arith.constant 0 : index
    %c0_2 = arith.constant 0 : index
    %3 = vector.load %arg1[%c0_1, %c0_2] : memref<48x16xbf16, #tpu.memory_space<vmem>>, vector<48x16xbf16>
    %cst_3 = arith.constant dense<0.000000e+00> : vector<48x512xf32>
    %4 = tpu.matmul %3, %2, %cst_3 {dimension_numbers = #tpu.dot_dimension_numbers<[1], [0], [0], [1], [0, 0, 1, 1], [], []>} : vector<48x16xbf16>, vector<16x512xbf16>, vector<48x512xf32> -> vector<48x512xf32>
    %c0_4 = arith.constant 0 : index
    %c0_5 = arith.constant 0 : index
    %5 = vector.load %arg3[%c0_4, %c0_5] : memref<48x512xf32, #tpu.memory_space<vmem>>, vector<48x512xf32>
    tpu.vector_store %arg3[%c0_4, %c0_5], %4 {strides = array<i32>} : memref<48x512xf32, #tpu.memory_space<vmem>>, vector<48x512xf32>,
    return
  }
  func.func @transform_0(%arg0: i32) -> (i32, i32) {
    %c0_i32 = arith.constant 0 : i32
    %c0_i32_0 = arith.constant 0 : i32
    %c0_i32_1 = arith.constant 0 : i32
    return %c0_i32, %c0_i32_0 : i32, i32
  }
  func.func @transform_1(%arg0: i32) -> (i32, i32) {
    %c0_i32 = arith.constant 0 : i32
    %c0_i32_0 = arith.constant 0 : i32
    return %c0_i32, %arg0 : i32, i32
  }
  func.func @transform_2(%arg0: i32) -> (i32, i32) {
    %c0_i32 = arith.constant 0 : i32
    %c0_i32_0 = arith.constant 0 : i32
    return %c0_i32, %arg0 : i32, i32
  }
}

module attributes {stable_mosaic.version = 11 : i64} {
  func.func @_bias_tanh_kernel(%arg0: i32, %arg1: memref<3x2048xf32, #tpu.memory_space<vmem>>, %arg2: memref<3x1xf32, #tpu.memory_space<vmem>>, %arg3: memref<3x2048xf32, #tpu.memory_space<vmem>>) attributes {dimension_semantics = [#tpu.dimension_semantics<arbitrary>], iteration_bounds = array<i64: 1>, scalar_prefetch = 0 : i64, scratch_operands = 0 : i64, tpu.core_type = #tpu.core_type<tc>, window_params = [{pipeline_mode = #tpu.pipeline_mode<synchronous>, transform_indices = @transform_0, window_bounds = array<i64: 3, 2048>}, {pipeline_mode = #tpu.pipeline_mode<synchronous>, transform_indices = @transform_1, window_bounds = array<i64: 3, 1>}, {pipeline_mode = #tpu.pipeline_mode<synchronous>, transform_indices = @transform_2, window_bounds = array<i64: 3, 2048>}]} {
    %c0 = arith.constant 0 : index
    %c0_0 = arith.constant 0 : index
    %0 = vector.load %arg1[%c0, %c0_0] : memref<3x2048xf32, #tpu.memory_space<vmem>>, vector<3x2048xf32>
    %c0_1 = arith.constant 0 : index
    %c0_2 = arith.constant 0 : index
    %1 = vector.load %arg2[%c0_1, %c0_2] : memref<3x1xf32, #tpu.memory_space<vmem>>, vector<3x1xf32>
    %2 = vector.broadcast %1 : vector<3x1xf32> to vector<3x2048xf32>
    %3 = arith.addf %0, %2 : vector<3x2048xf32>
    %4 = math.tanh %3 : vector<3x2048xf32>
    %c0_3 = arith.constant 0 : index
    %c0_4 = arith.constant 0 : index
    %5 = vector.load %arg3[%c0_3, %c0_4] : memref<3x2048xf32, #tpu.memory_space<vmem>>, vector<3x2048xf32>
    tpu.vector_store %arg3[%c0_3, %c0_4], %4 {strides = array<i32>} : memref<3x2048xf32, #tpu.memory_space<vmem>>, vector<3x2048xf32>,
    return
  }
  func.func @transform_0(%arg0: i32) -> (i32, i32) {
    %c0_i32 = arith.constant 0 : i32
    %c0_i32_0 = arith.constant 0 : i32
    %c0_i32_1 = arith.constant 0 : i32
    return %c0_i32, %c0_i32_0 : i32, i32
  }
  func.func @transform_1(%arg0: i32) -> (i32, i32) {
    %c0_i32 = arith.constant 0 : i32
    %c0_i32_0 = arith.constant 0 : i32
    %c0_i32_1 = arith.constant 0 : i32
    return %c0_i32, %c0_i32_0 : i32, i32
  }
  func.func @transform_2(%arg0: i32) -> (i32, i32) {
    %c0_i32 = arith.constant 0 : i32
    %c0_i32_0 = arith.constant 0 : i32
    %c0_i32_1 = arith.constant 0 : i32
    return %c0_i32, %c0_i32_0 : i32, i32
  }
}

</mosaic_0001>

<bundles_post_ra>
// kernel: _lambda_.15
= control target key start
LH: loop header
LB: loop body
LE: loop exit
PB: predicated region body
PF: predicated region fallthrough
CT: control target
= control target key end

     0   :  { %v212_v1 = vmov 0   ;;  %vm85_vm0 = vcmask 392192   ;;  %s279_s1 = inlined_call_operand.vmem [shape: bf16[48,512], index: 1, kind: input, shape index: {}]   ;;  %s280_s0 = inlined_call_operand.vmem [shape: bf16[8,48], index: 0, kind: input, shape index: {}]   ;;  %s281_s2 = inlined_call_operand.vmem [shape: f32[8,512], index: 2, kind: output, shape index: {}]  }
   0x1   :  { %v194_v0 = vld [vmem:[%s279_s1 + $0x4] ss:$16 sps:$4 sm:$0xff]   ;;  %121 = vmatprep.mubr.bf16.mxu0 %v212_v1  ;;  %162 = vmatprep.mubr.bf16.mxu1 %v212_v1  ;;  %v196_v2 = vld [vmem:[%s279_s1 + $0xc] ss:$16 sps:$4 sm:$0xff]   ;;  %v198_v3 = vld [vmem:[%s279_s1] ss:$16 sps:$4 sm:$0xff]  }
   0x2   :  { %89 = vmatprep.subr.bf16.mxu0 %v194_v0  ;;  %v199_v4 = vld [vmem:[%s279_s1 + $0x8] ss:$16 sps:$4 sm:$0xff]   ;;  %130 = vmatprep.subr.bf16.mxu1 %v196_v2  ;;  %v200_v5 = vld [vmem:[%s279_s1 + $0x24] ss:$16 sps:$4 sm:$0xff]   ;;  %v202_v6 = vld [vmem:[%s279_s1 + $0x2c] ss:$16 sps:$4 sm:$0xff]  }
   0x3   :  { %90 = vmatpush1.bf16.msra.mxu0 %v198_v3  ;;  %131 = vmatpush1.bf16.msra.mxu1 %v199_v4  ;;  %v204_v7 = vld [vmem:[%s279_s1 + $0x20] ss:$16 sps:$4 sm:$0xff]   ;;  %v205_v8 = vld [vmem:[%s279_s1 + $0x28] ss:$16 sps:$4 sm:$0xff]   ;;  %v206_v9 = vld [vmem:[%s279_s1 + $0x44] ss:$16 sps:$4 sm:$0xff]  }
   0x4   :  { %91 = vmatprep.subr.bf16.mxu0 %v200_v5  ;;  %132 = vmatprep.subr.bf16.mxu1 %v202_v6  ;;  %v208_v10 = vld [vmem:[%s279_s1 + $0x4c] ss:$16 sps:$4 sm:$0xff]   ;;  %v210_v11 = vld [vmem:[%s279_s1 + $0x40] ss:$16 sps:$4 sm:$0xff]   ;;  %v211_v12 = vld [vmem:[%s279_s1 + $0x48] ss:$16 sps:$4 sm:$0xff]  }
   0x5   :  { %v24_v13 = vld [vmem:[%s280_s0] sm:$0xf] }
   0x7   :  { %92 = vmatpush1.bf16.msra.mxu0 %v204_v7  ;;  %133 = vmatpush1.bf16.msra.mxu1 %v205_v8 }
   0x8   :  { %93 = vmatprep.subr.bf16.mxu0 %v206_v9  ;;  %134 = vmatprep.subr.bf16.mxu1 %v208_v10 }
   0xb   :  { %94 = vmatpush1.bf16.msra.mxu0 %v210_v11  ;;  %135 = vmatpush1.bf16.msra.mxu1 %v211_v12 }
   0xe   :  { %191 = vmatmul.mubr.msk.bf16.vlgmr.msra.gmra.mrb[0].mxu0 %vm85_vm0, %v24_v13  ;;  %192 = vmatmul.mubr.msk.bf16.vlgmr.msra.gmra.mrb[0].mxu1 %vm85_vm0, %v24_v13 }
  0xe1   :  { %v123_v14 = vpop.f32.mrb[0].mxu0  ;;  %v164_v15 = vpop.f32.mrb[0].mxu1 }
  0xe2   :  { %171 = vst [vmem:[%s281_s2] sm:$0xff] %v123_v14  ;;  %173 = vst [vmem:[%s281_s2 + $0x10] sm:$0xff] %v164_v15  ;;  %v125_v16 = vpop.f32.mrb[1].mxu0  ;;  %v166_v17 = vpop.f32.mrb[1].mxu1 }
  0xe3   :  { %172 = vst [vmem:[%s281_s2 + $0x8] sm:$0xff] %v125_v16  ;;  %174 = vst [vmem:[%s281_s2 + $0x18] sm:$0xff] %v166_v17  ;;  %v127_v18 = vpop.f32.mrb[2].mxu0  ;;  %v168_v19 = vpop.f32.mrb[2].mxu1 }
  0xe4   :  { %v128_v20 = vpop.f32.mrb[3].mxu0  ;;  %v169_v21 = vpop.f32.mrb[3].mxu1 }

// kernel: _lambda_.16
= control target key start
LH: loop header
LB: loop body
LE: loop exit
PB: predicated region body
PF: predicated region fallthrough
CT: control target
= control target key end

     0   :  { %v248_v0 = vmov 0.0   ;;  %vm249_vm0 = vmmov 0   ;;  %s331_s1 = inlined_call_operand.vmem [shape: bf16[128,128], index: 1, kind: input, shape index: {}]   ;;  %s332_s0 = inlined_call_operand.vmem [shape: bf16[16,128], index: 0, kind: input, shape index: {}]   ;;  %s333_s2 = inlined_call_operand.vmem [shape: f32[16,128], index: 2, kind: output, shape index: {}]  }
   0x1   :  { %221 = vmatprep.subr.bf16.mxu0 %v248_v0  ;;  %v13_v1 = vld [vmem:[%s331_s1] sm:$0xf]  ;;  %v14_v2 = vld [vmem:[%s331_s1 + $0x4] sm:$0xf]  ;;  %v15_v3 = vld [vmem:[%s331_s1 + $0x8] sm:$0xf]  ;;  %237 = vmatprep.mubr.msk.bf16.mxu0 %vm249_vm0, %v248_v0 }
   0x2   :  { %vm29_vm1 = vcmp.gt.bf16.partialorder %v13_v1, 0  ;;  %vm30_vm2 = vcmp.gt.bf16.partialorder %v14_v2, 0  ;;  %v45_v4 = vmul.bf16 1045249613, %v13_v1  ;;  %v46_v5 = vmul.bf16 1045249613, %v14_v2 }
   0x3   :  { %v16_v6 = vld [vmem:[%s331_s1 + $0xc] sm:$0xf]  ;;  %vm31_vm3 = vcmp.gt.bf16.partialorder %v15_v3, 0  ;;  %v47_v7 = vmul.bf16 1045249613, %v15_v3  ;;  %v243_v57 = vld [vmem:[%s332_s0] sm:$0xff]  }
   0x4   :  { %v61_v8 = vsel %vm29_vm1, %v13_v1, %v45_v4  ;;  %v62_v9 = vsel %vm30_vm2, %v14_v2, %v46_v5  ;;  %vm32_vm4 = vcmp.gt.bf16.partialorder %v16_v6, 0  ;;  %v48_v10 = vmul.bf16 1045249613, %v16_v6  ;;  %v17_v11 = vld [vmem:[%s331_s1 + $0x10] sm:$0xf] }
   0x5   :  { %v204_v12 = vcombine.low %v61_v8, %v62_v9  ;;  %v63_v13 = vsel %vm31_vm3, %v15_v3, %v47_v7  ;;  %v18_v14 = vld [vmem:[%s331_s1 + $0x14] sm:$0xf]  ;;  %vm33_vm5 = vcmp.gt.bf16.partialorder %v17_v11, 0  ;;  %v49_v15 = vmul.bf16 1045249613, %v17_v11 }
   0x6   :  { %v64_v16 = vsel %vm32_vm4, %v16_v6, %v48_v10  ;;  %vm34_vm6 = vcmp.gt.bf16.partialorder %v18_v14, 0  ;;  %v50_v17 = vmul.bf16 1045249613, %v18_v14  ;;  %v19_v18 = vld [vmem:[%s331_s1 + $0x18] sm:$0xf] }
   0x7   :  { %222 = vmatpush3.bf16.msra.mxu0 %v204_v12  ;;  %v205_v19 = vcombine.low %v63_v13, %v64_v16  ;;  %v20_v20 = vld [vmem:[%s331_s1 + $0x1c] sm:$0xf]  ;;  %v65_v21 = vsel %vm33_vm5, %v17_v11, %v49_v15  ;;  %v51_v23 = vmul.bf16 1045249613, %v19_v18  ;;  %v21_v25 = vld [vmem:[%s331_s1 + $0x20] sm:$0xf] }
   0x8   :  { %223 = vmatprep.subr.bf16.mxu0 %v248_v0  ;;  %v66_v22 = vsel %vm34_vm6, %v18_v14, %v50_v17  ;;  %v52_v24 = vmul.bf16 1045249613, %v20_v20  ;;  %vm35_vm7 = vcmp.gt.bf16.partialorder %v19_v18, 0  ;;  %vm36_vm8 = vcmp.gt.bf16.partialorder %v20_v20, 0  ;;  %v22_v26 = vld [vmem:[%s331_s1 + $0x24] sm:$0xf] }
   0x9   :  { %v206_v27 = vcombine.low %v65_v21, %v66_v22  ;;  %v53_v28 = vmul.bf16 1045249613, %v21_v25  ;;  %v67_v29 = vsel %vm35_vm7, %v19_v18, %v51_v23  ;;  %vm37_vm9 = vcmp.gt.bf16.partialorder %v21_v25, 0  ;;  %v23_v32 = vld [vmem:[%s331_s1 + $0x28] sm:$0xf] }
   0xa   :  { %v68_v30 = vsel %vm36_vm8, %v20_v20, %v52_v24  ;;  %v54_v31 = vmul.bf16 1045249613, %v22_v26  ;;  %vm38_vm10 = vcmp.gt.bf16.partialorder %v22_v26, 0  ;;  %v24_v33 = vld [vmem:[%s331_s1 + $0x2c] sm:$0xf]  ;;  %vm39_vm11 = vcmp.gt.bf16.partialorder %v23_v32, 0 }
   0xb   :  { %224 = vmatpush3.bf16.msra.mxu0 %v205_v19  ;;  %v207_v34 = vcombine.low %v67_v29, %v68_v30  ;;  %v69_v35 = vsel %vm37_vm9, %v21_v25, %v53_v28  ;;  %v55_v36 = vmul.bf16 1045249613, %v23_v32  ;;  %vm40_vm12 = vcmp.gt.bf16.partialorder %v24_v33, 0  ;;  %v25_v39 = vld [vmem:[%s331_s1 + $0x30] sm:$0xf] }
   0xc   :  { %225 = vmatprep.subr.bf16.mxu0 %v248_v0  ;;  %v70_v37 = vsel %vm38_vm10, %v22_v26, %v54_v31  ;;  %v56_v38 = vmul.bf16 1045249613, %v24_v33  ;;  %v26_v40 = vld [vmem:[%s331_s1 + $0x34] sm:$0xf]  ;;  %v57_v44 = vmul.bf16 1045249613, %v25_v39 }
   0xd   :  { %v208_v41 = vcombine.low %v69_v35, %v70_v37  ;;  %v71_v42 = vsel %vm39_vm11, %v23_v32, %v55_v36  ;;  %v58_v45 = vmul.bf16 1045249613, %v26_v40  ;;  %vm41_vm13 = vcmp.gt.bf16.partialorder %v25_v39, 0  ;;  %v27_v46 = vld [vmem:[%s331_s1 + $0x38] sm:$0xf] }
   0xe   :  { %v72_v43 = vsel %vm40_vm12, %v24_v33, %v56_v38  ;;  %vm42_vm14 = vcmp.gt.bf16.partialorder %v26_v40, 0  ;;  %v28_v47 = vld [vmem:[%s331_s1 + $0x3c] sm:$0xf]  ;;  %v73_v49 = vsel %vm41_vm13, %v25_v39, %v57_v44  ;;  %v59_v51 = vmul.bf16 1045249613, %v27_v46 }
   0xf   :  { %226 = vmatpush3.bf16.msra.mxu0 %v206_v27  ;;  %v209_v48 = vcombine.low %v71_v42, %v72_v43  ;;  %v74_v50 = vsel %vm42_vm14, %v26_v40, %v58_v45  ;;  %v60_v52 = vmul.bf16 1045249613, %v28_v47  ;;  %vm43_vm15 = vcmp.gt.bf16.partialorder %v27_v46, 0 }
  0x10   :  { %227 = vmatprep.subr.bf16.mxu0 %v248_v0  ;;  %vm44_vm0 = vcmp.gt.bf16.partialorder %v28_v47, 0  ;;  %v210_v53 = vcombine.low %v73_v49, %v74_v50  ;;  %v75_v54 = vsel %vm43_vm15, %v27_v46, %v59_v51 }
  0x11   :  { %v76_v55 = vsel %vm44_vm0, %v28_v47, %v60_v52 }
  0x12   :  { %v211_v56 = vcombine.low %v75_v54, %v76_v55 }
  0x13   :  { %228 = vmatpush3.bf16.msra.mxu0 %v207_v34 }
  0x14   :  { %229 = vmatprep.subr.bf16.mxu0 %v248_v0 }
  0x17   :  { %230 = vmatpush3.bf16.msra.mxu0 %v208_v41 }
  0x18   :  { %231 = vmatprep.subr.bf16.mxu0 %v248_v0 }
  0x1b   :  { %232 = vmatpush3.bf16.msra.mxu0 %v209_v48 }
  0x1c   :  { %233 = vmatprep.subr.bf16.mxu0 %v248_v0 }
  0x1f   :  { %234 = vmatpush3.bf16.msra.mxu0 %v210_v53 }
  0x20   :  { %235 = vmatprep.subr.bf16.mxu0 %v248_v0 }
  0x23   :  { %236 = vmatpush3.bf16.msra.mxu0 %v211_v56 }
  0x26   :  { %238 = vmatmul.mubr.bf16.vlgmr.msra.gmra.mrb[0].mxu0 %v243_v57 }
  0xf9   :  { %v167_v58 = vpop.f32.mrb[0].mxu0 }
  0xfa   :  { %174 = vadd.xlane.f32.xlu0 %v167_v58  ;;  %v239_v59 = vpop.f32.mrb[1].mxu0 }
  0xfb   :  { %v170_v60 = vpop.f32.mrb[2].mxu0 }
  0xfc   :  { %v240_v61 = vpop.f32.mrb[3].mxu0 }
  0xfe   :  { %176 = vadd.xlane.f32.xlu0 %v170_v60 }
 0x187   :  { %v175_v62 = vpop.xlane.xlu0 %174 }
 0x188   :  { %v179_v63 = vmul.f32 0.0078125, %v175_v62 }
 0x18a   :  { %v181_v1 = vsub.f32 %v167_v58, %v179_v63 }
 0x18b   :  { %v177_v2 = vpop.xlane.xlu0 %176 }
 0x18c   :  { %v180_v3 = vmul.f32 0.0078125, %v177_v2  ;;  %v183_v4 = vmul.f32 %v181_v1, %v181_v1 }
 0x18e   :  { %v182_v5 = vsub.f32 %v170_v60, %v180_v3  ;;  %185 = vadd.xlane.f32.xlu1 %v183_v4 }
 0x190   :  { %v184_v0 = vmul.f32 %v182_v5, %v182_v5 }
 0x192   :  { %187 = vadd.xlane.f32.xlu1 %v184_v0 }
 0x21b   :  { %v186_v6 = vpop.xlane.xlu1 %185 }
 0x21c   :  { %v189_v7 = vmul.f32 0.0078125, %v186_v6 }
 0x21e   :  { %v191_v8 = vadd.f32 1e-05, %v189_v7 }
 0x21f   :  { %v188_v9 = vpop.xlane.xlu1 %187 }
 0x220   :  { %244 = vrsqrt.f32 %v191_v8  ;;  %v190_v10 = vmul.f32 0.0078125, %v188_v9 }
 0x222   :  { %v192_v11 = vadd.f32 1e-05, %v190_v10 }
 0x224   :  { %246 = vrsqrt.f32 %v192_v11 }
 0x22a   :  { %v245_v12 = vpop.eup %244 }
 0x22b   :  { %v195_v13 = vmul.f32 %v245_v12, %v181_v1 }
 0x22d   :  { %197 = vst [vmem:[%s333_s2] sm:$0xff] %v195_v13 }
 0x22e   :  { %v247_v14 = vpop.eup %246 }
 0x22f   :  { %v196_v15 = vmul.f32 %v247_v14, %v182_v5 }
 0x231   :  { %198 = vst [vmem:[%s333_s2 + $0x8] sm:$0xff] %v196_v15 }

// kernel: _lambda_.17
= control target key start
LH: loop header
LB: loop body
LE: loop exit
PB: predicated region body
PF: predicated region fallthrough
CT: control target
= control target key end

     0   :  { %s597_s1 = inlined_call_operand.vmem [shape: bf16[256,32], index: 1, kind: input, shape index: {}]   ;;  %s598_s0 = inlined_call_operand.vmem [shape: bf16[32,256], index: 0, kind: input, shape index: {}]   ;;  %s599_s2 = inlined_call_operand.vmem [shape: f32[32,32], index: 2, kind: output, shape index: {}]  }
   0x1   :  { %v29_v0 = vld [vmem:[%s597_s1 + $0x40] sm:$0xf]  ;;  %v30_v1 = vld [vmem:[%s597_s1 + $0x44] sm:$0xf]  ;;  %v31_v10 = vld [vmem:[%s597_s1 + $0x48] sm:$0xf] }
   0x2   :  { %v13_v2 = vld [vmem:[%s597_s1] sm:$0xf]  ;;  %vm61_vm0 = vcmp.gt.bf16.partialorder %v29_v0, 0  ;;  %vm62_vm1 = vcmp.gt.bf16.partialorder %v30_v1, 0  ;;  %v93_v3 = vmul.bf16 1045249613, %v29_v0 }
   0x3   :  { %v94_v4 = vmul.bf16 1045249613, %v30_v1  ;;  %v14_v5 = vld [vmem:[%s597_s1 + $0x4] sm:$0xf]  ;;  %vm45_vm2 = vcmp.gt.bf16.partialorder %v13_v2, 0  ;;  %vm63_vm4 = vcmp.gt.bf16.partialorder %v31_v10, 0 }
   0x4   :  { %v77_v6 = vmul.bf16 1045249613, %v13_v2  ;;  %v125_v7 = vsel %vm61_vm0, %v29_v0, %v93_v3  ;;  %vm46_vm3 = vcmp.gt.bf16.partialorder %v14_v5, 0  ;;  %v78_v9 = vmul.bf16 1045249613, %v14_v5 }
   0x5   :  { %v126_v8 = vsel %vm62_vm1, %v30_v1, %v94_v4  ;;  %v32_v13 = vld [vmem:[%s597_s1 + $0x4c] sm:$0xf]  ;;  %v95_v14 = vmul.bf16 1045249613, %v31_v10  ;;  %v15_v17 = vld [vmem:[%s597_s1 + $0x8] sm:$0xf] }
   0x6   :  { %v384_v11 = vcombine.low %v125_v7, %v126_v8  ;;  %v109_v12 = vsel %vm45_vm2, %v13_v2, %v77_v6  ;;  %v110_v15 = vsel %vm46_vm3, %v14_v5, %v78_v9  ;;  %vm64_vm5 = vcmp.gt.bf16.partialorder %v32_v13, 0  ;;  %v16_v20 = vld [vmem:[%s597_s1 + $0xc] sm:$0xf]  ;;  %v33_v24 = vld [vmem:[%s597_s1 + $0x50] sm:$0xf] }
   0x7   :  { %v96_v16 = vmul.bf16 1045249613, %v32_v13  ;;  %v376_v18 = vcombine.low %v109_v12, %v110_v15  ;;  %v127_v19 = vsel %vm63_vm4, %v31_v10, %v95_v14  ;;  %vm47_vm6 = vcmp.gt.bf16.partialorder %v15_v17, 0  ;;  %v34_v27 = vld [vmem:[%s597_s1 + $0x54] sm:$0xf] }
   0x8   :  { %392 = vmatprep.subr.bf16.mxu0 %v384_v11  ;;  %420 = vmatprep.subr.bf16.mxu1 %v384_v11  ;;  %v79_v21 = vmul.bf16 1045249613, %v15_v17  ;;  %vm48_vm7 = vcmp.gt.bf16.partialorder %v16_v20, 0  ;;  %v80_v23 = vmul.bf16 1045249613, %v16_v20  ;;  %vm65_vm8 = vcmp.gt.bf16.partialorder %v33_v24, 0 }
   0x9   :  { %v128_v22 = vsel %vm64_vm5, %v32_v13, %v96_v16  ;;  %393 = vmatpush3.bf16.msra.mxu0 %v376_v18  ;;  %428 = vmatpush3.bf16.msra.mxu1 %v376_v18  ;;  %v97_v28 = vmul.bf16 1045249613, %v33_v24  ;;  %vm66_vm9 = vcmp.gt.bf16.partialorder %v34_v27, 0  ;;  %v98_v30 = vmul.bf16 1045249613, %v34_v27 }
   0xa   :  { %v385_v25 = vcombine.low %v127_v19, %v128_v22  ;;  %v111_v26 = vsel %vm47_vm6, %v15_v17, %v79_v21  ;;  %v112_v29 = vsel %vm48_vm7, %v16_v20, %v80_v23  ;;  %v17_v31 = vld [vmem:[%s597_s1 + $0x10] sm:$0xf]  ;;  %v18_v34 = vld [vmem:[%s597_s1 + $0x14] sm:$0xf]  ;;  %v35_v38 = vld [vmem:[%s597_s1 + $0x58] sm:$0xf] }
   0xb   :  { %v377_v32 = vcombine.low %v111_v26, %v112_v29  ;;  %v129_v33 = vsel %vm65_vm8, %v33_v24, %v97_v28  ;;  %vm49_vm10 = vcmp.gt.bf16.partialorder %v17_v31, 0  ;;  %v81_v35 = vmul.bf16 1045249613, %v17_v31  ;;  %v36_v41 = vld [vmem:[%s597_s1 + $0x5c] sm:$0xf] }
   0xc   :  { %394 = vmatprep.subr.bf16.mxu0 %v385_v25  ;;  %421 = vmatprep.subr.bf16.mxu1 %v385_v25  ;;  %v130_v36 = vsel %vm66_vm9, %v34_v27, %v98_v30  ;;  %vm50_vm11 = vcmp.gt.bf16.partialorder %v18_v34, 0  ;;  %v82_v37 = vmul.bf16 1045249613, %v18_v34  ;;  %vm67_vm12 = vcmp.gt.bf16.partialorder %v35_v38, 0  ;;  %v19_v45 = vld [vmem:[%s597_s1 + $0x18] sm:$0xf] }
   0xd   :  { %395 = vmatpush3.bf16.msra.mxu0 %v377_v32  ;;  %429 = vmatpush3.bf16.msra.mxu1 %v377_v32  ;;  %v386_v39 = vcombine.low %v129_v33, %v130_v36  ;;  %v113_v40 = vsel %vm49_vm10, %v17_v31, %v81_v35  ;;  %v99_v42 = vmul.bf16 1045249613, %v35_v38  ;;  %vm68_vm13 = vcmp.gt.bf16.partialorder %v36_v41, 0  ;;  %v20_v48 = vld [vmem:[%s597_s1 + $0x1c] sm:$0xf] }
   0xe   :  { %v114_v43 = vsel %vm50_vm11, %v18_v34, %v82_v37  ;;  %v100_v44 = vmul.bf16 1045249613, %v36_v41  ;;  %vm51_vm14 = vcmp.gt.bf16.partialorder %v19_v45, 0  ;;  %v83_v49 = vmul.bf16 1045249613, %v19_v45 }
   0xf   :  { %396 = vmatprep.subr.bf16.mxu0 %v386_v39  ;;  %422 = vmatprep.subr.bf16.mxu1 %v386_v39  ;;  %v378_v46 = vcombine.low %v113_v40, %v114_v43  ;;  %v131_v47 = vsel %vm67_vm12, %v35_v38, %v99_v42  ;;  %vm52_vm15 = vcmp.gt.bf16.partialorder %v20_v48, 0  ;;  %v84_v51 = vmul.bf16 1045249613, %v20_v48  ;;  %v37_v52 = vld [vmem:[%s597_s1 + $0x60] sm:$0xf] }
  0x10   :  { %v132_v50 = vsel %vm68_vm13, %v36_v41, %v100_v44  ;;  %v115_v54 = vsel %vm51_vm14, %v19_v45, %v83_v49  ;;  %v38_v55 = vld [vmem:[%s597_s1 + $0x64] sm:$0xf]  ;;  %vm69_vm0 = vcmp.gt.bf16.partialorder %v37_v52, 0  ;;  %v101_v56 = vmul.bf16 1045249613, %v37_v52 }
  0x11   :  { %397 = vmatpush3.bf16.msra.mxu0 %v378_v46  ;;  %430 = vmatpush3.bf16.msra.mxu1 %v378_v46  ;;  %v387_v53 = vcombine.low %v131_v47, %v132_v50  ;;  %v116_v57 = vsel %vm52_vm15, %v20_v48, %v84_v51  ;;  %vm70_vm1 = vcmp.gt.bf16.partialorder %v38_v55, 0  ;;  %v102_v58 = vmul.bf16 1045249613, %v38_v55  ;;  %v21_v59 = vld [vmem:[%s597_s1 + $0x20] sm:$0xf] }
  0x12   :  { %v379_v60 = vcombine.low %v115_v54, %v116_v57  ;;  %v133_v61 = vsel %vm69_vm0, %v37_v52, %v101_v56  ;;  %v22_v62 = vld [vmem:[%s597_s1 + $0x24] sm:$0xf]  ;;  %vm53_vm2 = vcmp.gt.bf16.partialorder %v21_v59, 0  ;;  %v85_v63 = vmul.bf16 1045249613, %v21_v59 }
  0x13   :  { %398 = vmatprep.subr.bf16.mxu0 %v387_v53  ;;  %423 = vmatprep.subr.bf16.mxu1 %v387_v53  ;;  %v134_v0 = vsel %vm70_vm1, %v38_v55, %v102_v58  ;;  %vm54_vm3 = vcmp.gt.bf16.partialorder %v22_v62, 0  ;;  %v86_v1 = vmul.bf16 1045249613, %v22_v62  ;;  %v39_v2 = vld [vmem:[%s597_s1 + $0x68] sm:$0xf]  ;;  %vm310_vm0 = vcmask 261120  }
  0x14   :  { %v388_v3 = vcombine.low %v133_v61, %v134_v0  ;;  %v117_v4 = vsel %vm53_vm2, %v21_v59, %v85_v63  ;;  %v40_v5 = vld [vmem:[%s597_s1 + $0x6c] sm:$0xf]  ;;  %vm71_vm4 = vcmp.gt.bf16.partialorder %v39_v2, 0  ;;  %v103_v6 = vmul.bf16 1045249613, %v39_v2 }
  0x15   :  { %399 = vmatpush3.bf16.msra.mxu0 %v379_v60  ;;  %431 = vmatpush3.bf16.msra.mxu1 %v379_v60  ;;  %v118_v7 = vsel %vm54_vm3, %v22_v62, %v86_v1  ;;  %vm72_vm5 = vcmp.gt.bf16.partialorder %v40_v5, 0  ;;  %v104_v8 = vmul.bf16 1045249613, %v40_v5  ;;  %v23_v9 = vld [vmem:[%s597_s1 + $0x28] sm:$0xf] }
  0x16   :  { %400 = vmatprep.subr.bf16.mxu0 %v388_v3  ;;  %424 = vmatprep.subr.bf16.mxu1 %v388_v3  ;;  %v380_v10 = vcombine.low %v117_v4, %v118_v7  ;;  %v135_v11 = vsel %vm71_vm4, %v39_v2, %v103_v6  ;;  %v24_v12 = vld [vmem:[%s597_s1 + $0x2c] sm:$0xf]  ;;  %vm55_vm6 = vcmp.gt.bf16.partialorder %v23_v9, 0  ;;  %v87_v13 = vmul.bf16 1045249613, %v23_v9 }
  0x17   :  { %v136_v14 = vsel %vm72_vm5, %v40_v5, %v104_v8  ;;  %vm56_vm7 = vcmp.gt.bf16.partialorder %v24_v12, 0  ;;  %v88_v15 = vmul.bf16 1045249613, %v24_v12  ;;  %v41_v16 = vld [vmem:[%s597_s1 + $0x70] sm:$0xf] }
  0x18   :  { %v389_v17 = vcombine.low %v135_v11, %v136_v14  ;;  %v119_v18 = vsel %vm55_vm6, %v23_v9, %v87_v13  ;;  %v42_v19 = vld [vmem:[%s597_s1 + $0x74] sm:$0xf]  ;;  %vm73_vm8 = vcmp.gt.bf16.partialorder %v41_v16, 0  ;;  %v105_v20 = vmul.bf16 1045249613, %v41_v16 }
  0x19   :  { %401 = vmatpush3.bf16.msra.mxu0 %v380_v10  ;;  %432 = vmatpush3.bf16.msra.mxu1 %v380_v10  ;;  %v120_v21 = vsel %vm56_vm7, %v24_v12, %v88_v15  ;;  %vm74_vm9 = vcmp.gt.bf16.partialorder %v42_v19, 0  ;;  %v106_v22 = vmul.bf16 1045249613, %v42_v19  ;;  %v25_v23 = vld [vmem:[%s597_s1 + $0x30] sm:$0xf] }
  0x1a   :  { %402 = vmatprep.subr.bf16.mxu0 %v389_v17  ;;  %425 = vmatprep.subr.bf16.mxu1 %v389_v17  ;;  %v381_v24 = vcombine.low %v119_v18, %v120_v21  ;;  %v137_v25 = vsel %vm73_vm8, %v41_v16, %v105_v20  ;;  %v26_v26 = vld [vmem:[%s597_s1 + $0x34] sm:$0xf]  ;;  %vm57_vm10 = vcmp.gt.bf16.partialorder %v25_v23, 0  ;;  %v89_v27 = vmul.bf16 1045249613, %v25_v23 }
  0x1b   :  { %v138_v28 = vsel %vm74_vm9, %v42_v19, %v106_v22  ;;  %vm58_vm11 = vcmp.gt.bf16.partialorder %v26_v26, 0  ;;  %v90_v29 = vmul.bf16 1045249613, %v26_v26  ;;  %v43_v30 = vld [vmem:[%s597_s1 + $0x78] sm:$0xf] }
  0x1c   :  { %v390_v31 = vcombine.low %v137_v25, %v138_v28  ;;  %v121_v32 = vsel %vm57_vm10, %v25_v23, %v89_v27  ;;  %v44_v33 = vld [vmem:[%s597_s1 + $0x7c] sm:$0xf]  ;;  %vm75_vm12 = vcmp.gt.bf16.partialorder %v43_v30, 0  ;;  %v107_v34 = vmul.bf16 1045249613, %v43_v30 }
  0x1d   :  { %403 = vmatpush3.bf16.msra.mxu0 %v381_v24  ;;  %433 = vmatpush3.bf16.msra.mxu1 %v381_v24  ;;  %v122_v35 = vsel %vm58_vm11, %v26_v26, %v90_v29  ;;  %vm76_vm13 = vcmp.gt.bf16.partialorder %v44_v33, 0  ;;  %v108_v36 = vmul.bf16 1045249613, %v44_v33  ;;  %v27_v37 = vld [vmem:[%s597_s1 + $0x38] sm:$0xf] }
  0x1e   :  { %404 = vmatprep.subr.bf16.mxu0 %v390_v31  ;;  %426 = vmatprep.subr.bf16.mxu1 %v390_v31  ;;  %v382_v38 = vcombine.low %v121_v32, %v122_v35  ;;  %v139_v39 = vsel %vm75_vm12, %v43_v30, %v107_v34  ;;  %v28_v40 = vld [vmem:[%s597_s1 + $0x3c] sm:$0xf]  ;;  %vm59_vm14 = vcmp.gt.bf16.partialorder %v27_v37, 0  ;;  %v91_v41 = vmul.bf16 1045249613, %v27_v37 }
  0x1f   :  { %v140_v42 = vsel %vm76_vm13, %v44_v33, %v108_v36  ;;  %vm60_vm15 = vcmp.gt.bf16.partialorder %v28_v40, 0  ;;  %v92_v43 = vmul.bf16 1045249613, %v28_v40  ;;  %v438_v46 = vld [vmem:[%s598_s0 + $0x4] ss:$8 sps:$4 sm:$0xff]  }
  0x20   :  { %v391_v44 = vcombine.low %v139_v39, %v140_v42  ;;  %v123_v45 = vsel %vm59_vm14, %v27_v37, %v91_v41  ;;  %v441_v47 = vld [vmem:[%s598_s0 + $0x14] ss:$8 sps:$4 sm:$0xff]   ;;  %v436_v50 = vld [vmem:[%s598_s0] ss:$8 sps:$4 sm:$0xff]   ;;  %293 = vmatprep.mubr.bf16.mxu0 %v438_v46  ;;  %v439_v51 = vld [vmem:[%s598_s0 + $0x10] ss:$8 sps:$4 sm:$0xff]  }
  0x21   :  { %405 = vmatpush3.bf16.msra.mxu0 %v382_v38  ;;  %434 = vmatpush3.bf16.msra.mxu1 %v382_v38  ;;  %v124_v48 = vsel %vm60_vm15, %v28_v40, %v92_v43 }
  0x22   :  { %406 = vmatprep.subr.bf16.mxu0 %v391_v44  ;;  %427 = vmatprep.subr.bf16.mxu1 %v391_v44  ;;  %v383_v49 = vcombine.low %v123_v45, %v124_v48 }
  0x23   :  { %301 = vmatprep.mubr.bf16.mxu1 %v441_v47 }
  0x25   :  { %407 = vmatpush3.bf16.msra.mxu0 %v383_v49  ;;  %435 = vmatpush3.bf16.msra.mxu1 %v383_v49 }
  0x28   :  { %294 = vmatmul.mubr.bf16.vlgmr.msra.gmra.mrb[0].mxu0 %v436_v50  ;;  %302 = vmatmul.mubr.bf16.vlgmr.msra.gmra.mrb[0].mxu1 %v439_v51 }
  0xfb   :  { %v408_v52 = vpop.f32.mrb[0].mxu0  ;;  %v414_v53 = vpop.f32.mrb[0].mxu1 }
  0xfc   :  { %v409_v54 = vpop.f32.mrb[1].mxu0  ;;  %v415_v55 = vpop.f32.mrb[1].mxu1 }
  0xfd   :  { %v410_v56 = vadd.f32 %v409_v54, %v408_v52  ;;  %v416_v57 = vadd.f32 %v415_v55, %v414_v53  ;;  %v411_v58 = vpop.f32.mrb[2].mxu0  ;;  %v417_v59 = vpop.f32.mrb[2].mxu1 }
  0xfe   :  { %v412_v60 = vpop.f32.mrb[3].mxu0  ;;  %v418_v61 = vpop.f32.mrb[3].mxu1 }
  0xff   :  { %v413_v62 = vadd.f32 %v412_v60, %v411_v58  ;;  %v419_v63 = vadd.f32 %v418_v61, %v417_v59  ;;  %v317_v0 = vsel %vm310_vm0, %v416_v57, 0.0  ;;  %v311_v1 = vsel %vm310_vm0, %v410_v56, 0.0 }
 0x100   :  { %318 = vadd.xlane.f32.xlu1 %v317_v0  ;;  %312 = vadd.xlane.f32.xlu0 %v311_v1 }
 0x101   :  { %v320_v2 = vsel %vm310_vm0, %v419_v63, 0.0  ;;  %v314_v3 = vsel %vm310_vm0, %v413_v62, 0.0 }
 0x104   :  { %321 = vadd.xlane.f32.xlu1 %v320_v2  ;;  %315 = vadd.xlane.f32.xlu0 %v314_v3 }
 0x18d   :  { %v319_v4 = vpop.xlane.xlu1 %318  ;;  %v313_v5 = vpop.xlane.xlu0 %312 }
 0x18e   :  { %v326_v6 = vmul.f32 0.03125, %v319_v4  ;;  %v324_v7 = vmul.f32 0.03125, %v313_v5 }
 0x190   :  { %v330_v8 = vsub.f32 %v416_v57, %v326_v6  ;;  %v328_v9 = vsub.f32 %v410_v56, %v324_v7 }
 0x191   :  { %v322_v10 = vpop.xlane.xlu1 %321  ;;  %v316_v11 = vpop.xlane.xlu0 %315 }
 0x192   :  { %v327_v12 = vmul.f32 0.03125, %v322_v10  ;;  %v325_v13 = vmul.f32 0.03125, %v316_v11  ;;  %v332_v14 = vmul.f32 %v328_v9, %v328_v9  ;;  %v334_v18 = vmul.f32 %v330_v8, %v330_v8 }
 0x194   :  { %v331_v15 = vsub.f32 %v419_v63, %v327_v12  ;;  %v329_v16 = vsub.f32 %v413_v62, %v325_v13  ;;  %v336_v17 = vsel %vm310_vm0, %v332_v14, 0.0  ;;  %v342_v20 = vsel %vm310_vm0, %v334_v18, 0.0 }
 0x195   :  { %337 = vadd.xlane.f32.xlu0 %v336_v17 }
 0x196   :  { %v333_v19 = vmul.f32 %v329_v16, %v329_v16  ;;  %v335_v22 = vmul.f32 %v331_v15, %v331_v15 }
 0x198   :  { %v339_v21 = vsel %vm310_vm0, %v333_v19, 0.0  ;;  %v345_v23 = vsel %vm310_vm0, %v335_v22, 0.0 }
 0x199   :  { %343 = vadd.xlane.f32.xlu0 %v342_v20  ;;  %340 = vadd.xlane.f32.xlu1 %v339_v21 }
 0x19d   :  { %346 = vadd.xlane.f32.xlu1 %v345_v23 }
 0x222   :  { %v338_v24 = vpop.xlane.xlu0 %337 }
 0x223   :  { %v348_v25 = vmul.f32 0.03125, %v338_v24 }
 0x225   :  { %v352_v26 = vadd.f32 1e-05, %v348_v25 }
 0x226   :  { %v341_v27 = vpop.xlane.xlu1 %340  ;;  %v344_v28 = vpop.xlane.xlu0 %343 }
 0x227   :  { %442 = vrsqrt.f32 %v352_v26  ;;  %v349_v29 = vmul.f32 0.03125, %v341_v27  ;;  %v350_v30 = vmul.f32 0.03125, %v344_v28 }
 0x229   :  { %v353_v31 = vadd.f32 1e-05, %v349_v29  ;;  %v354_v32 = vadd.f32 1e-05, %v350_v30 }
 0x22a   :  { %v347_v33 = vpop.xlane.xlu1 %346 }
 0x22b   :  { %444 = vrsqrt.f32 %v353_v31  ;;  %v351_v34 = vmul.f32 0.03125, %v347_v33 }
 0x22c   :  { %446 = vrsqrt.f32 %v354_v32 }
 0x22d   :  { %v355_v35 = vadd.f32 1e-05, %v351_v34 }
 0x22f   :  { %448 = vrsqrt.f32 %v355_v35 }
 0x231   :  { %v443_v36 = vpop.eup %442 }
 0x232   :  { %v360_v37 = vmul.f32 %v443_v36, %v328_v9 }
 0x234   :  { %364 = vst.msk [vmem:[%s599_s2] sm:$0xff] %vm310_vm0, %v360_v37 }
 0x235   :  { %v445_v38 = vpop.eup %444 }
 0x236   :  { %v447_v39 = vpop.eup %446  ;;  %v361_v40 = vmul.f32 %v445_v38, %v329_v16 }
 0x237   :  { %v362_v41 = vmul.f32 %v447_v39, %v330_v8 }
 0x238   :  { %365 = vst.msk [vmem:[%s599_s2 + $0x8] sm:$0xff] %vm310_vm0, %v361_v40 }
 0x239   :  { %v449_v42 = vpop.eup %448  ;;  %366 = vst.msk [vmem:[%s599_s2 + $0x10] sm:$0xff] %vm310_vm0, %v362_v41 }
 0x23a   :  { %v363_v43 = vmul.f32 %v449_v42, %v331_v15 }
 0x23c   :  { %367 = vst.msk [vmem:[%s599_s2 + $0x18] sm:$0xff] %vm310_vm0, %v363_v43 }

// kernel: _lambda_.18
= control target key start
LH: loop header
LB: loop body
LE: loop exit
PB: predicated region body
PF: predicated region fallthrough
CT: control target
= control target key end

     0   :  { %s1310_s1 = inlined_call_operand.vmem [shape: bf16[512,8], index: 1, kind: input, shape index: {}]   ;;  %s1311_s0 = inlined_call_operand.vmem [shape: bf16[64,512], index: 0, kind: input, shape index: {}]   ;;  %s1312_s2 = inlined_call_operand.vmem [shape: f32[64,8], index: 2, kind: output, shape index: {}]  }
   0x1   :  { %v29_v0 = vld [vmem:[%s1310_s1 + $0x40] sm:$0xf]  ;;  %v30_v1 = vld [vmem:[%s1310_s1 + $0x44] sm:$0xf]  ;;  %v31_v24 = vld [vmem:[%s1310_s1 + $0x48] sm:$0xf] }
   0x2   :  { %v61_v2 = vld [vmem:[%s1310_s1 + $0xc0] sm:$0xf]  ;;  %vm93_vm0 = vcmp.gt.bf16.partialorder %v29_v0, 0  ;;  %vm94_vm1 = vcmp.gt.bf16.partialorder %v30_v1, 0  ;;  %v157_v3 = vmul.bf16 1045249613, %v29_v0 }
   0x3   :  { %v158_v4 = vmul.bf16 1045249613, %v30_v1  ;;  %v62_v5 = vld [vmem:[%s1310_s1 + $0xc4] sm:$0xf]  ;;  %vm125_vm2 = vcmp.gt.bf16.partialorder %v61_v2, 0  ;;  %vm95_vm8 = vcmp.gt.bf16.partialorder %v31_v24, 0 }
   0x4   :  { %v189_v6 = vmul.bf16 1045249613, %v61_v2  ;;  %v221_v7 = vsel %vm93_vm0, %v29_v0, %v157_v3  ;;  %vm126_vm3 = vcmp.gt.bf16.partialorder %v62_v5, 0  ;;  %v190_v9 = vmul.bf16 1045249613, %v62_v5 }
   0x5   :  { %v222_v8 = vsel %vm94_vm1, %v30_v1, %v158_v4  ;;  %v13_v10 = vld [vmem:[%s1310_s1] sm:$0xf]  ;;  %v14_v13 = vld [vmem:[%s1310_s1 + $0x4] sm:$0xf]  ;;  %v32_v27 = vld [vmem:[%s1310_s1 + $0x4c] sm:$0xf] }
   0x6   :  { %v829_v11 = vcombine.low %v221_v7, %v222_v8  ;;  %v253_v12 = vsel %vm125_vm2, %v61_v2, %v189_v6  ;;  %vm77_vm4 = vcmp.gt.bf16.partialorder %v13_v10, 0  ;;  %v141_v14 = vmul.bf16 1045249613, %v13_v10  ;;  %v45_v17 = vld [vmem:[%s1310_s1 + $0x80] sm:$0xf] }
   0x7   :  { %v254_v15 = vsel %vm126_vm3, %v62_v5, %v190_v9  ;;  %vm78_vm5 = vcmp.gt.bf16.partialorder %v14_v13, 0  ;;  %v142_v16 = vmul.bf16 1045249613, %v14_v13  ;;  %v46_v20 = vld [vmem:[%s1310_s1 + $0x84] sm:$0xf]  ;;  %vm109_vm6 = vcmp.gt.bf16.partialorder %v45_v17, 0 }
   0x8   :  { %853 = vmatprep.subr.bf16.mxu0 %v829_v11  ;;  %v845_v18 = vcombine.low %v253_v12, %v254_v15  ;;  %v205_v19 = vsel %vm77_vm4, %v13_v10, %v141_v14  ;;  %v173_v21 = vmul.bf16 1045249613, %v45_v17  ;;  %vm110_vm7 = vcmp.gt.bf16.partialorder %v46_v20, 0  ;;  %v63_v31 = vld [vmem:[%s1310_s1 + $0xc8] sm:$0xf] }
   0x9   :  { %v206_v22 = vsel %vm78_vm5, %v14_v13, %v142_v16  ;;  %v174_v23 = vmul.bf16 1045249613, %v46_v20  ;;  %v159_v28 = vmul.bf16 1045249613, %v31_v24  ;;  %vm96_vm9 = vcmp.gt.bf16.partialorder %v32_v27, 0 }
   0xa   :  { %893 = vmatprep.subr.bf16.mxu1 %v845_v18  ;;  %v821_v25 = vcombine.low %v205_v19, %v206_v22  ;;  %v237_v26 = vsel %vm109_vm6, %v45_v17, %v173_v21  ;;  %v160_v30 = vmul.bf16 1045249613, %v32_v27  ;;  %v64_v34 = vld [vmem:[%s1310_s1 + $0xcc] sm:$0xf]  ;;  %vm127_vm10 = vcmp.gt.bf16.partialorder %v63_v31, 0 }
   0xb   :  { %v238_v29 = vsel %vm110_vm7, %v46_v20, %v174_v23  ;;  %v223_v33 = vsel %vm95_vm8, %v31_v24, %v159_v28  ;;  %v191_v35 = vmul.bf16 1045249613, %v63_v31  ;;  %vm128_vm11 = vcmp.gt.bf16.partialorder %v64_v34, 0  ;;  %v15_v38 = vld [vmem:[%s1310_s1 + $0x8] sm:$0xf] }
   0xc   :  { %854 = vmatpush3.bf16.msra.mxu0 %v821_v25  ;;  %v837_v32 = vcombine.low %v237_v26, %v238_v29  ;;  %v224_v36 = vsel %vm96_vm9, %v32_v27, %v160_v30  ;;  %v192_v37 = vmul.bf16 1045249613, %v64_v34  ;;  %v16_v41 = vld [vmem:[%s1310_s1 + $0xc] sm:$0xf]  ;;  %vm79_vm12 = vcmp.gt.bf16.partialorder %v15_v38, 0 }
   0xd   :  { %v830_v39 = vcombine.low %v223_v33, %v224_v36  ;;  %v255_v40 = vsel %vm127_vm10, %v63_v31, %v191_v35  ;;  %v143_v42 = vmul.bf16 1045249613, %v15_v38  ;;  %vm80_vm13 = vcmp.gt.bf16.partialorder %v16_v41, 0  ;;  %v47_v45 = vld [vmem:[%s1310_s1 + $0x88] sm:$0xf] }
   0xe   :  { %894 = vmatpush3.bf16.msra.mxu1 %v837_v32  ;;  %v256_v43 = vsel %vm128_vm11, %v64_v34, %v192_v37  ;;  %v144_v44 = vmul.bf16 1045249613, %v16_v41  ;;  %v48_v48 = vld [vmem:[%s1310_s1 + $0x8c] sm:$0xf]  ;;  %vm111_vm14 = vcmp.gt.bf16.partialorder %v47_v45, 0 }
   0xf   :  { %855 = vmatprep.subr.bf16.mxu0 %v830_v39  ;;  %v846_v46 = vcombine.low %v255_v40, %v256_v43  ;;  %v207_v47 = vsel %vm79_vm12, %v15_v38, %v143_v42  ;;  %v175_v49 = vmul.bf16 1045249613, %v47_v45  ;;  %vm112_vm15 = vcmp.gt.bf16.partialorder %v48_v48, 0  ;;  %v33_v52 = vld [vmem:[%s1310_s1 + $0x50] sm:$0xf] }
  0x10   :  { %v208_v50 = vsel %vm80_vm13, %v16_v41, %v144_v44  ;;  %v176_v51 = vmul.bf16 1045249613, %v48_v48  ;;  %v34_v55 = vld [vmem:[%s1310_s1 + $0x54] sm:$0xf]  ;;  %vm97_vm0 = vcmp.gt.bf16.partialorder %v33_v52, 0 }
  0x11   :  { %895 = vmatprep.subr.bf16.mxu1 %v846_v46  ;;  %v822_v53 = vcombine.low %v207_v47, %v208_v50  ;;  %v239_v54 = vsel %vm111_vm14, %v47_v45, %v175_v49  ;;  %v161_v56 = vmul.bf16 1045249613, %v33_v52  ;;  %vm98_vm1 = vcmp.gt.bf16.partialorder %v34_v55, 0  ;;  %v65_v59 = vld [vmem:[%s1310_s1 + $0xd0] sm:$0xf] }
  0x12   :  { %v240_v57 = vsel %vm112_vm15, %v48_v48, %v176_v51  ;;  %v162_v58 = vmul.bf16 1045249613, %v34_v55  ;;  %v66_v62 = vld [vmem:[%s1310_s1 + $0xd4] sm:$0xf]  ;;  %vm129_vm2 = vcmp.gt.bf16.partialorder %v65_v59, 0 }
  0x13   :  { %856 = vmatpush3.bf16.msra.mxu0 %v822_v53  ;;  %v838_v60 = vcombine.low %v239_v54, %v240_v57  ;;  %v225_v61 = vsel %vm97_vm0, %v33_v52, %v161_v56  ;;  %v193_v63 = vmul.bf16 1045249613, %v65_v59  ;;  %vm130_vm3 = vcmp.gt.bf16.partialorder %v66_v62, 0  ;;  %v17_v2 = vld [vmem:[%s1310_s1 + $0x10] sm:$0xf] }
  0x14   :  { %v226_v0 = vsel %vm98_vm1, %v34_v55, %v162_v58  ;;  %v194_v1 = vmul.bf16 1045249613, %v66_v62  ;;  %v18_v5 = vld [vmem:[%s1310_s1 + $0x14] sm:$0xf]  ;;  %vm81_vm4 = vcmp.gt.bf16.partialorder %v17_v2, 0 }
  0x15   :  { %896 = vmatpush3.bf16.msra.mxu1 %v838_v60  ;;  %v831_v3 = vcombine.low %v225_v61, %v226_v0  ;;  %v257_v4 = vsel %vm129_vm2, %v65_v59, %v193_v63  ;;  %v145_v6 = vmul.bf16 1045249613, %v17_v2  ;;  %vm82_vm5 = vcmp.gt.bf16.partialorder %v18_v5, 0  ;;  %v49_v9 = vld [vmem:[%s1310_s1 + $0x90] sm:$0xf] }
  0x16   :  { %v258_v7 = vsel %vm130_vm3, %v66_v62, %v194_v1  ;;  %v146_v8 = vmul.bf16 1045249613, %v18_v5  ;;  %v50_v12 = vld [vmem:[%s1310_s1 + $0x94] sm:$0xf]  ;;  %vm113_vm6 = vcmp.gt.bf16.partialorder %v49_v9, 0 }
  0x17   :  { %857 = vmatprep.subr.bf16.mxu0 %v831_v3  ;;  %v847_v10 = vcombine.low %v257_v4, %v258_v7  ;;  %v209_v11 = vsel %vm81_vm4, %v17_v2, %v145_v6  ;;  %v177_v13 = vmul.bf16 1045249613, %v49_v9  ;;  %vm114_vm7 = vcmp.gt.bf16.partialorder %v50_v12, 0  ;;  %v35_v16 = vld [vmem:[%s1310_s1 + $0x58] sm:$0xf] }
  0x18   :  { %v210_v14 = vsel %vm82_vm5, %v18_v5, %v146_v8  ;;  %v178_v15 = vmul.bf16 1045249613, %v50_v12  ;;  %v36_v19 = vld [vmem:[%s1310_s1 + $0x5c] sm:$0xf]  ;;  %vm99_vm8 = vcmp.gt.bf16.partialorder %v35_v16, 0 }
  0x19   :  { %897 = vmatprep.subr.bf16.mxu1 %v847_v10  ;;  %v823_v17 = vcombine.low %v209_v11, %v210_v14  ;;  %v241_v18 = vsel %vm113_vm6, %v49_v9, %v177_v13  ;;  %v163_v20 = vmul.bf16 1045249613, %v35_v16  ;;  %vm100_vm9 = vcmp.gt.bf16.partialorder %v36_v19, 0  ;;  %v67_v23 = vld [vmem:[%s1310_s1 + $0xd8] sm:$0xf] }
  0x1a   :  { %v242_v21 = vsel %vm114_vm7, %v50_v12, %v178_v15  ;;  %v164_v22 = vmul.bf16 1045249613, %v36_v19  ;;  %v68_v26 = vld [vmem:[%s1310_s1 + $0xdc] sm:$0xf]  ;;  %vm131_vm10 = vcmp.gt.bf16.partialorder %v67_v23, 0 }
  0x1b   :  { %858 = vmatpush3.bf16.msra.mxu0 %v823_v17  ;;  %v839_v24 = vcombine.low %v241_v18, %v242_v21  ;;  %v227_v25 = vsel %vm99_vm8, %v35_v16, %v163_v20  ;;  %v195_v27 = vmul.bf16 1045249613, %v67_v23  ;;  %vm132_vm11 = vcmp.gt.bf16.partialorder %v68_v26, 0  ;;  %v19_v30 = vld [vmem:[%s1310_s1 + $0x18] sm:$0xf] }
  0x1c   :  { %v228_v28 = vsel %vm100_vm9, %v36_v19, %v164_v22  ;;  %v196_v29 = vmul.bf16 1045249613, %v68_v26  ;;  %v20_v33 = vld [vmem:[%s1310_s1 + $0x1c] sm:$0xf]  ;;  %vm83_vm12 = vcmp.gt.bf16.partialorder %v19_v30, 0 }
  0x1d   :  { %898 = vmatpush3.bf16.msra.mxu1 %v839_v24  ;;  %v832_v31 = vcombine.low %v227_v25, %v228_v28  ;;  %v259_v32 = vsel %vm131_vm10, %v67_v23, %v195_v27  ;;  %v147_v34 = vmul.bf16 1045249613, %v19_v30  ;;  %vm84_vm13 = vcmp.gt.bf16.partialorder %v20_v33, 0  ;;  %v51_v37 = vld [vmem:[%s1310_s1 + $0x98] sm:$0xf] }
  0x1e   :  { %v260_v35 = vsel %vm132_vm11, %v68_v26, %v196_v29  ;;  %v148_v36 = vmul.bf16 1045249613, %v20_v33  ;;  %v52_v40 = vld [vmem:[%s1310_s1 + $0x9c] sm:$0xf]  ;;  %vm115_vm14 = vcmp.gt.bf16.partialorder %v51_v37, 0 }
  0x1f   :  { %859 = vmatprep.subr.bf16.mxu0 %v832_v31  ;;  %v848_v38 = vcombine.low %v259_v32, %v260_v35  ;;  %v211_v39 = vsel %vm83_vm12, %v19_v30, %v147_v34  ;;  %v179_v41 = vmul.bf16 1045249613, %v51_v37  ;;  %vm116_vm15 = vcmp.gt.bf16.partialorder %v52_v40, 0  ;;  %v37_v44 = vld [vmem:[%s1310_s1 + $0x60] sm:$0xf] }
  0x20   :  { %v212_v42 = vsel %vm84_vm13, %v20_v33, %v148_v36  ;;  %v180_v43 = vmul.bf16 1045249613, %v52_v40  ;;  %v38_v47 = vld [vmem:[%s1310_s1 + $0x64] sm:$0xf]  ;;  %vm101_vm0 = vcmp.gt.bf16.partialorder %v37_v44, 0 }
  0x21   :  { %899 = vmatprep.subr.bf16.mxu1 %v848_v38  ;;  %v824_v45 = vcombine.low %v211_v39, %v212_v42  ;;  %v243_v46 = vsel %vm115_vm14, %v51_v37, %v179_v41  ;;  %v165_v48 = vmul.bf16 1045249613, %v37_v44  ;;  %vm102_vm1 = vcmp.gt.bf16.partialorder %v38_v47, 0  ;;  %v69_v51 = vld [vmem:[%s1310_s1 + $0xe0] sm:$0xf] }
  0x22   :  { %v244_v49 = vsel %vm116_vm15, %v52_v40, %v180_v43  ;;  %v166_v50 = vmul.bf16 1045249613, %v38_v47  ;;  %v70_v54 = vld [vmem:[%s1310_s1 + $0xe4] sm:$0xf]  ;;  %vm133_vm2 = vcmp.gt.bf16.partialorder %v69_v51, 0 }
  0x23   :  { %860 = vmatpush3.bf16.msra.mxu0 %v824_v45  ;;  %v840_v52 = vcombine.low %v243_v46, %v244_v49  ;;  %v229_v53 = vsel %vm101_vm0, %v37_v44, %v165_v48  ;;  %v197_v55 = vmul.bf16 1045249613, %v69_v51  ;;  %vm134_vm3 = vcmp.gt.bf16.partialorder %v70_v54, 0  ;;  %v21_v58 = vld [vmem:[%s1310_s1 + $0x20] sm:$0xf] }
  0x24   :  { %v230_v56 = vsel %vm102_vm1, %v38_v47, %v166_v50  ;;  %v198_v57 = vmul.bf16 1045249613, %v70_v54  ;;  %v22_v61 = vld [vmem:[%s1310_s1 + $0x24] sm:$0xf]  ;;  %vm85_vm4 = vcmp.gt.bf16.partialorder %v21_v58, 0 }
  0x25   :  { %900 = vmatpush3.bf16.msra.mxu1 %v840_v52  ;;  %v833_v59 = vcombine.low %v229_v53, %v230_v56  ;;  %v261_v60 = vsel %vm133_vm2, %v69_v51, %v197_v55  ;;  %v149_v62 = vmul.bf16 1045249613, %v21_v58  ;;  %vm86_vm5 = vcmp.gt.bf16.partialorder %v22_v61, 0  ;;  %v53_v1 = vld [vmem:[%s1310_s1 + $0xa0] sm:$0xf] }
  0x26   :  { %v262_v63 = vsel %vm134_vm3, %v70_v54, %v198_v57  ;;  %v150_v0 = vmul.bf16 1045249613, %v22_v61  ;;  %v54_v4 = vld [vmem:[%s1310_s1 + $0xa4] sm:$0xf]  ;;  %vm117_vm6 = vcmp.gt.bf16.partialorder %v53_v1, 0 }
  0x27   :  { %861 = vmatprep.subr.bf16.mxu0 %v833_v59  ;;  %v849_v2 = vcombine.low %v261_v60, %v262_v63  ;;  %v213_v3 = vsel %vm85_vm4, %v21_v58, %v149_v62  ;;  %v181_v5 = vmul.bf16 1045249613, %v53_v1  ;;  %vm118_vm7 = vcmp.gt.bf16.partialorder %v54_v4, 0  ;;  %v39_v8 = vld [vmem:[%s1310_s1 + $0x68] sm:$0xf] }
  0x28   :  { %v214_v6 = vsel %vm86_vm5, %v22_v61, %v150_v0  ;;  %v182_v7 = vmul.bf16 1045249613, %v54_v4  ;;  %v40_v11 = vld [vmem:[%s1310_s1 + $0x6c] sm:$0xf]  ;;  %vm103_vm8 = vcmp.gt.bf16.partialorder %v39_v8, 0 }
  0x29   :  { %901 = vmatprep.subr.bf16.mxu1 %v849_v2  ;;  %v825_v9 = vcombine.low %v213_v3, %v214_v6  ;;  %v245_v10 = vsel %vm117_vm6, %v53_v1, %v181_v5  ;;  %v167_v12 = vmul.bf16 1045249613, %v39_v8  ;;  %vm104_vm9 = vcmp.gt.bf16.partialorder %v40_v11, 0  ;;  %v71_v15 = vld [vmem:[%s1310_s1 + $0xe8] sm:$0xf] }
  0x2a   :  { %v246_v13 = vsel %vm118_vm7, %v54_v4, %v182_v7  ;;  %v168_v14 = vmul.bf16 1045249613, %v40_v11  ;;  %v72_v18 = vld [vmem:[%s1310_s1 + $0xec] sm:$0xf]  ;;  %vm135_vm10 = vcmp.gt.bf16.partialorder %v71_v15, 0 }
  0x2b   :  { %862 = vmatpush3.bf16.msra.mxu0 %v825_v9  ;;  %v841_v16 = vcombine.low %v245_v10, %v246_v13  ;;  %v231_v17 = vsel %vm103_vm8, %v39_v8, %v167_v12  ;;  %v199_v19 = vmul.bf16 1045249613, %v71_v15  ;;  %vm136_vm11 = vcmp.gt.bf16.partialorder %v72_v18, 0  ;;  %v23_v22 = vld [vmem:[%s1310_s1 + $0x28] sm:$0xf] }
  0x2c   :  { %v232_v20 = vsel %vm104_vm9, %v40_v11, %v168_v14  ;;  %v200_v21 = vmul.bf16 1045249613, %v72_v18  ;;  %v24_v25 = vld [vmem:[%s1310_s1 + $0x2c] sm:$0xf]  ;;  %vm87_vm12 = vcmp.gt.bf16.partialorder %v23_v22, 0 }
  0x2d   :  { %902 = vmatpush3.bf16.msra.mxu1 %v841_v16  ;;  %v834_v23 = vcombine.low %v231_v17, %v232_v20  ;;  %v263_v24 = vsel %vm135_vm10, %v71_v15, %v199_v19  ;;  %v151_v26 = vmul.bf16 1045249613, %v23_v22  ;;  %vm88_vm13 = vcmp.gt.bf16.partialorder %v24_v25, 0  ;;  %v55_v29 = vld [vmem:[%s1310_s1 + $0xa8] sm:$0xf] }
  0x2e   :  { %v264_v27 = vsel %vm136_vm11, %v72_v18, %v200_v21  ;;  %v152_v28 = vmul.bf16 1045249613, %v24_v25  ;;  %v56_v32 = vld [vmem:[%s1310_s1 + $0xac] sm:$0xf]  ;;  %vm119_vm14 = vcmp.gt.bf16.partialorder %v55_v29, 0 }
  0x2f   :  { %863 = vmatprep.subr.bf16.mxu0 %v834_v23  ;;  %v850_v30 = vcombine.low %v263_v24, %v264_v27  ;;  %v215_v31 = vsel %vm87_vm12, %v23_v22, %v151_v26  ;;  %v183_v33 = vmul.bf16 1045249613, %v55_v29  ;;  %vm120_vm15 = vcmp.gt.bf16.partialorder %v56_v32, 0  ;;  %v41_v36 = vld [vmem:[%s1310_s1 + $0x70] sm:$0xf] }
  0x30   :  { %v216_v34 = vsel %vm88_vm13, %v24_v25, %v152_v28  ;;  %v184_v35 = vmul.bf16 1045249613, %v56_v32  ;;  %v42_v39 = vld [vmem:[%s1310_s1 + $0x74] sm:$0xf]  ;;  %vm105_vm0 = vcmp.gt.bf16.partialorder %v41_v36, 0 }
  0x31   :  { %903 = vmatprep.subr.bf16.mxu1 %v850_v30  ;;  %v826_v37 = vcombine.low %v215_v31, %v216_v34  ;;  %v247_v38 = vsel %vm119_vm14, %v55_v29, %v183_v33  ;;  %v169_v40 = vmul.bf16 1045249613, %v41_v36  ;;  %vm106_vm1 = vcmp.gt.bf16.partialorder %v42_v39, 0  ;;  %v73_v43 = vld [vmem:[%s1310_s1 + $0xf0] sm:$0xf] }
  0x32   :  { %v248_v41 = vsel %vm120_vm15, %v56_v32, %v184_v35  ;;  %v170_v42 = vmul.bf16 1045249613, %v42_v39  ;;  %v74_v46 = vld [vmem:[%s1310_s1 + $0xf4] sm:$0xf]  ;;  %vm137_vm2 = vcmp.gt.bf16.partialorder %v73_v43, 0 }
  0x33   :  { %864 = vmatpush3.bf16.msra.mxu0 %v826_v37  ;;  %v842_v44 = vcombine.low %v247_v38, %v248_v41  ;;  %v233_v45 = vsel %vm105_vm0, %v41_v36, %v169_v40  ;;  %v201_v47 = vmul.bf16 1045249613, %v73_v43  ;;  %vm138_vm3 = vcmp.gt.bf16.partialorder %v74_v46, 0  ;;  %v25_v50 = vld [vmem:[%s1310_s1 + $0x30] sm:$0xf] }
  0x34   :  { %v234_v48 = vsel %vm106_vm1, %v42_v39, %v170_v42  ;;  %v202_v49 = vmul.bf16 1045249613, %v74_v46  ;;  %v26_v53 = vld [vmem:[%s1310_s1 + $0x34] sm:$0xf]  ;;  %vm89_vm4 = vcmp.gt.bf16.partialorder %v25_v50, 0  ;;  %vm687_vm0 = vcmask 64512  }
  0x35   :  { %904 = vmatpush3.bf16.msra.mxu1 %v842_v44  ;;  %v835_v51 = vcombine.low %v233_v45, %v234_v48  ;;  %v265_v52 = vsel %vm137_vm2, %v73_v43, %v201_v47  ;;  %v153_v54 = vmul.bf16 1045249613, %v25_v50  ;;  %vm90_vm5 = vcmp.gt.bf16.partialorder %v26_v53, 0  ;;  %v57_v57 = vld [vmem:[%s1310_s1 + $0xb0] sm:$0xf] }
  0x36   :  { %v266_v55 = vsel %vm138_vm3, %v74_v46, %v202_v49  ;;  %v154_v56 = vmul.bf16 1045249613, %v26_v53  ;;  %v58_v60 = vld [vmem:[%s1310_s1 + $0xb4] sm:$0xf]  ;;  %vm121_vm6 = vcmp.gt.bf16.partialorder %v57_v57, 0 }
  0x37   :  { %865 = vmatprep.subr.bf16.mxu0 %v835_v51  ;;  %v851_v58 = vcombine.low %v265_v52, %v266_v55  ;;  %v217_v59 = vsel %vm89_vm4, %v25_v50, %v153_v54  ;;  %v185_v61 = vmul.bf16 1045249613, %v57_v57  ;;  %vm122_vm7 = vcmp.gt.bf16.partialorder %v58_v60, 0  ;;  %v43_v0 = vld [vmem:[%s1310_s1 + $0x78] sm:$0xf] }
  0x38   :  { %v218_v62 = vsel %vm90_vm5, %v26_v53, %v154_v56  ;;  %v186_v63 = vmul.bf16 1045249613, %v58_v60  ;;  %v44_v3 = vld [vmem:[%s1310_s1 + $0x7c] sm:$0xf]  ;;  %vm107_vm8 = vcmp.gt.bf16.partialorder %v43_v0, 0 }
  0x39   :  { %905 = vmatprep.subr.bf16.mxu1 %v851_v58  ;;  %v827_v1 = vcombine.low %v217_v59, %v218_v62  ;;  %v249_v2 = vsel %vm121_vm6, %v57_v57, %v185_v61  ;;  %v171_v4 = vmul.bf16 1045249613, %v43_v0  ;;  %vm108_vm9 = vcmp.gt.bf16.partialorder %v44_v3, 0  ;;  %v75_v7 = vld [vmem:[%s1310_s1 + $0xf8] sm:$0xf] }
  0x3a   :  { %v250_v5 = vsel %vm122_vm7, %v58_v60, %v186_v63  ;;  %v172_v6 = vmul.bf16 1045249613, %v44_v3  ;;  %v76_v10 = vld [vmem:[%s1310_s1 + $0xfc] sm:$0xf]  ;;  %vm139_vm10 = vcmp.gt.bf16.partialorder %v75_v7, 0 }
  0x3b   :  { %866 = vmatpush3.bf16.msra.mxu0 %v827_v1  ;;  %v843_v8 = vcombine.low %v249_v2, %v250_v5  ;;  %v235_v9 = vsel %vm107_vm8, %v43_v0, %v171_v4  ;;  %v203_v11 = vmul.bf16 1045249613, %v75_v7  ;;  %vm140_vm11 = vcmp.gt.bf16.partialorder %v76_v10, 0  ;;  %v27_v14 = vld [vmem:[%s1310_s1 + $0x38] sm:$0xf] }
  0x3c   :  { %v236_v12 = vsel %vm108_vm9, %v44_v3, %v172_v6  ;;  %v204_v13 = vmul.bf16 1045249613, %v76_v10  ;;  %v28_v17 = vld [vmem:[%s1310_s1 + $0x3c] sm:$0xf]  ;;  %vm91_vm12 = vcmp.gt.bf16.partialorder %v27_v14, 0 }
  0x3d   :  { %906 = vmatpush3.bf16.msra.mxu1 %v843_v8  ;;  %v836_v15 = vcombine.low %v235_v9, %v236_v12  ;;  %v267_v16 = vsel %vm139_vm10, %v75_v7, %v203_v11  ;;  %v155_v18 = vmul.bf16 1045249613, %v27_v14  ;;  %vm92_vm13 = vcmp.gt.bf16.partialorder %v28_v17, 0  ;;  %v59_v21 = vld [vmem:[%s1310_s1 + $0xb8] sm:$0xf] }
  0x3e   :  { %v268_v19 = vsel %vm140_vm11, %v76_v10, %v204_v13  ;;  %v156_v20 = vmul.bf16 1045249613, %v28_v17  ;;  %v60_v24 = vld [vmem:[%s1310_s1 + $0xbc] sm:$0xf]  ;;  %vm123_vm14 = vcmp.gt.bf16.partialorder %v59_v21, 0 }
  0x3f   :  { %867 = vmatprep.subr.bf16.mxu0 %v836_v15  ;;  %v852_v22 = vcombine.low %v267_v16, %v268_v19  ;;  %v219_v23 = vsel %vm91_vm12, %v27_v14, %v155_v18  ;;  %v187_v25 = vmul.bf16 1045249613, %v59_v21  ;;  %vm124_vm15 = vcmp.gt.bf16.partialorder %v60_v24, 0  ;;  %v935_v30 = vld [vmem:[%s1311_s0 + $0x4] ss:$16 sps:$4 sm:$0xff]  }
  0x40   :  { %v220_v26 = vsel %vm92_vm13, %v28_v17, %v156_v20  ;;  %v188_v27 = vmul.bf16 1045249613, %v60_v24  ;;  %v938_v31 = vld [vmem:[%s1311_s0 + $0xc] ss:$16 sps:$4 sm:$0xff]   ;;  %v933_v33 = vld [vmem:[%s1311_s0] ss:$16 sps:$4 sm:$0xff]   ;;  %589 = vmatprep.mubr.bf16.mxu0 %v935_v30 }
  0x41   :  { %907 = vmatprep.subr.bf16.mxu1 %v852_v22  ;;  %v828_v28 = vcombine.low %v219_v23, %v220_v26  ;;  %v251_v29 = vsel %vm123_vm14, %v59_v21, %v187_v25  ;;  %v939_v35 = vld [vmem:[%s1311_s0 + $0x24] ss:$16 sps:$4 sm:$0xff]   ;;  %v936_v36 = vld [vmem:[%s1311_s0 + $0x8] ss:$16 sps:$4 sm:$0xff]   ;;  %654 = vmatprep.mubr.bf16.mxu1 %v938_v31  ;;  %v941_v37 = vld [vmem:[%s1311_s0 + $0x2c] ss:$16 sps:$4 sm:$0xff]  }
  0x42   :  { %v252_v32 = vsel %vm124_vm15, %v60_v24, %v188_v27  ;;  %v943_v38 = vld [vmem:[%s1311_s0 + $0x20] ss:$16 sps:$4 sm:$0xff]   ;;  %v945_v39 = vld [vmem:[%s1311_s0 + $0x44] ss:$16 sps:$4 sm:$0xff]   ;;  %v944_v40 = vld [vmem:[%s1311_s0 + $0x28] ss:$16 sps:$4 sm:$0xff]  }
  0x43   :  { %868 = vmatpush3.bf16.msra.mxu0 %v828_v28  ;;  %v844_v34 = vcombine.low %v251_v29, %v252_v32  ;;  %v947_v41 = vld [vmem:[%s1311_s0 + $0x4c] ss:$16 sps:$4 sm:$0xff]   ;;  %v949_v42 = vld [vmem:[%s1311_s0 + $0x40] ss:$16 sps:$4 sm:$0xff]   ;;  %v951_v43 = vld [vmem:[%s1311_s0 + $0x64] ss:$16 sps:$4 sm:$0xff]  }
  0x44   :  { %v950_v44 = vld [vmem:[%s1311_s0 + $0x48] ss:$16 sps:$4 sm:$0xff]   ;;  %v953_v45 = vld [vmem:[%s1311_s0 + $0x6c] ss:$16 sps:$4 sm:$0xff]   ;;  %v955_v46 = vld [vmem:[%s1311_s0 + $0x60] ss:$16 sps:$4 sm:$0xff]  }
  0x45   :  { %908 = vmatpush3.bf16.msra.mxu1 %v844_v34  ;;  %v956_v47 = vld [vmem:[%s1311_s0 + $0x68] ss:$16 sps:$4 sm:$0xff]  }
  0x46   :  { %590 = vmatmul.mubr.bf16.vlgmr.msra.gmra.mrb[0].mxu0 %v933_v33 }
  0x47   :  { %597 = vmatprep.mubr.bf16.mxu0 %v939_v35 }
  0x48   :  { %655 = vmatmul.mubr.bf16.vlgmr.msra.gmra.mrb[0].mxu1 %v936_v36 }
  0x49   :  { %662 = vmatprep.mubr.bf16.mxu1 %v941_v37 }
  0x4e   :  { %598 = vmatmul.mubr.bf16.gmra.mrb[4].mxu0 %v943_v38 }
  0x4f   :  { %605 = vmatprep.mubr.bf16.mxu0 %v945_v39 }
  0x50   :  { %663 = vmatmul.mubr.bf16.gmra.mrb[4].mxu1 %v944_v40 }
  0x51   :  { %670 = vmatprep.mubr.bf16.mxu1 %v947_v41 }
  0x56   :  { %606 = vmatmul.mubr.bf16.gmra.mrb[8].mxu0 %v949_v42 }
  0x57   :  { %613 = vmatprep.mubr.bf16.mxu0 %v951_v43 }
  0x58   :  { %671 = vmatmul.mubr.bf16.gmra.mrb[8].mxu1 %v950_v44 }
  0x59   :  { %678 = vmatprep.mubr.bf16.mxu1 %v953_v45 }
  0x5e   :  { %614 = vmatmul.mubr.bf16.gmra.mrb[12].mxu0 %v955_v46 }
  0x60   :  { %679 = vmatmul.mubr.bf16.gmra.mrb[12].mxu1 %v956_v47 }
 0x119   :  { %v869_v48 = vpop.f32.mrb[0].mxu0 }
 0x11a   :  { %v870_v49 = vpop.f32.mrb[1].mxu0 }
 0x11b   :  { %v909_v50 = vpop.f32.mrb[0].mxu1  ;;  %v871_v51 = vadd.f32 %v870_v49, %v869_v48  ;;  %v872_v52 = vpop.f32.mrb[2].mxu0 }
 0x11c   :  { %v910_v53 = vpop.f32.mrb[1].mxu1  ;;  %v873_v54 = vpop.f32.mrb[3].mxu0 }
 0x11d   :  { %v911_v55 = vadd.f32 %v910_v53, %v909_v50  ;;  %v912_v56 = vpop.f32.mrb[2].mxu1  ;;  %v874_v57 = vadd.f32 %v873_v54, %v872_v52 }
 0x11e   :  { %v913_v58 = vpop.f32.mrb[3].mxu1 }
 0x11f   :  { %v914_v59 = vadd.f32 %v913_v58, %v912_v56  ;;  %v657_v60 = vadd.f32 %v911_v55, %v871_v51 }
 0x121   :  { %v688_v61 = vsel %vm687_vm0, %v657_v60, 0.0  ;;  %v875_v62 = vpop.f32.mrb[4].mxu0  ;;  %v1229_v63 = vadd.f32 %v914_v59, %v874_v57 }
 0x122   :  { %689 = vadd.xlane.f32.xlu0 %v688_v61  ;;  %v876_v0 = vpop.f32.mrb[5].mxu0 }
 0x123   :  { %v915_v1 = vpop.f32.mrb[4].mxu1  ;;  %v877_v2 = vadd.f32 %v876_v0, %v875_v62  ;;  %v878_v3 = vpop.f32.mrb[6].mxu0  ;;  %v691_v9 = vsel %vm687_vm0, %v1229_v63, 0.0 }
 0x124   :  { %v916_v4 = vpop.f32.mrb[5].mxu1  ;;  %v879_v5 = vpop.f32.mrb[7].mxu0 }
 0x125   :  { %v917_v6 = vadd.f32 %v916_v4, %v915_v1  ;;  %v918_v7 = vpop.f32.mrb[6].mxu1  ;;  %v880_v8 = vadd.f32 %v879_v5, %v878_v3 }
 0x126   :  { %v919_v10 = vpop.f32.mrb[7].mxu1  ;;  %692 = vadd.xlane.f32.xlu0 %v691_v9 }
 0x127   :  { %v920_v11 = vadd.f32 %v919_v10, %v918_v7  ;;  %v665_v12 = vadd.f32 %v917_v6, %v877_v2 }
 0x129   :  { %v694_v13 = vsel %vm687_vm0, %v665_v12, 0.0  ;;  %v881_v14 = vpop.f32.mrb[8].mxu0  ;;  %v668_v15 = vadd.f32 %v920_v11, %v880_v8 }
 0x12a   :  { %695 = vadd.xlane.f32.xlu1 %v694_v13  ;;  %v882_v16 = vpop.f32.mrb[9].mxu0 }
 0x12b   :  { %v921_v17 = vpop.f32.mrb[8].mxu1  ;;  %v883_v18 = vadd.f32 %v882_v16, %v881_v14  ;;  %v884_v19 = vpop.f32.mrb[10].mxu0  ;;  %v697_v25 = vsel %vm687_vm0, %v668_v15, 0.0 }
 0x12c   :  { %v922_v20 = vpop.f32.mrb[9].mxu1  ;;  %v885_v21 = vpop.f32.mrb[11].mxu0 }
 0x12d   :  { %v923_v22 = vadd.f32 %v922_v20, %v921_v17  ;;  %v924_v23 = vpop.f32.mrb[10].mxu1  ;;  %v886_v24 = vadd.f32 %v885_v21, %v884_v19 }
 0x12e   :  { %v925_v26 = vpop.f32.mrb[11].mxu1  ;;  %698 = vadd.xlane.f32.xlu1 %v697_v25 }
 0x12f   :  { %v926_v27 = vadd.f32 %v925_v26, %v924_v23  ;;  %v673_v28 = vadd.f32 %v923_v22, %v883_v18 }
 0x131   :  { %v700_v29 = vsel %vm687_vm0, %v673_v28, 0.0  ;;  %v887_v30 = vpop.f32.mrb[12].mxu0  ;;  %v676_v31 = vadd.f32 %v926_v27, %v886_v24 }
 0x132   :  { %701 = vadd.xlane.f32.xlu0 %v700_v29  ;;  %v888_v32 = vpop.f32.mrb[13].mxu0 }
 0x133   :  { %v927_v33 = vpop.f32.mrb[12].mxu1  ;;  %v889_v34 = vadd.f32 %v888_v32, %v887_v30  ;;  %v703_v35 = vsel %vm687_vm0, %v676_v31, 0.0  ;;  %v890_v36 = vpop.f32.mrb[14].mxu0 }
 0x134   :  { %v928_v37 = vpop.f32.mrb[13].mxu1  ;;  %704 = vadd.xlane.f32.xlu1 %v703_v35  ;;  %v891_v38 = vpop.f32.mrb[15].mxu0 }
 0x135   :  { %v929_v39 = vadd.f32 %v928_v37, %v927_v33  ;;  %v930_v40 = vpop.f32.mrb[14].mxu1  ;;  %v892_v41 = vadd.f32 %v891_v38, %v890_v36 }
 0x136   :  { %v931_v42 = vpop.f32.mrb[15].mxu1 }
 0x137   :  { %v932_v43 = vadd.f32 %v931_v42, %v930_v40  ;;  %v681_v44 = vadd.f32 %v929_v39, %v889_v34 }
 0x139   :  { %v706_v45 = vsel %vm687_vm0, %v681_v44, 0.0  ;;  %v684_v46 = vadd.f32 %v932_v43, %v892_v41 }
 0x13a   :  { %707 = vadd.xlane.f32.xlu0 %v706_v45 }
 0x13b   :  { %v709_v47 = vsel %vm687_vm0, %v684_v46, 0.0 }
 0x13c   :  { %710 = vadd.xlane.f32.xlu1 %v709_v47 }
 0x1af   :  { %v690_v48 = vpop.xlane.xlu0 %689 }
 0x1b0   :  { %v713_v49 = vmul.f32 0.125, %v690_v48 }
 0x1b2   :  { %v1239_v50 = vsub.f32 %v657_v60, %v713_v49 }
 0x1b3   :  { %v693_v51 = vpop.xlane.xlu0 %692 }
 0x1b4   :  { %v714_v52 = vmul.f32 0.125, %v693_v51  ;;  %v729_v53 = vmul.f32 %v1239_v50, %v1239_v50 }
 0x1b6   :  { %v1244_v54 = vsub.f32 %v1229_v63, %v714_v52  ;;  %v737_v55 = vsel %vm687_vm0, %v729_v53, 0.0 }
 0x1b7   :  { %v696_v56 = vpop.xlane.xlu1 %695  ;;  %738 = vadd.xlane.f32.xlu0 %v737_v55 }
 0x1b8   :  { %v715_v57 = vmul.f32 0.125, %v696_v56  ;;  %v730_v58 = vmul.f32 %v1244_v54, %v1244_v54 }
 0x1ba   :  { %v1249_v59 = vsub.f32 %v665_v12, %v715_v57  ;;  %v740_v60 = vsel %vm687_vm0, %v730_v58, 0.0 }
 0x1bb   :  { %v699_v61 = vpop.xlane.xlu1 %698  ;;  %741 = vadd.xlane.f32.xlu1 %v740_v60 }
 0x1bc   :  { %v716_v62 = vmul.f32 0.125, %v699_v61  ;;  %v731_v0 = vmul.f32 %v1249_v59, %v1249_v59 }
 0x1be   :  { %v1254_v63 = vsub.f32 %v668_v15, %v716_v62  ;;  %v743_v1 = vsel %vm687_vm0, %v731_v0, 0.0 }
 0x1bf   :  { %744 = vadd.xlane.f32.xlu0 %v743_v1  ;;  %v702_v2 = vpop.xlane.xlu0 %701 }
 0x1c0   :  { %v717_v3 = vmul.f32 0.125, %v702_v2  ;;  %v732_v4 = vmul.f32 %v1254_v63, %v1254_v63 }
 0x1c1   :  { %v705_v5 = vpop.xlane.xlu1 %704 }
 0x1c2   :  { %v1259_v6 = vsub.f32 %v673_v28, %v717_v3  ;;  %v718_v7 = vmul.f32 0.125, %v705_v5  ;;  %v746_v8 = vsel %vm687_vm0, %v732_v4, 0.0 }
 0x1c3   :  { %747 = vadd.xlane.f32.xlu1 %v746_v8 }
 0x1c4   :  { %v1262_v9 = vsub.f32 %v676_v31, %v718_v7  ;;  %v733_v10 = vmul.f32 %v1259_v6, %v1259_v6 }
 0x1c6   :  { %v749_v11 = vsel %vm687_vm0, %v733_v10, 0.0  ;;  %v734_v12 = vmul.f32 %v1262_v9, %v1262_v9 }
 0x1c7   :  { %750 = vadd.xlane.f32.xlu0 %v749_v11  ;;  %v708_v13 = vpop.xlane.xlu0 %707 }
 0x1c8   :  { %v719_v14 = vmul.f32 0.125, %v708_v13  ;;  %v752_v15 = vsel %vm687_vm0, %v734_v12, 0.0 }
 0x1c9   :  { %v711_v16 = vpop.xlane.xlu1 %710  ;;  %753 = vadd.xlane.f32.xlu1 %v752_v15 }
 0x1ca   :  { %v727_v17 = vsub.f32 %v681_v44, %v719_v14  ;;  %v720_v18 = vmul.f32 0.125, %v711_v16 }
 0x1cc   :  { %v728_v19 = vsub.f32 %v684_v46, %v720_v18  ;;  %v735_v20 = vmul.f32 %v727_v17, %v727_v17 }
 0x1ce   :  { %v755_v21 = vsel %vm687_vm0, %v735_v20, 0.0  ;;  %v736_v22 = vmul.f32 %v728_v19, %v728_v19 }
 0x1cf   :  { %756 = vadd.xlane.f32.xlu0 %v755_v21 }
 0x1d0   :  { %v758_v23 = vsel %vm687_vm0, %v736_v22, 0.0 }
 0x1d1   :  { %759 = vadd.xlane.f32.xlu1 %v758_v23 }
 0x244   :  { %v739_v24 = vpop.xlane.xlu0 %738 }
 0x245   :  { %v761_v25 = vmul.f32 0.125, %v739_v24 }
 0x247   :  { %v769_v26 = vadd.f32 1e-05, %v761_v25 }
 0x248   :  { %v742_v27 = vpop.xlane.xlu1 %741 }
 0x249   :  { %957 = vrsqrt.f32 %v769_v26  ;;  %v762_v28 = vmul.f32 0.125, %v742_v27 }
 0x24b   :  { %v770_v29 = vadd.f32 1e-05, %v762_v28 }
 0x24c   :  { %v745_v30 = vpop.xlane.xlu0 %744 }
 0x24d   :  { %959 = vrsqrt.f32 %v770_v29  ;;  %v763_v31 = vmul.f32 0.125, %v745_v30 }
 0x24f   :  { %v771_v32 = vadd.f32 1e-05, %v763_v31 }
 0x250   :  { %v748_v33 = vpop.xlane.xlu1 %747 }
 0x251   :  { %961 = vrsqrt.f32 %v771_v32  ;;  %v764_v34 = vmul.f32 0.125, %v748_v33 }
 0x253   :  { %v958_v35 = vpop.eup %957  ;;  %v772_v36 = vadd.f32 1e-05, %v764_v34 }
 0x254   :  { %v785_v37 = vmul.f32 %v958_v35, %v1239_v50  ;;  %v751_v38 = vpop.xlane.xlu0 %750 }
 0x255   :  { %963 = vrsqrt.f32 %v772_v36  ;;  %v765_v39 = vmul.f32 0.125, %v751_v38 }
 0x256   :  { %793 = vst.msk [vmem:[%s1312_s2] sm:$0xff] %vm687_vm0, %v785_v37  ;;  %v754_v40 = vpop.xlane.xlu1 %753 }
 0x257   :  { %v960_v41 = vpop.eup %959  ;;  %v773_v42 = vadd.f32 1e-05, %v765_v39  ;;  %v766_v43 = vmul.f32 0.125, %v754_v40 }
 0x258   :  { %v786_v44 = vmul.f32 %v960_v41, %v1244_v54 }
 0x259   :  { %965 = vrsqrt.f32 %v773_v42  ;;  %v774_v45 = vadd.f32 1e-05, %v766_v43 }
 0x25a   :  { %794 = vst.msk [vmem:[%s1312_s2 + $0x8] sm:$0xff] %vm687_vm0, %v786_v44 }
 0x25b   :  { %v962_v46 = vpop.eup %961  ;;  %967 = vrsqrt.f32 %v774_v45 }
 0x25c   :  { %v787_v47 = vmul.f32 %v962_v46, %v1249_v59  ;;  %v757_v48 = vpop.xlane.xlu0 %756 }
 0x25d   :  { %v767_v49 = vmul.f32 0.125, %v757_v48 }
 0x25e   :  { %795 = vst.msk [vmem:[%s1312_s2 + $0x10] sm:$0xff] %vm687_vm0, %v787_v47  ;;  %v760_v50 = vpop.xlane.xlu1 %759 }
 0x25f   :  { %v964_v51 = vpop.eup %963  ;;  %v775_v52 = vadd.f32 1e-05, %v767_v49  ;;  %v768_v53 = vmul.f32 0.125, %v760_v50 }
 0x260   :  { %v788_v54 = vmul.f32 %v964_v51, %v1254_v63 }
 0x261   :  { %969 = vrsqrt.f32 %v775_v52  ;;  %v776_v55 = vadd.f32 1e-05, %v768_v53 }
 0x262   :  { %796 = vst.msk [vmem:[%s1312_s2 + $0x18] sm:$0xff] %vm687_vm0, %v788_v54 }
 0x263   :  { %v966_v56 = vpop.eup %965  ;;  %971 = vrsqrt.f32 %v776_v55 }
 0x264   :  { %v789_v57 = vmul.f32 %v966_v56, %v1259_v6 }
 0x265   :  { %v968_v58 = vpop.eup %967 }
 0x266   :  { %797 = vst.msk [vmem:[%s1312_s2 + $0x20] sm:$0xff] %vm687_vm0, %v789_v57  ;;  %v790_v59 = vmul.f32 %v968_v58, %v1262_v9 }
 0x268   :  { %798 = vst.msk [vmem:[%s1312_s2 + $0x28] sm:$0xff] %vm687_vm0, %v790_v59 }
 0x26b   :  { %v970_v60 = vpop.eup %969 }
 0x26c   :  { %v791_v61 = vmul.f32 %v970_v60, %v727_v17 }
 0x26d   :  { %v972_v62 = vpop.eup %971 }
 0x26e   :  { %799 = vst.msk [vmem:[%s1312_s2 + $0x30] sm:$0xff] %vm687_vm0, %v791_v61  ;;  %v792_v0 = vmul.f32 %v972_v62, %v728_v19 }
 0x270   :  { %800 = vst.msk [vmem:[%s1312_s2 + $0x38] sm:$0xff] %vm687_vm0, %v792_v0 }

// kernel: _lambda_.19
= control target key start
LH: loop header
LB: loop body
LE: loop exit
PB: predicated region body
PF: predicated region fallthrough
CT: control target
= control target key end

     0   :  { %s2246_s1 = inlined_call_operand.vmem [shape: bf16[1024,2], index: 1, kind: input, shape index: {}]   ;;  %s2247_s0 = inlined_call_operand.vmem [shape: bf16[64,1024], index: 0, kind: input, shape index: {}]   ;;  %s2248_s2 = inlined_call_operand.vmem [shape: f32[64,2], index: 2, kind: output, shape index: {}]  }
   0x1   :  { %v29_v0 = vld [vmem:[%s2246_s1 + $0x40] sm:$0xf]  ;;  %v30_v1 = vld [vmem:[%s2246_s1 + $0x44] sm:$0xf]  ;;  %v31_v26 = vld [vmem:[%s2246_s1 + $0x48] sm:$0xf] }
   0x2   :  { %v61_v2 = vld [vmem:[%s2246_s1 + $0xc0] sm:$0xf]  ;;  %vm157_vm0 = vcmp.gt.bf16.partialorder %v29_v0, 0  ;;  %vm158_vm1 = vcmp.gt.bf16.partialorder %v30_v1, 0  ;;  %v285_v3 = vmul.bf16 1045249613, %v29_v0 }
   0x3   :  { %v286_v4 = vmul.bf16 1045249613, %v30_v1  ;;  %v62_v5 = vld [vmem:[%s2246_s1 + $0xc4] sm:$0xf]  ;;  %vm189_vm2 = vcmp.gt.bf16.partialorder %v61_v2, 0  ;;  %v1687_v28 = vld [vmem:[%s2247_s0 + $0x8] sm:$0xff] }
   0x4   :  { %v317_v6 = vmul.bf16 1045249613, %v61_v2  ;;  %v413_v7 = vsel %vm157_vm0, %v29_v0, %v285_v3  ;;  %vm190_vm3 = vcmp.gt.bf16.partialorder %v62_v5, 0  ;;  %v318_v9 = vmul.bf16 1045249613, %v62_v5  ;;  %v1663_v11 = vld [vmem:[%s2247_s0] sm:$0xff] }
   0x5   :  { %v414_v8 = vsel %vm158_vm1, %v30_v1, %v286_v4  ;;  %v13_v10 = vld [vmem:[%s2246_s1] sm:$0xf]  ;;  %v14_v14 = vld [vmem:[%s2246_s1 + $0x4] sm:$0xf]  ;;  %v32_v31 = vld [vmem:[%s2246_s1 + $0x4c] sm:$0xf] }
   0x6   :  { %v1414_v12 = vcombine.low %v413_v7, %v414_v8  ;;  %v445_v13 = vsel %vm189_vm2, %v61_v2, %v317_v6  ;;  %vm141_vm4 = vcmp.gt.bf16.partialorder %v13_v10, 0  ;;  %v269_v15 = vmul.bf16 1045249613, %v13_v10  ;;  %v1671_v16 = vld [vmem:[%s2247_s0 + $0x20] sm:$0xff]  ;;  %v1695_v33 = vld [vmem:[%s2247_s0 + $0x28] sm:$0xff] }
   0x7   :  { %v446_v17 = vsel %vm190_vm3, %v62_v5, %v318_v9  ;;  %vm142_vm5 = vcmp.gt.bf16.partialorder %v14_v14, 0  ;;  %v270_v18 = vmul.bf16 1045249613, %v14_v14  ;;  %v45_v19 = vld [vmem:[%s2246_s1 + $0x80] sm:$0xf]  ;;  %v1375_v27 = vcombine.high %v1663_v11, %v1671_v16 }
   0x8   :  { %1470 = vmatprep.subr.bf16.mxu0 %v1414_v12  ;;  %v1430_v20 = vcombine.low %v445_v13, %v446_v17  ;;  %v397_v21 = vsel %vm141_vm4, %v13_v10, %v269_v15  ;;  %v46_v22 = vld [vmem:[%s2246_s1 + $0x84] sm:$0xf]  ;;  %vm173_vm6 = vcmp.gt.bf16.partialorder %v45_v19, 0  ;;  %v301_v23 = vmul.bf16 1045249613, %v45_v19 }
   0x9   :  { %v398_v24 = vsel %vm142_vm5, %v14_v14, %v270_v18  ;;  %vm174_vm7 = vcmp.gt.bf16.partialorder %v46_v22, 0  ;;  %v302_v25 = vmul.bf16 1045249613, %v46_v22  ;;  %vm159_vm8 = vcmp.gt.bf16.partialorder %v31_v26, 0  ;;  %v63_v36 = vld [vmem:[%s2246_s1 + $0xc8] sm:$0xf]  ;;  %1133 = vmatprep.mubr.bf16.mxu0 %v1375_v27 }
   0xa   :  { %1510 = vmatprep.subr.bf16.mxu1 %v1430_v20  ;;  %v1406_v29 = vcombine.low %v397_v21, %v398_v24  ;;  %v429_v30 = vsel %vm173_vm6, %v45_v19, %v301_v23  ;;  %v287_v32 = vmul.bf16 1045249613, %v31_v26  ;;  %vm160_vm9 = vcmp.gt.bf16.partialorder %v32_v31, 0  ;;  %v64_v39 = vld [vmem:[%s2246_s1 + $0xcc] sm:$0xf] }
   0xb   :  { %v430_v34 = vsel %vm174_vm7, %v46_v22, %v302_v25  ;;  %v288_v35 = vmul.bf16 1045249613, %v32_v31  ;;  %vm191_vm10 = vcmp.gt.bf16.partialorder %v63_v36, 0  ;;  %v319_v40 = vmul.bf16 1045249613, %v63_v36 }
   0xc   :  { %1471 = vmatpush3.bf16.msra.mxu0 %v1406_v29  ;;  %v1422_v37 = vcombine.low %v429_v30, %v430_v34  ;;  %v415_v38 = vsel %vm159_vm8, %v31_v26, %v287_v32  ;;  %vm192_vm11 = vcmp.gt.bf16.partialorder %v64_v39, 0  ;;  %v320_v42 = vmul.bf16 1045249613, %v64_v39  ;;  %v15_v43 = vld [vmem:[%s2246_s1 + $0x8] sm:$0xf] }
   0xd   :  { %v416_v41 = vsel %vm160_vm9, %v32_v31, %v288_v35  ;;  %v1377_v44 = vcombine.high %v1687_v28, %v1695_v33  ;;  %v447_v46 = vsel %vm191_vm10, %v63_v36, %v319_v40  ;;  %v16_v47 = vld [vmem:[%s2246_s1 + $0xc] sm:$0xf]  ;;  %vm143_vm12 = vcmp.gt.bf16.partialorder %v15_v43, 0  ;;  %v47_v51 = vld [vmem:[%s2246_s1 + $0x88] sm:$0xf] }
   0xe   :  { %1511 = vmatpush3.bf16.msra.mxu1 %v1422_v37  ;;  %v1415_v45 = vcombine.low %v415_v38, %v416_v41  ;;  %v271_v48 = vmul.bf16 1045249613, %v15_v43  ;;  %v448_v49 = vsel %vm192_vm11, %v64_v39, %v320_v42  ;;  %vm144_vm13 = vcmp.gt.bf16.partialorder %v16_v47, 0  ;;  %v48_v54 = vld [vmem:[%s2246_s1 + $0x8c] sm:$0xf] }
   0xf   :  { %v272_v50 = vmul.bf16 1045249613, %v16_v47  ;;  %1198 = vmatprep.mubr.bf16.mxu1 %v1377_v44  ;;  %v1431_v52 = vcombine.low %v447_v46, %v448_v49  ;;  %vm175_vm14 = vcmp.gt.bf16.partialorder %v47_v51, 0  ;;  %v303_v55 = vmul.bf16 1045249613, %v47_v51 }
  0x10   :  { %1472 = vmatprep.subr.bf16.mxu0 %v1415_v45  ;;  %v399_v53 = vsel %vm143_vm12, %v15_v43, %v271_v48  ;;  %vm176_vm15 = vcmp.gt.bf16.partialorder %v48_v54, 0  ;;  %v304_v57 = vmul.bf16 1045249613, %v48_v54  ;;  %v33_v58 = vld [vmem:[%s2246_s1 + $0x50] sm:$0xf] }
  0x11   :  { %v400_v56 = vsel %vm144_vm13, %v16_v47, %v272_v50  ;;  %1512 = vmatprep.subr.bf16.mxu1 %v1431_v52  ;;  %v431_v60 = vsel %vm175_vm14, %v47_v51, %v303_v55  ;;  %v34_v61 = vld [vmem:[%s2246_s1 + $0x54] sm:$0xf]  ;;  %vm161_vm0 = vcmp.gt.bf16.partialorder %v33_v58, 0  ;;  %v289_v62 = vmul.bf16 1045249613, %v33_v58 }
  0x12   :  { %v1407_v59 = vcombine.low %v399_v53, %v400_v56  ;;  %v432_v63 = vsel %vm176_vm15, %v48_v54, %v304_v57  ;;  %vm162_vm1 = vcmp.gt.bf16.partialorder %v34_v61, 0  ;;  %v290_v0 = vmul.bf16 1045249613, %v34_v61  ;;  %v65_v1 = vld [vmem:[%s2246_s1 + $0xd0] sm:$0xf] }
  0x13   :  { %v1423_v2 = vcombine.low %v431_v60, %v432_v63  ;;  %v417_v3 = vsel %vm161_vm0, %v33_v58, %v289_v62  ;;  %v66_v4 = vld [vmem:[%s2246_s1 + $0xd4] sm:$0xf]  ;;  %vm193_vm2 = vcmp.gt.bf16.partialorder %v65_v1, 0  ;;  %v321_v5 = vmul.bf16 1045249613, %v65_v1 }
  0x14   :  { %1473 = vmatpush3.bf16.msra.mxu0 %v1407_v59  ;;  %v418_v6 = vsel %vm162_vm1, %v34_v61, %v290_v0  ;;  %vm194_vm3 = vcmp.gt.bf16.partialorder %v66_v4, 0  ;;  %v322_v7 = vmul.bf16 1045249613, %v66_v4  ;;  %v17_v8 = vld [vmem:[%s2246_s1 + $0x10] sm:$0xf] }
  0x15   :  { %1513 = vmatpush3.bf16.msra.mxu1 %v1423_v2  ;;  %v1416_v9 = vcombine.low %v417_v3, %v418_v6  ;;  %v449_v10 = vsel %vm193_vm2, %v65_v1, %v321_v5  ;;  %v18_v12 = vld [vmem:[%s2246_s1 + $0x14] sm:$0xf]  ;;  %vm145_vm4 = vcmp.gt.bf16.partialorder %v17_v8, 0  ;;  %v273_v13 = vmul.bf16 1045249613, %v17_v8 }
  0x16   :  { %v450_v14 = vsel %vm194_vm3, %v66_v4, %v322_v7  ;;  %vm146_vm5 = vcmp.gt.bf16.partialorder %v18_v12, 0  ;;  %v274_v15 = vmul.bf16 1045249613, %v18_v12  ;;  %v49_v17 = vld [vmem:[%s2246_s1 + $0x90] sm:$0xf] }
  0x17   :  { %1474 = vmatprep.subr.bf16.mxu0 %v1416_v9  ;;  %v1432_v18 = vcombine.low %v449_v10, %v450_v14  ;;  %v401_v19 = vsel %vm145_vm4, %v17_v8, %v273_v13  ;;  %v50_v20 = vld [vmem:[%s2246_s1 + $0x94] sm:$0xf]  ;;  %vm177_vm6 = vcmp.gt.bf16.partialorder %v49_v17, 0  ;;  %v305_v21 = vmul.bf16 1045249613, %v49_v17 }
  0x18   :  { %v402_v22 = vsel %vm146_vm5, %v18_v12, %v274_v15  ;;  %vm178_vm7 = vcmp.gt.bf16.partialorder %v50_v20, 0  ;;  %v306_v23 = vmul.bf16 1045249613, %v50_v20  ;;  %v35_v24 = vld [vmem:[%s2246_s1 + $0x58] sm:$0xf] }
  0x19   :  { %1514 = vmatprep.subr.bf16.mxu1 %v1432_v18  ;;  %v1408_v25 = vcombine.low %v401_v19, %v402_v22  ;;  %v433_v26 = vsel %vm177_vm6, %v49_v17, %v305_v21  ;;  %v36_v27 = vld [vmem:[%s2246_s1 + $0x5c] sm:$0xf]  ;;  %vm163_vm8 = vcmp.gt.bf16.partialorder %v35_v24, 0  ;;  %v291_v29 = vmul.bf16 1045249613, %v35_v24 }
  0x1a   :  { %v434_v30 = vsel %vm178_vm7, %v50_v20, %v306_v23  ;;  %vm164_vm9 = vcmp.gt.bf16.partialorder %v36_v27, 0  ;;  %v292_v31 = vmul.bf16 1045249613, %v36_v27  ;;  %v67_v32 = vld [vmem:[%s2246_s1 + $0xd8] sm:$0xf] }
  0x1b   :  { %1475 = vmatpush3.bf16.msra.mxu0 %v1408_v25  ;;  %v1424_v34 = vcombine.low %v433_v26, %v434_v30  ;;  %v419_v35 = vsel %vm163_vm8, %v35_v24, %v291_v29  ;;  %v68_v36 = vld [vmem:[%s2246_s1 + $0xdc] sm:$0xf]  ;;  %vm195_vm10 = vcmp.gt.bf16.partialorder %v67_v32, 0  ;;  %v323_v37 = vmul.bf16 1045249613, %v67_v32 }
  0x1c   :  { %v420_v38 = vsel %vm164_vm9, %v36_v27, %v292_v31  ;;  %vm196_vm11 = vcmp.gt.bf16.partialorder %v68_v36, 0  ;;  %v324_v39 = vmul.bf16 1045249613, %v68_v36  ;;  %v19_v40 = vld [vmem:[%s2246_s1 + $0x18] sm:$0xf] }
  0x1d   :  { %1515 = vmatpush3.bf16.msra.mxu1 %v1424_v34  ;;  %v1417_v41 = vcombine.low %v419_v35, %v420_v38  ;;  %v451_v42 = vsel %vm195_vm10, %v67_v32, %v323_v37  ;;  %v20_v43 = vld [vmem:[%s2246_s1 + $0x1c] sm:$0xf]  ;;  %vm147_vm12 = vcmp.gt.bf16.partialorder %v19_v40, 0  ;;  %v275_v44 = vmul.bf16 1045249613, %v19_v40 }
  0x1e   :  { %v452_v45 = vsel %vm196_vm11, %v68_v36, %v324_v39  ;;  %vm148_vm13 = vcmp.gt.bf16.partialorder %v20_v43, 0  ;;  %v276_v46 = vmul.bf16 1045249613, %v20_v43  ;;  %v51_v47 = vld [vmem:[%s2246_s1 + $0x98] sm:$0xf] }
  0x1f   :  { %1476 = vmatprep.subr.bf16.mxu0 %v1417_v41  ;;  %v1433_v48 = vcombine.low %v451_v42, %v452_v45  ;;  %v403_v49 = vsel %vm147_vm12, %v19_v40, %v275_v44  ;;  %v52_v50 = vld [vmem:[%s2246_s1 + $0x9c] sm:$0xf]  ;;  %vm179_vm14 = vcmp.gt.bf16.partialorder %v51_v47, 0  ;;  %v307_v51 = vmul.bf16 1045249613, %v51_v47 }
  0x20   :  { %v404_v52 = vsel %vm148_vm13, %v20_v43, %v276_v46  ;;  %vm180_vm15 = vcmp.gt.bf16.partialorder %v52_v50, 0  ;;  %v308_v53 = vmul.bf16 1045249613, %v52_v50  ;;  %v37_v54 = vld [vmem:[%s2246_s1 + $0x60] sm:$0xf] }
  0x21   :  { %1516 = vmatprep.subr.bf16.mxu1 %v1433_v48  ;;  %v1409_v55 = vcombine.low %v403_v49, %v404_v52  ;;  %v435_v56 = vsel %vm179_vm14, %v51_v47, %v307_v51  ;;  %v38_v57 = vld [vmem:[%s2246_s1 + $0x64] sm:$0xf]  ;;  %vm165_vm0 = vcmp.gt.bf16.partialorder %v37_v54, 0  ;;  %v293_v58 = vmul.bf16 1045249613, %v37_v54 }
  0x22   :  { %v436_v59 = vsel %vm180_vm15, %v52_v50, %v308_v53  ;;  %vm166_vm1 = vcmp.gt.bf16.partialorder %v38_v57, 0  ;;  %v294_v60 = vmul.bf16 1045249613, %v38_v57  ;;  %v69_v61 = vld [vmem:[%s2246_s1 + $0xe0] sm:$0xf] }
  0x23   :  { %1477 = vmatpush3.bf16.msra.mxu0 %v1409_v55  ;;  %v1425_v62 = vcombine.low %v435_v56, %v436_v59  ;;  %v421_v63 = vsel %vm165_vm0, %v37_v54, %v293_v58  ;;  %v70_v0 = vld [vmem:[%s2246_s1 + $0xe4] sm:$0xf]  ;;  %vm197_vm2 = vcmp.gt.bf16.partialorder %v69_v61, 0  ;;  %v325_v1 = vmul.bf16 1045249613, %v69_v61 }
  0x24   :  { %v422_v2 = vsel %vm166_vm1, %v38_v57, %v294_v60  ;;  %vm198_vm3 = vcmp.gt.bf16.partialorder %v70_v0, 0  ;;  %v326_v3 = vmul.bf16 1045249613, %v70_v0  ;;  %v21_v4 = vld [vmem:[%s2246_s1 + $0x20] sm:$0xf] }
  0x25   :  { %1517 = vmatpush3.bf16.msra.mxu1 %v1425_v62  ;;  %v1418_v5 = vcombine.low %v421_v63, %v422_v2  ;;  %v453_v6 = vsel %vm197_vm2, %v69_v61, %v325_v1  ;;  %v22_v7 = vld [vmem:[%s2246_s1 + $0x24] sm:$0xf]  ;;  %vm149_vm4 = vcmp.gt.bf16.partialorder %v21_v4, 0  ;;  %v277_v8 = vmul.bf16 1045249613, %v21_v4 }
  0x26   :  { %v454_v9 = vsel %vm198_vm3, %v70_v0, %v326_v3  ;;  %vm150_vm5 = vcmp.gt.bf16.partialorder %v22_v7, 0  ;;  %v278_v10 = vmul.bf16 1045249613, %v22_v7  ;;  %v53_v12 = vld [vmem:[%s2246_s1 + $0xa0] sm:$0xf] }
  0x27   :  { %1478 = vmatprep.subr.bf16.mxu0 %v1418_v5  ;;  %v1434_v13 = vcombine.low %v453_v6, %v454_v9  ;;  %v405_v14 = vsel %vm149_vm4, %v21_v4, %v277_v8  ;;  %v54_v15 = vld [vmem:[%s2246_s1 + $0xa4] sm:$0xf]  ;;  %vm181_vm6 = vcmp.gt.bf16.partialorder %v53_v12, 0  ;;  %v309_v17 = vmul.bf16 1045249613, %v53_v12 }
  0x28   :  { %v406_v18 = vsel %vm150_vm5, %v22_v7, %v278_v10  ;;  %vm182_vm7 = vcmp.gt.bf16.partialorder %v54_v15, 0  ;;  %v310_v19 = vmul.bf16 1045249613, %v54_v15  ;;  %v39_v20 = vld [vmem:[%s2246_s1 + $0x68] sm:$0xf] }
  0x29   :  { %1518 = vmatprep.subr.bf16.mxu1 %v1434_v13  ;;  %v1410_v21 = vcombine.low %v405_v14, %v406_v18  ;;  %v437_v22 = vsel %vm181_vm6, %v53_v12, %v309_v17  ;;  %v40_v23 = vld [vmem:[%s2246_s1 + $0x6c] sm:$0xf]  ;;  %vm167_vm8 = vcmp.gt.bf16.partialorder %v39_v20, 0  ;;  %v295_v24 = vmul.bf16 1045249613, %v39_v20 }
  0x2a   :  { %v438_v25 = vsel %vm182_vm7, %v54_v15, %v310_v19  ;;  %vm168_vm9 = vcmp.gt.bf16.partialorder %v40_v23, 0  ;;  %v296_v26 = vmul.bf16 1045249613, %v40_v23  ;;  %v71_v27 = vld [vmem:[%s2246_s1 + $0xe8] sm:$0xf] }
  0x2b   :  { %1479 = vmatpush3.bf16.msra.mxu0 %v1410_v21  ;;  %v1426_v29 = vcombine.low %v437_v22, %v438_v25  ;;  %v423_v30 = vsel %vm167_vm8, %v39_v20, %v295_v24  ;;  %v72_v31 = vld [vmem:[%s2246_s1 + $0xec] sm:$0xf]  ;;  %vm199_vm10 = vcmp.gt.bf16.partialorder %v71_v27, 0  ;;  %v327_v32 = vmul.bf16 1045249613, %v71_v27 }
  0x2c   :  { %v424_v34 = vsel %vm168_vm9, %v40_v23, %v296_v26  ;;  %vm200_vm11 = vcmp.gt.bf16.partialorder %v72_v31, 0  ;;  %v328_v35 = vmul.bf16 1045249613, %v72_v31  ;;  %v23_v36 = vld [vmem:[%s2246_s1 + $0x28] sm:$0xf] }
  0x2d   :  { %1519 = vmatpush3.bf16.msra.mxu1 %v1426_v29  ;;  %v1419_v37 = vcombine.low %v423_v30, %v424_v34  ;;  %v455_v38 = vsel %vm199_vm10, %v71_v27, %v327_v32  ;;  %v24_v39 = vld [vmem:[%s2246_s1 + $0x2c] sm:$0xf]  ;;  %vm151_vm12 = vcmp.gt.bf16.partialorder %v23_v36, 0  ;;  %v279_v40 = vmul.bf16 1045249613, %v23_v36 }
  0x2e   :  { %v456_v41 = vsel %vm200_vm11, %v72_v31, %v328_v35  ;;  %vm152_vm13 = vcmp.gt.bf16.partialorder %v24_v39, 0  ;;  %v280_v42 = vmul.bf16 1045249613, %v24_v39  ;;  %v55_v43 = vld [vmem:[%s2246_s1 + $0xa8] sm:$0xf] }
  0x2f   :  { %1480 = vmatprep.subr.bf16.mxu0 %v1419_v37  ;;  %v1435_v44 = vcombine.low %v455_v38, %v456_v41  ;;  %v407_v45 = vsel %vm151_vm12, %v23_v36, %v279_v40  ;;  %v56_v46 = vld [vmem:[%s2246_s1 + $0xac] sm:$0xf]  ;;  %vm183_vm14 = vcmp.gt.bf16.partialorder %v55_v43, 0  ;;  %v311_v47 = vmul.bf16 1045249613, %v55_v43  ;;  %v1863_v41 = vld [vmem:[%s2247_s0 + $0x40] sm:$0xff] }
  0x30   :  { %v408_v48 = vsel %vm152_vm13, %v24_v39, %v280_v42  ;;  %vm184_vm15 = vcmp.gt.bf16.partialorder %v56_v46, 0  ;;  %v312_v49 = vmul.bf16 1045249613, %v56_v46  ;;  %v41_v50 = vld [vmem:[%s2246_s1 + $0x70] sm:$0xf]  ;;  %v1374_v40 = vcombine.low %v1663_v11, %v1671_v16 }
  0x31   :  { %1520 = vmatprep.subr.bf16.mxu1 %v1435_v44  ;;  %v1411_v51 = vcombine.low %v407_v45, %v408_v48  ;;  %v439_v52 = vsel %vm183_vm14, %v55_v43, %v311_v47  ;;  %v42_v53 = vld [vmem:[%s2246_s1 + $0x74] sm:$0xf]  ;;  %vm169_vm0 = vcmp.gt.bf16.partialorder %v41_v50, 0  ;;  %v297_v54 = vmul.bf16 1045249613, %v41_v50 }
  0x32   :  { %v440_v55 = vsel %vm184_vm15, %v56_v46, %v312_v49  ;;  %vm170_vm1 = vcmp.gt.bf16.partialorder %v42_v53, 0  ;;  %v298_v56 = vmul.bf16 1045249613, %v42_v53  ;;  %v73_v57 = vld [vmem:[%s2246_s1 + $0xf0] sm:$0xf]  ;;  %v1871_v46 = vld [vmem:[%s2247_s0 + $0x60] sm:$0xff]  ;;  %v1376_v47 = vcombine.low %v1687_v28, %v1695_v33 }
  0x33   :  { %1481 = vmatpush3.bf16.msra.mxu0 %v1411_v51  ;;  %v1427_v58 = vcombine.low %v439_v52, %v440_v55  ;;  %v425_v59 = vsel %vm169_vm0, %v41_v50, %v297_v54  ;;  %v74_v60 = vld [vmem:[%s2246_s1 + $0xf4] sm:$0xf]  ;;  %vm201_vm2 = vcmp.gt.bf16.partialorder %v73_v57, 0  ;;  %v329_v61 = vmul.bf16 1045249613, %v73_v57  ;;  %v1881_v49 = vld [vmem:[%s2247_s0 + $0x48] sm:$0xff] }
  0x34   :  { %v426_v62 = vsel %vm170_vm1, %v42_v53, %v298_v56  ;;  %vm202_vm3 = vcmp.gt.bf16.partialorder %v74_v60, 0  ;;  %v330_v63 = vmul.bf16 1045249613, %v74_v60  ;;  %v25_v0 = vld [vmem:[%s2246_s1 + $0x30] sm:$0xf]  ;;  %v1889_v28 = vld [vmem:[%s2247_s0 + $0x68] sm:$0xff]  ;;  %v1383_v56 = vcombine.high %v1863_v41, %v1871_v46 }
  0x35   :  { %1521 = vmatpush3.bf16.msra.mxu1 %v1427_v58  ;;  %v1420_v1 = vcombine.low %v425_v59, %v426_v62  ;;  %v457_v2 = vsel %vm201_vm2, %v73_v57, %v329_v61  ;;  %v26_v3 = vld [vmem:[%s2246_s1 + $0x34] sm:$0xf]  ;;  %vm153_vm4 = vcmp.gt.bf16.partialorder %v25_v0, 0  ;;  %v281_v4 = vmul.bf16 1045249613, %v25_v0 }
  0x36   :  { %v458_v5 = vsel %vm202_vm3, %v74_v60, %v330_v63  ;;  %vm154_vm5 = vcmp.gt.bf16.partialorder %v26_v3, 0  ;;  %v282_v6 = vmul.bf16 1045249613, %v26_v3  ;;  %v57_v7 = vld [vmem:[%s2246_s1 + $0xb0] sm:$0xf] }
  0x37   :  { %1482 = vmatprep.subr.bf16.mxu0 %v1420_v1  ;;  %v1436_v8 = vcombine.low %v457_v2, %v458_v5  ;;  %v409_v9 = vsel %vm153_vm4, %v25_v0, %v281_v4  ;;  %v58_v10 = vld [vmem:[%s2246_s1 + $0xb4] sm:$0xf]  ;;  %vm185_vm6 = vcmp.gt.bf16.partialorder %v57_v7, 0  ;;  %v313_v12 = vmul.bf16 1045249613, %v57_v7 }
  0x38   :  { %v410_v13 = vsel %vm154_vm5, %v26_v3, %v282_v6  ;;  %vm186_vm7 = vcmp.gt.bf16.partialorder %v58_v10, 0  ;;  %v314_v14 = vmul.bf16 1045249613, %v58_v10  ;;  %v43_v15 = vld [vmem:[%s2246_s1 + $0x78] sm:$0xf]  ;;  %v1385_v0 = vcombine.high %v1881_v49, %v1889_v28 }
  0x39   :  { %1522 = vmatprep.subr.bf16.mxu1 %v1436_v8  ;;  %v1412_v17 = vcombine.low %v409_v9, %v410_v13  ;;  %v441_v18 = vsel %vm185_vm6, %v57_v7, %v313_v12  ;;  %v44_v19 = vld [vmem:[%s2246_s1 + $0x7c] sm:$0xf]  ;;  %vm171_vm8 = vcmp.gt.bf16.partialorder %v43_v15, 0  ;;  %v299_v20 = vmul.bf16 1045249613, %v43_v15  ;;  %v1915_v9 = vld [vmem:[%s2247_s0 + $0x80] sm:$0xff] }
  0x3a   :  { %v442_v21 = vsel %vm186_vm7, %v58_v10, %v314_v14  ;;  %vm172_vm9 = vcmp.gt.bf16.partialorder %v44_v19, 0  ;;  %v300_v22 = vmul.bf16 1045249613, %v44_v19  ;;  %v75_v23 = vld [vmem:[%s2246_s1 + $0xf8] sm:$0xf]  ;;  %v1382_v8 = vcombine.low %v1863_v41, %v1871_v46 }
  0x3b   :  { %1483 = vmatpush3.bf16.msra.mxu0 %v1412_v17  ;;  %v1428_v24 = vcombine.low %v441_v18, %v442_v21  ;;  %v427_v25 = vsel %vm171_vm8, %v43_v15, %v299_v20  ;;  %v76_v26 = vld [vmem:[%s2246_s1 + $0xfc] sm:$0xf]  ;;  %vm203_vm10 = vcmp.gt.bf16.partialorder %v75_v23, 0  ;;  %v331_v27 = vmul.bf16 1045249613, %v75_v23  ;;  %v1923_v15 = vld [vmem:[%s2247_s0 + $0xa0] sm:$0xff] }
  0x3c   :  { %v428_v29 = vsel %vm172_vm9, %v44_v19, %v300_v22  ;;  %vm204_vm11 = vcmp.gt.bf16.partialorder %v76_v26, 0  ;;  %v332_v30 = vmul.bf16 1045249613, %v76_v26  ;;  %v27_v31 = vld [vmem:[%s2246_s1 + $0x38] sm:$0xf]  ;;  %v1384_v20 = vcombine.low %v1881_v49, %v1889_v28  ;;  %v1933_v21 = vld [vmem:[%s2247_s0 + $0x88] sm:$0xff] }
  0x3d   :  { %1523 = vmatpush3.bf16.msra.mxu1 %v1428_v24  ;;  %v1421_v32 = vcombine.low %v427_v25, %v428_v29  ;;  %v459_v34 = vsel %vm203_vm10, %v75_v23, %v331_v27  ;;  %v28_v35 = vld [vmem:[%s2246_s1 + $0x3c] sm:$0xf]  ;;  %vm155_vm12 = vcmp.gt.bf16.partialorder %v27_v31, 0  ;;  %v283_v36 = vmul.bf16 1045249613, %v27_v31 }
  0x3e   :  { %v460_v37 = vsel %vm204_vm11, %v76_v26, %v332_v30  ;;  %vm156_vm13 = vcmp.gt.bf16.partialorder %v28_v35, 0  ;;  %v284_v38 = vmul.bf16 1045249613, %v28_v35  ;;  %v59_v39 = vld [vmem:[%s2246_s1 + $0xb8] sm:$0xf]  ;;  %v1941_v26 = vld [vmem:[%s2247_s0 + $0xa8] sm:$0xff] }
  0x3f   :  { %1484 = vmatprep.subr.bf16.mxu0 %v1421_v32  ;;  %v1437_v42 = vcombine.low %v459_v34, %v460_v37  ;;  %v411_v43 = vsel %vm155_vm12, %v27_v31, %v283_v36  ;;  %v60_v44 = vld [vmem:[%s2246_s1 + $0xbc] sm:$0xf]  ;;  %vm187_vm14 = vcmp.gt.bf16.partialorder %v59_v39, 0  ;;  %v315_v45 = vmul.bf16 1045249613, %v59_v39 }
  0x40   :  { %v412_v11 = vsel %vm156_vm13, %v28_v35, %v284_v38  ;;  %vm188_vm15 = vcmp.gt.bf16.partialorder %v60_v44, 0  ;;  %v316_v16 = vmul.bf16 1045249613, %v60_v44  ;;  %v93_v48 = vld [vmem:[%s2246_s1 + $0x140] sm:$0xf]  ;;  %v1391_v31 = vcombine.high %v1915_v9, %v1923_v15 }
  0x41   :  { %1524 = vmatprep.subr.bf16.mxu1 %v1437_v42  ;;  %v1413_v50 = vcombine.low %v411_v43, %v412_v11  ;;  %v443_v51 = vsel %vm187_vm14, %v59_v39, %v315_v45  ;;  %v94_v52 = vld [vmem:[%s2246_s1 + $0x144] sm:$0xf]  ;;  %vm221_vm0 = vcmp.gt.bf16.partialorder %v93_v48, 0  ;;  %v349_v53 = vmul.bf16 1045249613, %v93_v48 }
  0x42   :  { %v444_v33 = vsel %vm188_vm15, %v60_v44, %v316_v16  ;;  %vm222_vm1 = vcmp.gt.bf16.partialorder %v94_v52, 0  ;;  %v350_v54 = vmul.bf16 1045249613, %v94_v52  ;;  %v125_v55 = vld [vmem:[%s2246_s1 + $0x1c0] sm:$0xf]  ;;  %v1390_v16 = vcombine.low %v1915_v9, %v1923_v15 }
  0x43   :  { %1485 = vmatpush3.bf16.msra.mxu0 %v1413_v50  ;;  %v1429_v57 = vcombine.low %v443_v51, %v444_v33  ;;  %v477_v58 = vsel %vm221_vm0, %v93_v48, %v349_v53  ;;  %v126_v59 = vld [vmem:[%s2246_s1 + $0x1c4] sm:$0xf]  ;;  %vm253_vm2 = vcmp.gt.bf16.partialorder %v125_v55, 0  ;;  %v381_v60 = vmul.bf16 1045249613, %v125_v55 }
  0x44   :  { %v478_v61 = vsel %vm222_vm1, %v94_v52, %v350_v54  ;;  %vm254_vm3 = vcmp.gt.bf16.partialorder %v126_v59, 0  ;;  %v382_v62 = vmul.bf16 1045249613, %v126_v59  ;;  %v77_v63 = vld [vmem:[%s2246_s1 + $0x100] sm:$0xf]  ;;  %v1392_v54 = vcombine.low %v1933_v21, %v1941_v26 }
  0x45   :  { %1525 = vmatpush3.bf16.msra.mxu1 %v1429_v57  ;;  %v1446_v1 = vcombine.low %v477_v58, %v478_v61  ;;  %v509_v2 = vsel %vm253_vm2, %v125_v55, %v381_v60  ;;  %v78_v3 = vld [vmem:[%s2246_s1 + $0x104] sm:$0xf]  ;;  %vm205_vm4 = vcmp.gt.bf16.partialorder %v77_v63, 0  ;;  %v333_v4 = vmul.bf16 1045249613, %v77_v63  ;;  %v1985_v55 = vld [vmem:[%s2247_s0 + $0xc8] sm:$0xff] }
  0x46   :  { %1134 = vmatmul.mubr.bf16.vlgmr.msra.gmra.mrb[0].mxu0 %v1374_v40  ;;  %v510_v5 = vsel %vm254_vm3, %v126_v59, %v382_v62  ;;  %vm206_vm5 = vcmp.gt.bf16.partialorder %v78_v3, 0  ;;  %v334_v6 = vmul.bf16 1045249613, %v78_v3  ;;  %v109_v7 = vld [vmem:[%s2246_s1 + $0x180] sm:$0xf]  ;;  %v1393_v40 = vcombine.high %v1933_v21, %v1941_v26  ;;  %v1993_v60 = vld [vmem:[%s2247_s0 + $0xe8] sm:$0xff] }
  0x47   :  { %1550 = vmatprep.subr.bf16.mxu0 %v1446_v1  ;;  %v1462_v10 = vcombine.low %v509_v2, %v510_v5  ;;  %v461_v12 = vsel %vm205_vm4, %v77_v63, %v333_v4  ;;  %v110_v13 = vld [vmem:[%s2246_s1 + $0x184] sm:$0xf]  ;;  %vm237_vm6 = vcmp.gt.bf16.partialorder %v109_v7, 0  ;;  %v365_v14 = vmul.bf16 1045249613, %v109_v7  ;;  %1141 = vmatprep.mubr.bf16.mxu0 %v1383_v56 }
  0x48   :  { %1199 = vmatmul.mubr.bf16.vlgmr.msra.gmra.mrb[0].mxu1 %v1376_v47  ;;  %v462_v17 = vsel %vm206_vm5, %v78_v3, %v334_v6  ;;  %vm238_vm7 = vcmp.gt.bf16.partialorder %v110_v13, 0  ;;  %v366_v18 = vmul.bf16 1045249613, %v110_v13  ;;  %v95_v19 = vld [vmem:[%s2246_s1 + $0x148] sm:$0xf]  ;;  %v1967_v47 = vld [vmem:[%s2247_s0 + $0xc0] sm:$0xff] }
  0x49   :  { %1590 = vmatprep.subr.bf16.mxu1 %v1462_v10  ;;  %v1438_v22 = vcombine.low %v461_v12, %v462_v17  ;;  %v493_v23 = vsel %vm237_vm6, %v109_v7, %v365_v14  ;;  %v96_v24 = vld [vmem:[%s2246_s1 + $0x14c] sm:$0xf]  ;;  %vm223_vm8 = vcmp.gt.bf16.partialorder %v95_v19, 0  ;;  %v351_v25 = vmul.bf16 1045249613, %v95_v19  ;;  %1206 = vmatprep.mubr.bf16.mxu1 %v1385_v0  ;;  %v1975_v52 = vld [vmem:[%s2247_s0 + $0xe0] sm:$0xff] }
  0x4a   :  { %v494_v27 = vsel %vm238_vm7, %v110_v13, %v366_v18  ;;  %vm224_vm9 = vcmp.gt.bf16.partialorder %v96_v24, 0  ;;  %v352_v29 = vmul.bf16 1045249613, %v96_v24  ;;  %v127_v30 = vld [vmem:[%s2246_s1 + $0x1c8] sm:$0xf]  ;;  %v1399_v0 = vcombine.high %v1967_v47, %v1975_v52 }
  0x4b   :  { %1551 = vmatpush3.bf16.msra.mxu0 %v1438_v22  ;;  %v1454_v32 = vcombine.low %v493_v23, %v494_v27  ;;  %v479_v34 = vsel %vm223_vm8, %v95_v19, %v351_v25  ;;  %v128_v35 = vld [vmem:[%s2246_s1 + $0x1cc] sm:$0xf]  ;;  %vm255_vm10 = vcmp.gt.bf16.partialorder %v127_v30, 0  ;;  %v383_v36 = vmul.bf16 1045249613, %v127_v30  ;;  %v2019_v19 = vld [vmem:[%s2247_s0 + $0x10] sm:$0xff] }
  0x4c   :  { %v480_v37 = vsel %vm224_vm9, %v96_v24, %v352_v29  ;;  %vm256_vm11 = vcmp.gt.bf16.partialorder %v128_v35, 0  ;;  %v384_v38 = vmul.bf16 1045249613, %v128_v35  ;;  %v79_v39 = vld [vmem:[%s2246_s1 + $0x108] sm:$0xf]  ;;  %v1398_v18 = vcombine.low %v1967_v47, %v1975_v52  ;;  %v2027_v24 = vld [vmem:[%s2247_s0 + $0x30] sm:$0xff] }
  0x4d   :  { %1591 = vmatpush3.bf16.msra.mxu1 %v1454_v32  ;;  %v1447_v41 = vcombine.low %v479_v34, %v480_v37  ;;  %v511_v42 = vsel %vm255_vm10, %v127_v30, %v383_v36  ;;  %v80_v43 = vld [vmem:[%s2246_s1 + $0x10c] sm:$0xf]  ;;  %vm207_vm12 = vcmp.gt.bf16.partialorder %v79_v39, 0  ;;  %v335_v44 = vmul.bf16 1045249613, %v79_v39  ;;  %v2037_v30 = vld [vmem:[%s2247_s0 + $0x18] sm:$0xff] }
  0x4e   :  { %v512_v45 = vsel %vm256_vm11, %v128_v35, %v384_v38  ;;  %vm208_vm13 = vcmp.gt.bf16.partialorder %v80_v43, 0  ;;  %v336_v46 = vmul.bf16 1045249613, %v80_v43  ;;  %v111_v11 = vld [vmem:[%s2246_s1 + $0x188] sm:$0xf]  ;;  %1142 = vmatmul.mubr.bf16.gmra.mrb[4].mxu0 %v1382_v8  ;;  %v1401_v8 = vcombine.high %v1985_v55, %v1993_v60  ;;  %v2045_v36 = vld [vmem:[%s2247_s0 + $0x38] sm:$0xff] }
  0x4f   :  { %1552 = vmatprep.subr.bf16.mxu0 %v1447_v41  ;;  %v1463_v48 = vcombine.low %v511_v42, %v512_v45  ;;  %v463_v49 = vsel %vm207_vm12, %v79_v39, %v335_v44  ;;  %v112_v50 = vld [vmem:[%s2246_s1 + $0x18c] sm:$0xf]  ;;  %vm239_vm14 = vcmp.gt.bf16.partialorder %v111_v11, 0  ;;  %v367_v51 = vmul.bf16 1045249613, %v111_v11  ;;  %1149 = vmatprep.mubr.bf16.mxu0 %v1391_v31 }
  0x50   :  { %v464_v53 = vsel %vm208_vm13, %v80_v43, %v336_v46  ;;  %vm240_vm15 = vcmp.gt.bf16.partialorder %v112_v50, 0  ;;  %v368_v28 = vmul.bf16 1045249613, %v112_v50  ;;  %1207 = vmatmul.mubr.bf16.gmra.mrb[4].mxu1 %v1384_v20  ;;  %v97_v33 = vld [vmem:[%s2246_s1 + $0x150] sm:$0xf]  ;;  %v1400_v29 = vcombine.low %v1985_v55, %v1993_v60 }
  0x51   :  { %1592 = vmatprep.subr.bf16.mxu1 %v1463_v48  ;;  %v1439_v56 = vcombine.low %v463_v49, %v464_v53  ;;  %v495_v57 = vsel %vm239_vm14, %v111_v11, %v367_v51  ;;  %v98_v58 = vld [vmem:[%s2246_s1 + $0x154] sm:$0xf]  ;;  %vm225_vm0 = vcmp.gt.bf16.partialorder %v97_v33, 0  ;;  %v353_v59 = vmul.bf16 1045249613, %v97_v33  ;;  %1214 = vmatprep.mubr.bf16.mxu1 %v1393_v40 }
  0x52   :  { %v496_v61 = vsel %vm240_vm15, %v112_v50, %v368_v28  ;;  %vm226_vm1 = vcmp.gt.bf16.partialorder %v98_v58, 0  ;;  %v354_v62 = vmul.bf16 1045249613, %v98_v58  ;;  %v129_v63 = vld [vmem:[%s2246_s1 + $0x1d0] sm:$0xf]  ;;  %v1379_v40 = vcombine.high %v2019_v19, %v2027_v24 }
  0x53   :  { %1553 = vmatpush3.bf16.msra.mxu0 %v1439_v56  ;;  %v1455_v1 = vcombine.low %v495_v57, %v496_v61  ;;  %v481_v2 = vsel %vm225_vm0, %v97_v33, %v353_v59  ;;  %v130_v3 = vld [vmem:[%s2246_s1 + $0x1d4] sm:$0xf]  ;;  %vm257_vm2 = vcmp.gt.bf16.partialorder %v129_v63, 0  ;;  %v385_v4 = vmul.bf16 1045249613, %v129_v63 }
  0x54   :  { %v482_v5 = vsel %vm226_vm1, %v98_v58, %v354_v62  ;;  %vm258_vm3 = vcmp.gt.bf16.partialorder %v130_v3, 0  ;;  %v386_v6 = vmul.bf16 1045249613, %v130_v3  ;;  %v81_v7 = vld [vmem:[%s2246_s1 + $0x110] sm:$0xf] }
  0x55   :  { %1593 = vmatpush3.bf16.msra.mxu1 %v1455_v1  ;;  %v1448_v9 = vcombine.low %v481_v2, %v482_v5  ;;  %v513_v10 = vsel %vm257_vm2, %v129_v63, %v385_v4  ;;  %v82_v12 = vld [vmem:[%s2246_s1 + $0x114] sm:$0xf]  ;;  %vm209_vm4 = vcmp.gt.bf16.partialorder %v81_v7, 0  ;;  %v337_v13 = vmul.bf16 1045249613, %v81_v7 }
  0x56   :  { %v514_v14 = vsel %vm258_vm3, %v130_v3, %v386_v6  ;;  %vm210_vm5 = vcmp.gt.bf16.partialorder %v82_v12, 0  ;;  %v338_v15 = vmul.bf16 1045249613, %v82_v12  ;;  %v113_v17 = vld [vmem:[%s2246_s1 + $0x190] sm:$0xf]  ;;  %1150 = vmatmul.mubr.bf16.gmra.mrb[8].mxu0 %v1390_v16  ;;  %v1381_v16 = vcombine.high %v2037_v30, %v2045_v36 }
  0x57   :  { %1554 = vmatprep.subr.bf16.mxu0 %v1448_v9  ;;  %v1464_v20 = vcombine.low %v513_v10, %v514_v14  ;;  %v465_v21 = vsel %vm209_vm4, %v81_v7, %v337_v13  ;;  %v114_v22 = vld [vmem:[%s2246_s1 + $0x194] sm:$0xf]  ;;  %vm241_vm6 = vcmp.gt.bf16.partialorder %v113_v17, 0  ;;  %v369_v23 = vmul.bf16 1045249613, %v113_v17  ;;  %1157 = vmatprep.mubr.bf16.mxu0 %v1399_v0 }
  0x58   :  { %v466_v25 = vsel %vm210_vm5, %v82_v12, %v338_v15  ;;  %vm242_vm7 = vcmp.gt.bf16.partialorder %v114_v22, 0  ;;  %v370_v26 = vmul.bf16 1045249613, %v114_v22  ;;  %v99_v27 = vld [vmem:[%s2246_s1 + $0x158] sm:$0xf]  ;;  %1215 = vmatmul.mubr.bf16.gmra.mrb[8].mxu1 %v1392_v54 }
  0x59   :  { %1594 = vmatprep.subr.bf16.mxu1 %v1464_v20  ;;  %v1440_v31 = vcombine.low %v465_v21, %v466_v25  ;;  %v497_v32 = vsel %vm241_vm6, %v113_v17, %v369_v23  ;;  %v100_v34 = vld [vmem:[%s2246_s1 + $0x15c] sm:$0xf]  ;;  %vm227_vm8 = vcmp.gt.bf16.partialorder %v99_v27, 0  ;;  %v355_v35 = vmul.bf16 1045249613, %v99_v27  ;;  %1222 = vmatprep.mubr.bf16.mxu1 %v1401_v8 }
  0x5a   :  { %v498_v37 = vsel %vm242_vm7, %v114_v22, %v370_v26  ;;  %vm228_vm9 = vcmp.gt.bf16.partialorder %v100_v34, 0  ;;  %v356_v38 = vmul.bf16 1045249613, %v100_v34  ;;  %v131_v39 = vld [vmem:[%s2246_s1 + $0x1d8] sm:$0xf] }
  0x5b   :  { %1555 = vmatpush3.bf16.msra.mxu0 %v1440_v31  ;;  %v1456_v41 = vcombine.low %v497_v32, %v498_v37  ;;  %v483_v42 = vsel %vm227_vm8, %v99_v27, %v355_v35  ;;  %v132_v43 = vld [vmem:[%s2246_s1 + $0x1dc] sm:$0xf]  ;;  %vm259_vm10 = vcmp.gt.bf16.partialorder %v131_v39, 0  ;;  %v387_v44 = vmul.bf16 1045249613, %v131_v39 }
  0x5c   :  { %v484_v45 = vsel %vm228_vm9, %v100_v34, %v356_v38  ;;  %vm260_vm11 = vcmp.gt.bf16.partialorder %v132_v43, 0  ;;  %v388_v46 = vmul.bf16 1045249613, %v132_v43  ;;  %v83_v11 = vld [vmem:[%s2246_s1 + $0x118] sm:$0xf] }
  0x5d   :  { %1595 = vmatpush3.bf16.msra.mxu1 %v1456_v41  ;;  %v1449_v47 = vcombine.low %v483_v42, %v484_v45  ;;  %v515_v48 = vsel %vm259_vm10, %v131_v39, %v387_v44  ;;  %v84_v49 = vld [vmem:[%s2246_s1 + $0x11c] sm:$0xf]  ;;  %vm211_vm12 = vcmp.gt.bf16.partialorder %v83_v11, 0  ;;  %v339_v50 = vmul.bf16 1045249613, %v83_v11 }
  0x5e   :  { %v516_v51 = vsel %vm260_vm11, %v132_v43, %v388_v46  ;;  %vm212_vm13 = vcmp.gt.bf16.partialorder %v84_v49, 0  ;;  %v340_v52 = vmul.bf16 1045249613, %v84_v49  ;;  %v115_v53 = vld [vmem:[%s2246_s1 + $0x198] sm:$0xf]  ;;  %1158 = vmatmul.mubr.bf16.gmra.mrb[12].mxu0 %v1398_v18 }
  0x5f   :  { %1556 = vmatprep.subr.bf16.mxu0 %v1449_v47  ;;  %v1465_v28 = vcombine.low %v515_v48, %v516_v51  ;;  %v467_v33 = vsel %vm211_vm12, %v83_v11, %v339_v50  ;;  %v116_v54 = vld [vmem:[%s2246_s1 + $0x19c] sm:$0xf]  ;;  %vm243_vm14 = vcmp.gt.bf16.partialorder %v115_v53, 0  ;;  %v371_v55 = vmul.bf16 1045249613, %v115_v53  ;;  %1263 = vmatprep.mubr.bf16.mxu0 %v1379_v40 }
  0x60   :  { %v468_v56 = vsel %vm212_vm13, %v84_v49, %v340_v52  ;;  %vm244_vm15 = vcmp.gt.bf16.partialorder %v116_v54, 0  ;;  %v372_v57 = vmul.bf16 1045249613, %v116_v54  ;;  %v101_v58 = vld [vmem:[%s2246_s1 + $0x160] sm:$0xf]  ;;  %1223 = vmatmul.mubr.bf16.gmra.mrb[12].mxu1 %v1400_v29 }
  0x61   :  { %1596 = vmatprep.subr.bf16.mxu1 %v1465_v28  ;;  %v1441_v59 = vcombine.low %v467_v33, %v468_v56  ;;  %v499_v60 = vsel %vm243_vm14, %v115_v53, %v371_v55  ;;  %v102_v61 = vld [vmem:[%s2246_s1 + $0x164] sm:$0xf]  ;;  %vm229_vm0 = vcmp.gt.bf16.partialorder %v101_v58, 0  ;;  %v357_v62 = vmul.bf16 1045249613, %v101_v58  ;;  %1328 = vmatprep.mubr.bf16.mxu1 %v1381_v16 }
  0x62   :  { %v500_v63 = vsel %vm244_vm15, %v116_v54, %v372_v57  ;;  %vm230_vm1 = vcmp.gt.bf16.partialorder %v102_v61, 0  ;;  %v358_v0 = vmul.bf16 1045249613, %v102_v61  ;;  %v133_v1 = vld [vmem:[%s2246_s1 + $0x1e0] sm:$0xf] }
  0x63   :  { %1557 = vmatpush3.bf16.msra.mxu0 %v1441_v59  ;;  %v1457_v2 = vcombine.low %v499_v60, %v500_v63  ;;  %v485_v3 = vsel %vm229_vm0, %v101_v58, %v357_v62  ;;  %v134_v4 = vld [vmem:[%s2246_s1 + $0x1e4] sm:$0xf]  ;;  %vm261_vm2 = vcmp.gt.bf16.partialorder %v133_v1, 0  ;;  %v389_v5 = vmul.bf16 1045249613, %v133_v1 }
  0x64   :  { %v486_v6 = vsel %vm230_vm1, %v102_v61, %v358_v0  ;;  %vm262_vm3 = vcmp.gt.bf16.partialorder %v134_v4, 0  ;;  %v390_v7 = vmul.bf16 1045249613, %v134_v4  ;;  %v85_v8 = vld [vmem:[%s2246_s1 + $0x120] sm:$0xf] }
  0x65   :  { %1597 = vmatpush3.bf16.msra.mxu1 %v1457_v2  ;;  %v1450_v9 = vcombine.low %v485_v3, %v486_v6  ;;  %v517_v10 = vsel %vm261_vm2, %v133_v1, %v389_v5  ;;  %v86_v12 = vld [vmem:[%s2246_s1 + $0x124] sm:$0xf]  ;;  %vm213_vm4 = vcmp.gt.bf16.partialorder %v85_v8, 0  ;;  %v341_v13 = vmul.bf16 1045249613, %v85_v8 }
  0x66   :  { %v518_v14 = vsel %vm262_vm3, %v134_v4, %v390_v7  ;;  %vm214_vm5 = vcmp.gt.bf16.partialorder %v86_v12, 0  ;;  %v342_v15 = vmul.bf16 1045249613, %v86_v12  ;;  %v117_v17 = vld [vmem:[%s2246_s1 + $0x1a0] sm:$0xf] }
  0x67   :  { %1558 = vmatprep.subr.bf16.mxu0 %v1450_v9  ;;  %v1466_v18 = vcombine.low %v517_v10, %v518_v14  ;;  %v469_v20 = vsel %vm213_vm4, %v85_v8, %v341_v13  ;;  %v118_v21 = vld [vmem:[%s2246_s1 + $0x1a4] sm:$0xf]  ;;  %vm245_vm6 = vcmp.gt.bf16.partialorder %v117_v17, 0  ;;  %v373_v22 = vmul.bf16 1045249613, %v117_v17 }
  0x68   :  { %v470_v23 = vsel %vm214_vm5, %v86_v12, %v342_v15  ;;  %vm246_vm7 = vcmp.gt.bf16.partialorder %v118_v21, 0  ;;  %v374_v25 = vmul.bf16 1045249613, %v118_v21  ;;  %v103_v26 = vld [vmem:[%s2246_s1 + $0x168] sm:$0xf] }
  0x69   :  { %1598 = vmatprep.subr.bf16.mxu1 %v1466_v18  ;;  %v1442_v27 = vcombine.low %v469_v20, %v470_v23  ;;  %v501_v29 = vsel %vm245_vm6, %v117_v17, %v373_v22  ;;  %v104_v31 = vld [vmem:[%s2246_s1 + $0x16c] sm:$0xf]  ;;  %vm231_vm8 = vcmp.gt.bf16.partialorder %v103_v26, 0  ;;  %v359_v32 = vmul.bf16 1045249613, %v103_v26 }
  0x6a   :  { %v502_v34 = vsel %vm246_vm7, %v118_v21, %v374_v25  ;;  %vm232_vm9 = vcmp.gt.bf16.partialorder %v104_v31, 0  ;;  %v360_v35 = vmul.bf16 1045249613, %v104_v31  ;;  %v135_v37 = vld [vmem:[%s2246_s1 + $0x1e8] sm:$0xf] }
  0x6b   :  { %1559 = vmatpush3.bf16.msra.mxu0 %v1442_v27  ;;  %v1458_v38 = vcombine.low %v501_v29, %v502_v34  ;;  %v487_v39 = vsel %vm231_vm8, %v103_v26, %v359_v32  ;;  %v136_v40 = vld [vmem:[%s2246_s1 + $0x1ec] sm:$0xf]  ;;  %vm263_vm10 = vcmp.gt.bf16.partialorder %v135_v37, 0  ;;  %v391_v41 = vmul.bf16 1045249613, %v135_v37 }
  0x6c   :  { %v488_v42 = vsel %vm232_vm9, %v104_v31, %v360_v35  ;;  %vm264_vm11 = vcmp.gt.bf16.partialorder %v136_v40, 0  ;;  %v392_v43 = vmul.bf16 1045249613, %v136_v40  ;;  %v87_v44 = vld [vmem:[%s2246_s1 + $0x128] sm:$0xf] }
  0x6d   :  { %1599 = vmatpush3.bf16.msra.mxu1 %v1458_v38  ;;  %v1451_v45 = vcombine.low %v487_v39, %v488_v42  ;;  %v519_v46 = vsel %vm263_vm10, %v135_v37, %v391_v41  ;;  %v88_v11 = vld [vmem:[%s2246_s1 + $0x12c] sm:$0xf]  ;;  %vm215_vm12 = vcmp.gt.bf16.partialorder %v87_v44, 0  ;;  %v343_v16 = vmul.bf16 1045249613, %v87_v44 }
  0x6e   :  { %v520_v47 = vsel %vm264_vm11, %v136_v40, %v392_v43  ;;  %vm216_vm13 = vcmp.gt.bf16.partialorder %v88_v11, 0  ;;  %v344_v48 = vmul.bf16 1045249613, %v88_v11  ;;  %v119_v49 = vld [vmem:[%s2246_s1 + $0x1a8] sm:$0xf] }
  0x6f   :  { %1560 = vmatprep.subr.bf16.mxu0 %v1451_v45  ;;  %v1467_v50 = vcombine.low %v519_v46, %v520_v47  ;;  %v471_v51 = vsel %vm215_vm12, %v87_v44, %v343_v16  ;;  %v120_v52 = vld [vmem:[%s2246_s1 + $0x1ac] sm:$0xf]  ;;  %vm247_vm14 = vcmp.gt.bf16.partialorder %v119_v49, 0  ;;  %v375_v53 = vmul.bf16 1045249613, %v119_v49 }
  0x70   :  { %v472_v28 = vsel %vm216_vm13, %v88_v11, %v344_v48  ;;  %vm248_vm15 = vcmp.gt.bf16.partialorder %v120_v52, 0  ;;  %v376_v33 = vmul.bf16 1045249613, %v120_v52  ;;  %v105_v54 = vld [vmem:[%s2246_s1 + $0x170] sm:$0xf] }
  0x71   :  { %1600 = vmatprep.subr.bf16.mxu1 %v1467_v50  ;;  %v1443_v55 = vcombine.low %v471_v51, %v472_v28  ;;  %v503_v56 = vsel %vm247_vm14, %v119_v49, %v375_v53  ;;  %v106_v57 = vld [vmem:[%s2246_s1 + $0x174] sm:$0xf]  ;;  %vm233_vm0 = vcmp.gt.bf16.partialorder %v105_v54, 0  ;;  %v361_v58 = vmul.bf16 1045249613, %v105_v54 }
  0x72   :  { %v504_v59 = vsel %vm248_vm15, %v120_v52, %v376_v33  ;;  %vm234_vm1 = vcmp.gt.bf16.partialorder %v106_v57, 0  ;;  %v362_v60 = vmul.bf16 1045249613, %v106_v57  ;;  %v137_v61 = vld [vmem:[%s2246_s1 + $0x1f0] sm:$0xf] }
  0x73   :  { %1561 = vmatpush3.bf16.msra.mxu0 %v1443_v55  ;;  %v1459_v62 = vcombine.low %v503_v56, %v504_v59  ;;  %v489_v63 = vsel %vm233_vm0, %v105_v54, %v361_v58  ;;  %v138_v0 = vld [vmem:[%s2246_s1 + $0x1f4] sm:$0xf]  ;;  %vm265_vm2 = vcmp.gt.bf16.partialorder %v137_v61, 0  ;;  %v393_v1 = vmul.bf16 1045249613, %v137_v61  ;;  %v536_v56 = vld [vmem:[%s2247_s0 + $0x58] sm:$0xff] }
  0x74   :  { %v490_v2 = vsel %vm234_vm1, %v106_v57, %v362_v60  ;;  %vm266_vm3 = vcmp.gt.bf16.partialorder %v138_v0, 0  ;;  %v394_v3 = vmul.bf16 1045249613, %v138_v0  ;;  %v89_v4 = vld [vmem:[%s2246_s1 + $0x130] sm:$0xf]  ;;  %v1378_v55 = vcombine.low %v2019_v19, %v2027_v24  ;;  %v540_v57 = vld [vmem:[%s2247_s0 + $0x78] sm:$0xff] }
  0x75   :  { %1601 = vmatpush3.bf16.msra.mxu1 %v1459_v62  ;;  %v1452_v5 = vcombine.low %v489_v63, %v490_v2  ;;  %v521_v6 = vsel %vm265_vm2, %v137_v61, %v393_v1  ;;  %v90_v7 = vld [vmem:[%s2246_s1 + $0x134] sm:$0xf]  ;;  %vm217_vm4 = vcmp.gt.bf16.partialorder %v89_v4, 0  ;;  %v345_v8 = vmul.bf16 1045249613, %v89_v4  ;;  %v544_v63 = vld [vmem:[%s2247_s0 + $0x98] sm:$0xff] }
  0x76   :  { %v522_v9 = vsel %vm266_vm3, %v138_v0, %v394_v3  ;;  %vm218_vm5 = vcmp.gt.bf16.partialorder %v90_v7, 0  ;;  %v346_v10 = vmul.bf16 1045249613, %v90_v7  ;;  %v121_v12 = vld [vmem:[%s2246_s1 + $0x1b0] sm:$0xf]  ;;  %v1380_v60 = vcombine.low %v2037_v30, %v2045_v36  ;;  %v548_v30 = vld [vmem:[%s2247_s0 + $0xb8] sm:$0xff] }
  0x77   :  { %1562 = vmatprep.subr.bf16.mxu0 %v1452_v5  ;;  %v1468_v13 = vcombine.low %v521_v6, %v522_v9  ;;  %v473_v14 = vsel %vm217_vm4, %v89_v4, %v345_v8  ;;  %v122_v15 = vld [vmem:[%s2246_s1 + $0x1b4] sm:$0xf]  ;;  %vm249_vm6 = vcmp.gt.bf16.partialorder %v121_v12, 0  ;;  %v377_v17 = vmul.bf16 1045249613, %v121_v12  ;;  %v552_v5 = vld [vmem:[%s2247_s0 + $0xd8] sm:$0xff] }
  0x78   :  { %v474_v18 = vsel %vm218_vm5, %v90_v7, %v346_v10  ;;  %vm250_vm7 = vcmp.gt.bf16.partialorder %v122_v15, 0  ;;  %v378_v20 = vmul.bf16 1045249613, %v122_v15  ;;  %v107_v21 = vld [vmem:[%s2246_s1 + $0x178] sm:$0xf]  ;;  %v535_v52 = vld [vmem:[%s2247_s0 + $0x50] sm:$0xff]  ;;  %v1389_v61 = vcombine.high %v536_v56, %v540_v57 }
  0x79   :  { %1602 = vmatprep.subr.bf16.mxu1 %v1468_v13  ;;  %v1444_v22 = vcombine.low %v473_v14, %v474_v18  ;;  %v505_v23 = vsel %vm249_vm6, %v121_v12, %v377_v17  ;;  %v108_v25 = vld [vmem:[%s2246_s1 + $0x17c] sm:$0xf]  ;;  %vm235_vm8 = vcmp.gt.bf16.partialorder %v107_v21, 0  ;;  %v363_v26 = vmul.bf16 1045249613, %v107_v21  ;;  %v539_v53 = vld [vmem:[%s2247_s0 + $0x70] sm:$0xff] }
  0x7a   :  { %v506_v27 = vsel %vm250_vm7, %v122_v15, %v378_v20  ;;  %vm236_vm9 = vcmp.gt.bf16.partialorder %v108_v25, 0  ;;  %v364_v29 = vmul.bf16 1045249613, %v108_v25  ;;  %v139_v31 = vld [vmem:[%s2246_s1 + $0x1f8] sm:$0xf]  ;;  %v1387_v59 = vcombine.high %v535_v52, %v539_v53  ;;  %v543_v19 = vld [vmem:[%s2247_s0 + $0x90] sm:$0xff] }
  0x7b   :  { %1563 = vmatpush3.bf16.msra.mxu0 %v1444_v22  ;;  %v1460_v32 = vcombine.low %v505_v23, %v506_v27  ;;  %v491_v34 = vsel %vm235_vm8, %v107_v21, %v363_v26  ;;  %v140_v35 = vld [vmem:[%s2246_s1 + $0x1fc] sm:$0xf]  ;;  %vm267_vm10 = vcmp.gt.bf16.partialorder %v139_v31, 0  ;;  %v395_v37 = vmul.bf16 1045249613, %v139_v31  ;;  %v547_v24 = vld [vmem:[%s2247_s0 + $0xb0] sm:$0xff] }
  0x7c   :  { %v492_v38 = vsel %vm236_vm9, %v108_v25, %v364_v29  ;;  %vm268_vm11 = vcmp.gt.bf16.partialorder %v140_v35, 0  ;;  %v396_v39 = vmul.bf16 1045249613, %v140_v35  ;;  %v91_v40 = vld [vmem:[%s2246_s1 + $0x138] sm:$0xf]  ;;  %v1386_v62 = vcombine.low %v535_v52, %v539_v53  ;;  %v551_v2 = vld [vmem:[%s2247_s0 + $0xd0] sm:$0xff] }
  0x7d   :  { %1603 = vmatpush3.bf16.msra.mxu1 %v1460_v32  ;;  %v1453_v41 = vcombine.low %v491_v34, %v492_v38  ;;  %v523_v42 = vsel %vm267_vm10, %v139_v31, %v395_v37  ;;  %v92_v43 = vld [vmem:[%s2246_s1 + $0x13c] sm:$0xf]  ;;  %vm219_vm12 = vcmp.gt.bf16.partialorder %v91_v40, 0  ;;  %v347_v44 = vmul.bf16 1045249613, %v91_v40  ;;  %v555_v3 = vld [vmem:[%s2247_s0 + $0xf0] sm:$0xff] }
  0x7e   :  { %v524_v45 = vsel %vm268_vm11, %v140_v35, %v396_v39  ;;  %vm220_vm13 = vcmp.gt.bf16.partialorder %v92_v43, 0  ;;  %v348_v46 = vmul.bf16 1045249613, %v92_v43  ;;  %v123_v11 = vld [vmem:[%s2246_s1 + $0x1b8] sm:$0xf]  ;;  %v1395_v36 = vcombine.high %v543_v19, %v547_v24 }
  0x7f   :  { %1564 = vmatprep.subr.bf16.mxu0 %v1453_v41  ;;  %v1469_v16 = vcombine.low %v523_v42, %v524_v45  ;;  %v475_v47 = vsel %vm219_vm12, %v91_v40, %v347_v44  ;;  %v124_v48 = vld [vmem:[%s2246_s1 + $0x1bc] sm:$0xf]  ;;  %vm251_vm14 = vcmp.gt.bf16.partialorder %v123_v11, 0  ;;  %v379_v49 = vmul.bf16 1045249613, %v123_v11 }
  0x80   :  { %v476_v50 = vsel %vm220_vm13, %v92_v43, %v348_v46  ;;  %vm252_vm15 = vcmp.gt.bf16.partialorder %v124_v48, 0  ;;  %v380_v51 = vmul.bf16 1045249613, %v124_v48  ;;  %v1388_v0 = vcombine.low %v536_v56, %v540_v57  ;;  %v556_v6 = vld [vmem:[%s2247_s0 + $0xf8] sm:$0xff] }
  0x81   :  { %1604 = vmatprep.subr.bf16.mxu1 %v1469_v16  ;;  %v1445_v28 = vcombine.low %v475_v47, %v476_v50  ;;  %v507_v33 = vsel %vm251_vm14, %v123_v11, %v379_v49  ;;  %v1397_v1 = vcombine.high %v544_v63, %v548_v30  ;;  %v1394_v4 = vcombine.low %v543_v19, %v547_v24 }
  0x82   :  { %v508_v54 = vsel %vm252_vm15, %v124_v48, %v380_v51  ;;  %v1403_v7 = vcombine.high %v551_v2, %v555_v3  ;;  %v1396_v8 = vcombine.low %v544_v63, %v548_v30  ;;  %v1405_v9 = vcombine.high %v552_v5, %v556_v6 }
  0x83   :  { %1565 = vmatpush3.bf16.msra.mxu0 %v1445_v28  ;;  %v1461_v58 = vcombine.low %v507_v33, %v508_v54  ;;  %v1402_v10 = vcombine.low %v551_v2, %v555_v3  ;;  %v1404_v12 = vcombine.low %v552_v5, %v556_v6  ;;  %vm1361_vm0 = vcmask 15360  }
  0x85   :  { %1605 = vmatpush3.bf16.msra.mxu1 %v1461_v58 }
  0x86   :  { %1264 = vmatmul.mubr.bf16.vlgmr.msra.gmra.mrb[16].mxu0 %v1378_v55 }
  0x87   :  { %1271 = vmatprep.mubr.bf16.mxu0 %v1387_v59 }
  0x88   :  { %1329 = vmatmul.mubr.bf16.vlgmr.msra.gmra.mrb[16].mxu1 %v1380_v60 }
  0x89   :  { %1336 = vmatprep.mubr.bf16.mxu1 %v1389_v61 }
  0x8e   :  { %1272 = vmatmul.mubr.bf16.gmra.mrb[20].mxu0 %v1386_v62 }
  0x8f   :  { %1279 = vmatprep.mubr.bf16.mxu0 %v1395_v36 }
  0x90   :  { %1337 = vmatmul.mubr.bf16.gmra.mrb[20].mxu1 %v1388_v0 }
  0x91   :  { %1344 = vmatprep.mubr.bf16.mxu1 %v1397_v1 }
  0x96   :  { %1280 = vmatmul.mubr.bf16.gmra.mrb[24].mxu0 %v1394_v4 }
  0x97   :  { %1287 = vmatprep.mubr.bf16.mxu0 %v1403_v7 }
  0x98   :  { %1345 = vmatmul.mubr.bf16.gmra.mrb[24].mxu1 %v1396_v8 }
  0x99   :  { %1352 = vmatprep.mubr.bf16.mxu1 %v1405_v9 }
  0x9e   :  { %1288 = vmatmul.mubr.bf16.gmra.mrb[28].mxu0 %v1402_v10 }
  0xa0   :  { %1353 = vmatmul.mubr.bf16.gmra.mrb[28].mxu1 %v1404_v12 }
 0x119   :  { %v1486_v13 = vpop.f32.mrb[0].mxu0 }
 0x11a   :  { %v1487_v14 = vpop.f32.mrb[1].mxu0 }
 0x11b   :  { %v1526_v15 = vpop.f32.mrb[0].mxu1  ;;  %v1488_v17 = vadd.f32 %v1487_v14, %v1486_v13  ;;  %v1489_v18 = vpop.f32.mrb[2].mxu0 }
 0x11c   :  { %v1527_v20 = vpop.f32.mrb[1].mxu1  ;;  %v1490_v21 = vpop.f32.mrb[3].mxu0 }
 0x11d   :  { %v1528_v22 = vadd.f32 %v1527_v20, %v1526_v15  ;;  %v1529_v23 = vpop.f32.mrb[2].mxu1  ;;  %v1491_v25 = vadd.f32 %v1490_v21, %v1489_v18 }
 0x11e   :  { %v1530_v26 = vpop.f32.mrb[3].mxu1 }
 0x11f   :  { %v1201_v27 = vadd.f32 %v1528_v22, %v1488_v17  ;;  %v1531_v29 = vadd.f32 %v1530_v26, %v1529_v23 }
 0x121   :  { %v1204_v31 = vadd.f32 %v1531_v29, %v1491_v25  ;;  %v1492_v32 = vpop.f32.mrb[4].mxu0 }
 0x122   :  { %v1493_v34 = vpop.f32.mrb[5].mxu0 }
 0x123   :  { %v1532_v35 = vpop.f32.mrb[4].mxu1  ;;  %v1494_v37 = vadd.f32 %v1493_v34, %v1492_v32  ;;  %v1495_v38 = vpop.f32.mrb[6].mxu0 }
 0x124   :  { %v1533_v39 = vpop.f32.mrb[5].mxu1  ;;  %v1496_v40 = vpop.f32.mrb[7].mxu0 }
 0x125   :  { %v1534_v41 = vadd.f32 %v1533_v39, %v1532_v35  ;;  %v1535_v42 = vpop.f32.mrb[6].mxu1  ;;  %v1497_v43 = vadd.f32 %v1496_v40, %v1495_v38 }
 0x126   :  { %v1536_v44 = vpop.f32.mrb[7].mxu1 }
 0x127   :  { %v1209_v45 = vadd.f32 %v1534_v41, %v1494_v37  ;;  %v1537_v46 = vadd.f32 %v1536_v44, %v1535_v42 }
 0x129   :  { %v1212_v11 = vadd.f32 %v1537_v46, %v1497_v43  ;;  %v1498_v16 = vpop.f32.mrb[8].mxu0 }
 0x12a   :  { %v1499_v47 = vpop.f32.mrb[9].mxu0 }
 0x12b   :  { %v1538_v48 = vpop.f32.mrb[8].mxu1  ;;  %v1500_v49 = vadd.f32 %v1499_v47, %v1498_v16  ;;  %v1501_v50 = vpop.f32.mrb[10].mxu0 }
 0x12c   :  { %v1539_v51 = vpop.f32.mrb[9].mxu1  ;;  %v1502_v52 = vpop.f32.mrb[11].mxu0 }
 0x12d   :  { %v1540_v53 = vadd.f32 %v1539_v51, %v1538_v48  ;;  %v1541_v28 = vpop.f32.mrb[10].mxu1  ;;  %v1503_v33 = vadd.f32 %v1502_v52, %v1501_v50 }
 0x12e   :  { %v1542_v54 = vpop.f32.mrb[11].mxu1 }
 0x12f   :  { %v1217_v55 = vadd.f32 %v1540_v53, %v1500_v49  ;;  %v1543_v56 = vadd.f32 %v1542_v54, %v1541_v28 }
 0x131   :  { %v2205_v57 = vadd.f32 %v1543_v56, %v1503_v33  ;;  %v1504_v58 = vpop.f32.mrb[12].mxu0 }
 0x132   :  { %v1505_v59 = vpop.f32.mrb[13].mxu0 }
 0x133   :  { %v1544_v60 = vpop.f32.mrb[12].mxu1  ;;  %v1506_v61 = vadd.f32 %v1505_v59, %v1504_v58  ;;  %v1507_v19 = vpop.f32.mrb[14].mxu0 }
 0x134   :  { %v1545_v24 = vpop.f32.mrb[13].mxu1  ;;  %v1508_v62 = vpop.f32.mrb[15].mxu0 }
 0x135   :  { %v1546_v63 = vadd.f32 %v1545_v24, %v1544_v60  ;;  %v1547_v30 = vpop.f32.mrb[14].mxu1  ;;  %v1509_v36 = vadd.f32 %v1508_v62, %v1507_v19 }
 0x136   :  { %v1548_v0 = vpop.f32.mrb[15].mxu1 }
 0x137   :  { %v2207_v1 = vadd.f32 %v1546_v63, %v1506_v61  ;;  %v1549_v2 = vadd.f32 %v1548_v0, %v1547_v30 }
 0x139   :  { %v2209_v3 = vadd.f32 %v1549_v2, %v1509_v36 }
 0x159   :  { %v1566_v4 = vpop.f32.mrb[16].mxu0 }
 0x15a   :  { %v1567_v5 = vpop.f32.mrb[17].mxu0 }
 0x15b   :  { %v1606_v6 = vpop.f32.mrb[16].mxu1  ;;  %v1568_v7 = vadd.f32 %v1567_v5, %v1566_v4  ;;  %v1569_v8 = vpop.f32.mrb[18].mxu0 }
 0x15c   :  { %v1607_v9 = vpop.f32.mrb[17].mxu1  ;;  %v1570_v10 = vpop.f32.mrb[19].mxu0 }
 0x15d   :  { %v1266_v12 = vadd.f32 %v1568_v7, %v1201_v27  ;;  %v1608_v13 = vadd.f32 %v1607_v9, %v1606_v6  ;;  %v1609_v14 = vpop.f32.mrb[18].mxu1  ;;  %v1571_v15 = vadd.f32 %v1570_v10, %v1569_v8 }
 0x15e   :  { %v1610_v17 = vpop.f32.mrb[19].mxu1 }
 0x15f   :  { %v1331_v18 = vadd.f32 %v1608_v13, %v1266_v12  ;;  %v1269_v20 = vadd.f32 %v1571_v15, %v1204_v31  ;;  %v1611_v21 = vadd.f32 %v1610_v17, %v1609_v14 }
 0x161   :  { %1362 = vst.msk [vmem:[%s2248_s2] sm:$0xff] %vm1361_vm0, %v1331_v18  ;;  %v1334_v22 = vadd.f32 %v1611_v21, %v1269_v20  ;;  %v1572_v23 = vpop.f32.mrb[20].mxu0 }
 0x162   :  { %v1573_v25 = vpop.f32.mrb[21].mxu0 }
 0x163   :  { %1363 = vst.msk [vmem:[%s2248_s2 + $0x8] sm:$0xff] %vm1361_vm0, %v1334_v22  ;;  %v1612_v26 = vpop.f32.mrb[20].mxu1  ;;  %v1574_v27 = vadd.f32 %v1573_v25, %v1572_v23  ;;  %v1575_v29 = vpop.f32.mrb[22].mxu0 }
 0x164   :  { %v1613_v32 = vpop.f32.mrb[21].mxu1  ;;  %v1576_v34 = vpop.f32.mrb[23].mxu0 }
 0x165   :  { %v1274_v31 = vadd.f32 %v1574_v27, %v1209_v45  ;;  %v1614_v35 = vadd.f32 %v1613_v32, %v1612_v26  ;;  %v1615_v37 = vpop.f32.mrb[22].mxu1  ;;  %v1577_v38 = vadd.f32 %v1576_v34, %v1575_v29 }
 0x166   :  { %v1616_v39 = vpop.f32.mrb[23].mxu1 }
 0x167   :  { %v1339_v40 = vadd.f32 %v1614_v35, %v1274_v31  ;;  %v1277_v41 = vadd.f32 %v1577_v38, %v1212_v11  ;;  %v1617_v42 = vadd.f32 %v1616_v39, %v1615_v37 }
 0x169   :  { %1364 = vst.msk [vmem:[%s2248_s2 + $0x10] sm:$0xff] %vm1361_vm0, %v1339_v40  ;;  %v1342_v43 = vadd.f32 %v1617_v42, %v1277_v41  ;;  %v1578_v44 = vpop.f32.mrb[24].mxu0 }
 0x16a   :  { %v1579_v46 = vpop.f32.mrb[25].mxu0 }
 0x16b   :  { %1365 = vst.msk [vmem:[%s2248_s2 + $0x18] sm:$0xff] %vm1361_vm0, %v1342_v43  ;;  %v1618_v45 = vpop.f32.mrb[24].mxu1  ;;  %v1580_v16 = vadd.f32 %v1579_v46, %v1578_v44  ;;  %v1581_v47 = vpop.f32.mrb[26].mxu0 }
 0x16c   :  { %v1619_v48 = vpop.f32.mrb[25].mxu1  ;;  %v1582_v49 = vpop.f32.mrb[27].mxu0 }
 0x16d   :  { %v1282_v11 = vadd.f32 %v1580_v16, %v1217_v55  ;;  %v1620_v50 = vadd.f32 %v1619_v48, %v1618_v45  ;;  %v1621_v51 = vpop.f32.mrb[26].mxu1  ;;  %v1583_v52 = vadd.f32 %v1582_v49, %v1581_v47 }
 0x16e   :  { %v1622_v53 = vpop.f32.mrb[27].mxu1 }
 0x16f   :  { %v1347_v28 = vadd.f32 %v1620_v50, %v1282_v11  ;;  %v1285_v33 = vadd.f32 %v1583_v52, %v2205_v57  ;;  %v1623_v54 = vadd.f32 %v1622_v53, %v1621_v51 }
 0x171   :  { %1366 = vst.msk [vmem:[%s2248_s2 + $0x20] sm:$0xff] %vm1361_vm0, %v1347_v28  ;;  %v1350_v56 = vadd.f32 %v1623_v54, %v1285_v33  ;;  %v1584_v58 = vpop.f32.mrb[28].mxu0 }
 0x172   :  { %v1585_v59 = vpop.f32.mrb[29].mxu0 }
 0x173   :  { %1367 = vst.msk [vmem:[%s2248_s2 + $0x28] sm:$0xff] %vm1361_vm0, %v1350_v56  ;;  %v1624_v55 = vpop.f32.mrb[28].mxu1  ;;  %v1586_v60 = vadd.f32 %v1585_v59, %v1584_v58  ;;  %v1587_v61 = vpop.f32.mrb[30].mxu0 }
 0x174   :  { %v1625_v19 = vpop.f32.mrb[29].mxu1  ;;  %v1588_v24 = vpop.f32.mrb[31].mxu0 }
 0x175   :  { %v1290_v57 = vadd.f32 %v1586_v60, %v2207_v1  ;;  %v1626_v62 = vadd.f32 %v1625_v19, %v1624_v55  ;;  %v1627_v63 = vpop.f32.mrb[30].mxu1  ;;  %v1589_v30 = vadd.f32 %v1588_v24, %v1587_v61 }
 0x176   :  { %v1628_v36 = vpop.f32.mrb[31].mxu1 }
 0x177   :  { %v1355_v0 = vadd.f32 %v1626_v62, %v1290_v57  ;;  %v1293_v2 = vadd.f32 %v1589_v30, %v2209_v3  ;;  %v1629_v4 = vadd.f32 %v1628_v36, %v1627_v63 }
 0x179   :  { %1368 = vst.msk [vmem:[%s2248_s2 + $0x30] sm:$0xff] %vm1361_vm0, %v1355_v0  ;;  %v1358_v5 = vadd.f32 %v1629_v4, %v1293_v2 }
 0x17b   :  { %1369 = vst.msk [vmem:[%s2248_s2 + $0x38] sm:$0xff] %vm1361_vm0, %v1358_v5 }

// kernel: _lambda_.20
= control target key start
LH: loop header
LB: loop body
LE: loop exit
PB: predicated region body
PF: predicated region fallthrough
CT: control target
= control target key end

     0   :  { %v1780_v3 = vmov 0   ;;  %vm500_vm0 = vcmask 523264   ;;  %vm1238_vm1 = vcmask 15360   ;;  %s2588_s1 = inlined_call_operand.vmem [shape: bf16[64,2], index: 1, kind: input, shape index: {}]   ;;  %s2589_s0 = inlined_call_operand.vmem [shape: bf16[1024,64], index: 0, kind: input, shape index: {}]   ;;  %s2590_s2 = inlined_call_operand.vmem [shape: f32[1024,2], index: 2, kind: output, shape index: {}]  }
   0x1   :  { %v12_v0 = vld [vmem:[%s2588_s1] sm:$0xf]  ;;  %v13_v1 = vld [vmem:[%s2588_s1 + $0x4] sm:$0xf]  ;;  %v14_v2 = vld [vmem:[%s2588_s1 + $0x8] sm:$0xf] }
   0x2   :  { %v20_v4 = vmax.bf16 %v1780_v3, %v12_v0  ;;  %v21_v5 = vmax.bf16 %v1780_v3, %v13_v1  ;;  %v15_v6 = vld [vmem:[%s2588_s1 + $0xc] sm:$0xf]  ;;  %v22_v7 = vmax.bf16 %v1780_v3, %v14_v2  ;;  %v16_v8 = vld [vmem:[%s2588_s1 + $0x10] sm:$0xf]  ;;  %v17_v9 = vld [vmem:[%s2588_s1 + $0x14] sm:$0xf] }
   0x3   :  { %v23_v10 = vmax.bf16 %v1780_v3, %v15_v6  ;;  %v18_v11 = vld [vmem:[%s2588_s1 + $0x18] sm:$0xf]  ;;  %v19_v12 = vld [vmem:[%s2588_s1 + $0x1c] sm:$0xf]  ;;  %v24_v14 = vmax.bf16 %v1780_v3, %v16_v8  ;;  %v25_v15 = vmax.bf16 %v1780_v3, %v17_v9  ;;  %v1716_v16 = vld [vmem:[%s2589_s0] sm:$0xff]  }
   0x4   :  { %v1435_v13 = vcombine.low %v20_v4, %v21_v5  ;;  %v1717_v18 = vld [vmem:[%s2589_s0 + $0x100] sm:$0xff]   ;;  %v26_v20 = vmax.bf16 %v1780_v3, %v18_v11  ;;  %v27_v21 = vmax.bf16 %v1780_v3, %v19_v12  ;;  %1579 = vmatprep.mubr.msk.bf16.mxu0 %vm500_vm0, %v1716_v16  ;;  %v1718_v23 = vld [vmem:[%s2589_s0 + $0x8] sm:$0xff]   ;;  %v1720_v25 = vld [vmem:[%s2589_s0 + $0x10] sm:$0xff]  }
   0x5   :  { %v1436_v17 = vcombine.low %v22_v7, %v23_v10  ;;  %v1437_v19 = vcombine.low %v24_v14, %v25_v15  ;;  %1643 = vmatprep.mubr.msk.bf16.mxu1 %vm500_vm0, %v1717_v18  ;;  %v1719_v24 = vld [vmem:[%s2589_s0 + $0x108] sm:$0xff]   ;;  %v1721_v26 = vld [vmem:[%s2589_s0 + $0x110] sm:$0xff]   ;;  %v1722_v27 = vld [vmem:[%s2589_s0 + $0x18] sm:$0xff]  }
   0x6   :  { %1571 = vmatprep.subr.bf16.mxu0 %v1435_v13  ;;  %1707 = vmatprep.subr.bf16.mxu1 %v1435_v13  ;;  %v1438_v22 = vcombine.low %v26_v20, %v27_v21  ;;  %v1723_v28 = vld [vmem:[%s2589_s0 + $0x118] sm:$0xff]   ;;  %v1724_v29 = vld [vmem:[%s2589_s0 + $0x20] sm:$0xff]   ;;  %v1726_v31 = vld [vmem:[%s2589_s0 + $0x28] sm:$0xff]  }
   0x7   :  { %1572 = vmatpush3.bf16.msra.mxu0 %v1435_v13  ;;  %1711 = vmatpush3.bf16.msra.mxu1 %v1435_v13  ;;  %v1725_v30 = vld [vmem:[%s2589_s0 + $0x120] sm:$0xff]   ;;  %v1727_v32 = vld [vmem:[%s2589_s0 + $0x128] sm:$0xff]   ;;  %v1728_v33 = vld [vmem:[%s2589_s0 + $0x30] sm:$0xff]  }
   0x8   :  { %1573 = vmatprep.subr.bf16.mxu0 %v1436_v17  ;;  %1708 = vmatprep.subr.bf16.mxu1 %v1436_v17  ;;  %v1729_v34 = vld [vmem:[%s2589_s0 + $0x130] sm:$0xff]   ;;  %v1730_v35 = vld [vmem:[%s2589_s0 + $0x38] sm:$0xff]   ;;  %v1732_v37 = vld [vmem:[%s2589_s0 + $0x40] sm:$0xff]  }
   0x9   :  { %v1731_v36 = vld [vmem:[%s2589_s0 + $0x138] sm:$0xff]   ;;  %v1733_v38 = vld [vmem:[%s2589_s0 + $0x140] sm:$0xff]   ;;  %v1734_v39 = vld [vmem:[%s2589_s0 + $0x48] sm:$0xff]  }
   0xa   :  { %v1735_v40 = vld [vmem:[%s2589_s0 + $0x148] sm:$0xff]   ;;  %v1736_v41 = vld [vmem:[%s2589_s0 + $0x50] sm:$0xff]   ;;  %v1738_v43 = vld [vmem:[%s2589_s0 + $0x58] sm:$0xff]  }
   0xb   :  { %1574 = vmatpush3.bf16.msra.mxu0 %v1436_v17  ;;  %1712 = vmatpush3.bf16.msra.mxu1 %v1436_v17  ;;  %v1737_v42 = vld [vmem:[%s2589_s0 + $0x150] sm:$0xff]   ;;  %v1739_v44 = vld [vmem:[%s2589_s0 + $0x158] sm:$0xff]   ;;  %v1740_v45 = vld [vmem:[%s2589_s0 + $0x60] sm:$0xff]  }
   0xc   :  { %1575 = vmatprep.subr.bf16.mxu0 %v1437_v19  ;;  %1709 = vmatprep.subr.bf16.mxu1 %v1437_v19  ;;  %v1741_v46 = vld [vmem:[%s2589_s0 + $0x160] sm:$0xff]   ;;  %v1742_v47 = vld [vmem:[%s2589_s0 + $0x68] sm:$0xff]   ;;  %v1744_v49 = vld [vmem:[%s2589_s0 + $0x70] sm:$0xff]  }
   0xd   :  { %v1743_v48 = vld [vmem:[%s2589_s0 + $0x168] sm:$0xff]   ;;  %v1745_v50 = vld [vmem:[%s2589_s0 + $0x170] sm:$0xff]   ;;  %v1746_v51 = vld [vmem:[%s2589_s0 + $0x78] sm:$0xff]  }
   0xe   :  { %v1747_v52 = vld [vmem:[%s2589_s0 + $0x178] sm:$0xff]   ;;  %v1748_v53 = vld [vmem:[%s2589_s0 + $0x80] sm:$0xff]   ;;  %v1750_v55 = vld [vmem:[%s2589_s0 + $0x88] sm:$0xff]  }
   0xf   :  { %1576 = vmatpush3.bf16.msra.mxu0 %v1437_v19  ;;  %1713 = vmatpush3.bf16.msra.mxu1 %v1437_v19  ;;  %v1749_v54 = vld [vmem:[%s2589_s0 + $0x180] sm:$0xff]   ;;  %v1751_v56 = vld [vmem:[%s2589_s0 + $0x188] sm:$0xff]   ;;  %v1752_v57 = vld [vmem:[%s2589_s0 + $0x90] sm:$0xff]  }
  0x10   :  { %1577 = vmatprep.subr.bf16.mxu0 %v1438_v22  ;;  %1710 = vmatprep.subr.bf16.mxu1 %v1438_v22  ;;  %v1753_v58 = vld [vmem:[%s2589_s0 + $0x190] sm:$0xff]   ;;  %v1754_v59 = vld [vmem:[%s2589_s0 + $0x98] sm:$0xff]   ;;  %v1756_v61 = vld [vmem:[%s2589_s0 + $0xa0] sm:$0xff]  }
  0x11   :  { %v1755_v60 = vld [vmem:[%s2589_s0 + $0x198] sm:$0xff]   ;;  %v1757_v62 = vld [vmem:[%s2589_s0 + $0x1a0] sm:$0xff]   ;;  %v1758_v63 = vld [vmem:[%s2589_s0 + $0xa8] sm:$0xff]  }
  0x12   :  { %v1759_v0 = vld [vmem:[%s2589_s0 + $0x1a8] sm:$0xff]   ;;  %v1760_v1 = vld [vmem:[%s2589_s0 + $0xb0] sm:$0xff]   ;;  %v1762_v3 = vld [vmem:[%s2589_s0 + $0xb8] sm:$0xff]  }
  0x13   :  { %1578 = vmatpush3.bf16.msra.mxu0 %v1438_v22  ;;  %1714 = vmatpush3.bf16.msra.mxu1 %v1438_v22  ;;  %v1761_v2 = vld [vmem:[%s2589_s0 + $0x1b0] sm:$0xff]   ;;  %v1763_v4 = vld [vmem:[%s2589_s0 + $0x1b8] sm:$0xff]   ;;  %v1764_v5 = vld [vmem:[%s2589_s0 + $0xc0] sm:$0xff]  }
  0x14   :  { %v1765_v6 = vld [vmem:[%s2589_s0 + $0x1c0] sm:$0xff]   ;;  %v1766_v7 = vld [vmem:[%s2589_s0 + $0xc8] sm:$0xff]   ;;  %v1768_v9 = vld [vmem:[%s2589_s0 + $0xd0] sm:$0xff]  }
  0x15   :  { %v1767_v8 = vld [vmem:[%s2589_s0 + $0x1c8] sm:$0xff]   ;;  %v1769_v10 = vld [vmem:[%s2589_s0 + $0x1d0] sm:$0xff]   ;;  %v1770_v11 = vld [vmem:[%s2589_s0 + $0xd8] sm:$0xff]  }
  0x16   :  { %1580 = vmatmul.mubr.msk.bf16.vlgmr.msra.gmra.mrb[0].mxu0 %vm500_vm0, %v1718_v23  ;;  %1644 = vmatmul.mubr.msk.bf16.vlgmr.msra.gmra.mrb[0].mxu1 %vm500_vm0, %v1719_v24  ;;  %v1771_v12 = vld [vmem:[%s2589_s0 + $0x1d8] sm:$0xff]   ;;  %v1772_v13 = vld [vmem:[%s2589_s0 + $0xe0] sm:$0xff]   ;;  %v1774_v15 = vld [vmem:[%s2589_s0 + $0xe8] sm:$0xff]  }
  0x17   :  { %1583 = vmatprep.mubr.msk.bf16.mxu0 %vm500_vm0, %v1720_v25  ;;  %1647 = vmatprep.mubr.msk.bf16.mxu1 %vm500_vm0, %v1721_v26  ;;  %v1773_v14 = vld [vmem:[%s2589_s0 + $0x1e0] sm:$0xff]   ;;  %v1775_v16 = vld [vmem:[%s2589_s0 + $0x1e8] sm:$0xff]   ;;  %v1776_v17 = vld [vmem:[%s2589_s0 + $0xf0] sm:$0xff]  }
  0x18   :  { %v1777_v18 = vld [vmem:[%s2589_s0 + $0x1f0] sm:$0xff]   ;;  %v1778_v19 = vld [vmem:[%s2589_s0 + $0xf8] sm:$0xff]  }
  0x19   :  { %v1779_v20 = vld [vmem:[%s2589_s0 + $0x1f8] sm:$0xff]  }
  0x1e   :  { %1584 = vmatmul.mubr.msk.bf16.gmra.mrb[4].mxu0 %vm500_vm0, %v1722_v27  ;;  %1648 = vmatmul.mubr.msk.bf16.gmra.mrb[4].mxu1 %vm500_vm0, %v1723_v28 }
  0x1f   :  { %1587 = vmatprep.mubr.msk.bf16.mxu0 %vm500_vm0, %v1724_v29  ;;  %1651 = vmatprep.mubr.msk.bf16.mxu1 %vm500_vm0, %v1725_v30 }
  0x26   :  { %1588 = vmatmul.mubr.msk.bf16.gmra.mrb[8].mxu0 %vm500_vm0, %v1726_v31  ;;  %1652 = vmatmul.mubr.msk.bf16.gmra.mrb[8].mxu1 %vm500_vm0, %v1727_v32 }
  0x27   :  { %1591 = vmatprep.mubr.msk.bf16.mxu0 %vm500_vm0, %v1728_v33  ;;  %1655 = vmatprep.mubr.msk.bf16.mxu1 %vm500_vm0, %v1729_v34 }
  0x2e   :  { %1592 = vmatmul.mubr.msk.bf16.gmra.mrb[12].mxu0 %vm500_vm0, %v1730_v35  ;;  %1656 = vmatmul.mubr.msk.bf16.gmra.mrb[12].mxu1 %vm500_vm0, %v1731_v36 }
  0x2f   :  { %1595 = vmatprep.mubr.msk.bf16.mxu0 %vm500_vm0, %v1732_v37  ;;  %1659 = vmatprep.mubr.msk.bf16.mxu1 %vm500_vm0, %v1733_v38 }
  0x36   :  { %1596 = vmatmul.mubr.msk.bf16.gmra.mrb[16].mxu0 %vm500_vm0, %v1734_v39  ;;  %1660 = vmatmul.mubr.msk.bf16.gmra.mrb[16].mxu1 %vm500_vm0, %v1735_v40 }
  0x37   :  { %1599 = vmatprep.mubr.msk.bf16.mxu0 %vm500_vm0, %v1736_v41  ;;  %1663 = vmatprep.mubr.msk.bf16.mxu1 %vm500_vm0, %v1737_v42 }
  0x3e   :  { %1600 = vmatmul.mubr.msk.bf16.gmra.mrb[20].mxu0 %vm500_vm0, %v1738_v43  ;;  %1664 = vmatmul.mubr.msk.bf16.gmra.mrb[20].mxu1 %vm500_vm0, %v1739_v44 }
  0x3f   :  { %1603 = vmatprep.mubr.msk.bf16.mxu0 %vm500_vm0, %v1740_v45  ;;  %1667 = vmatprep.mubr.msk.bf16.mxu1 %vm500_vm0, %v1741_v46 }
  0x46   :  { %1604 = vmatmul.mubr.msk.bf16.gmra.mrb[24].mxu0 %vm500_vm0, %v1742_v47  ;;  %1668 = vmatmul.mubr.msk.bf16.gmra.mrb[24].mxu1 %vm500_vm0, %v1743_v48 }
  0x47   :  { %1607 = vmatprep.mubr.msk.bf16.mxu0 %vm500_vm0, %v1744_v49  ;;  %1671 = vmatprep.mubr.msk.bf16.mxu1 %vm500_vm0, %v1745_v50 }
  0x4e   :  { %1608 = vmatmul.mubr.msk.bf16.gmra.mrb[28].mxu0 %vm500_vm0, %v1746_v51  ;;  %1672 = vmatmul.mubr.msk.bf16.gmra.mrb[28].mxu1 %vm500_vm0, %v1747_v52 }
  0x4f   :  { %1611 = vmatprep.mubr.msk.bf16.mxu0 %vm500_vm0, %v1748_v53  ;;  %1675 = vmatprep.mubr.msk.bf16.mxu1 %vm500_vm0, %v1749_v54 }
  0x56   :  { %1612 = vmatmul.mubr.msk.bf16.gmra.mrb[32].mxu0 %vm500_vm0, %v1750_v55  ;;  %1676 = vmatmul.mubr.msk.bf16.gmra.mrb[32].mxu1 %vm500_vm0, %v1751_v56 }
  0x57   :  { %1615 = vmatprep.mubr.msk.bf16.mxu0 %vm500_vm0, %v1752_v57  ;;  %1679 = vmatprep.mubr.msk.bf16.mxu1 %vm500_vm0, %v1753_v58 }
  0x5e   :  { %1616 = vmatmul.mubr.msk.bf16.gmra.mrb[36].mxu0 %vm500_vm0, %v1754_v59  ;;  %1680 = vmatmul.mubr.msk.bf16.gmra.mrb[36].mxu1 %vm500_vm0, %v1755_v60 }
  0x5f   :  { %1619 = vmatprep.mubr.msk.bf16.mxu0 %vm500_vm0, %v1756_v61  ;;  %1683 = vmatprep.mubr.msk.bf16.mxu1 %vm500_vm0, %v1757_v62 }
  0x66   :  { %1620 = vmatmul.mubr.msk.bf16.gmra.mrb[40].mxu0 %vm500_vm0, %v1758_v63  ;;  %1684 = vmatmul.mubr.msk.bf16.gmra.mrb[40].mxu1 %vm500_vm0, %v1759_v0 }
  0x67   :  { %1623 = vmatprep.mubr.msk.bf16.mxu0 %vm500_vm0, %v1760_v1  ;;  %1687 = vmatprep.mubr.msk.bf16.mxu1 %vm500_vm0, %v1761_v2 }
  0x6e   :  { %1624 = vmatmul.mubr.msk.bf16.gmra.mrb[44].mxu0 %vm500_vm0, %v1762_v3  ;;  %1688 = vmatmul.mubr.msk.bf16.gmra.mrb[44].mxu1 %vm500_vm0, %v1763_v4 }
  0x6f   :  { %1627 = vmatprep.mubr.msk.bf16.mxu0 %vm500_vm0, %v1764_v5  ;;  %1691 = vmatprep.mubr.msk.bf16.mxu1 %vm500_vm0, %v1765_v6 }
  0x76   :  { %1628 = vmatmul.mubr.msk.bf16.gmra.mrb[48].mxu0 %vm500_vm0, %v1766_v7  ;;  %1692 = vmatmul.mubr.msk.bf16.gmra.mrb[48].mxu1 %vm500_vm0, %v1767_v8 }
  0x77   :  { %1631 = vmatprep.mubr.msk.bf16.mxu0 %vm500_vm0, %v1768_v9  ;;  %1695 = vmatprep.mubr.msk.bf16.mxu1 %vm500_vm0, %v1769_v10 }
  0x7e   :  { %1632 = vmatmul.mubr.msk.bf16.gmra.mrb[52].mxu0 %vm500_vm0, %v1770_v11  ;;  %1696 = vmatmul.mubr.msk.bf16.gmra.mrb[52].mxu1 %vm500_vm0, %v1771_v12 }
  0x7f   :  { %1635 = vmatprep.mubr.msk.bf16.mxu0 %vm500_vm0, %v1772_v13  ;;  %1699 = vmatprep.mubr.msk.bf16.mxu1 %vm500_vm0, %v1773_v14 }
  0x86   :  { %1636 = vmatmul.mubr.msk.bf16.gmra.mrb[56].mxu0 %vm500_vm0, %v1774_v15  ;;  %1700 = vmatmul.mubr.msk.bf16.gmra.mrb[56].mxu1 %vm500_vm0, %v1775_v16 }
  0x87   :  { %1639 = vmatprep.mubr.msk.bf16.mxu0 %vm500_vm0, %v1776_v17  ;;  %1703 = vmatprep.mubr.msk.bf16.mxu1 %vm500_vm0, %v1777_v18 }
  0x8e   :  { %1640 = vmatmul.mubr.msk.bf16.gmra.mrb[60].mxu0 %vm500_vm0, %v1778_v19  ;;  %1704 = vmatmul.mubr.msk.bf16.gmra.mrb[60].mxu1 %vm500_vm0, %v1779_v20 }
  0xe9   :  { %v1581_v21 = vpop.f32.mrb[0].mxu0  ;;  %v1645_v22 = vpop.f32.mrb[0].mxu1 }
  0xea   :  { %1241 = vst.msk [vmem:[%s2590_s2 + $0x10] sm:$0xff] %vm1238_vm1, %v1581_v21  ;;  %1305 = vst.msk [vmem:[%s2590_s2 + $0x210] sm:$0xff] %vm1238_vm1, %v1645_v22  ;;  %v727_v23 = vpop.f32.mrb[1].mxu0  ;;  %v983_v24 = vpop.f32.mrb[1].mxu1 }
  0xeb   :  { %1239 = vst.msk [vmem:[%s2590_s2] sm:$0xff] %vm1238_vm1, %v727_v23  ;;  %1303 = vst.msk [vmem:[%s2590_s2 + $0x200] sm:$0xff] %vm1238_vm1, %v983_v24  ;;  %v1582_v25 = vpop.f32.mrb[2].mxu0  ;;  %v1646_v26 = vpop.f32.mrb[2].mxu1 }
  0xec   :  { %1242 = vst.msk [vmem:[%s2590_s2 + $0x18] sm:$0xff] %vm1238_vm1, %v1582_v25  ;;  %1306 = vst.msk [vmem:[%s2590_s2 + $0x218] sm:$0xff] %vm1238_vm1, %v1646_v26  ;;  %v730_v27 = vpop.f32.mrb[3].mxu0  ;;  %v986_v28 = vpop.f32.mrb[3].mxu1 }
  0xed   :  { %1240 = vst.msk [vmem:[%s2590_s2 + $0x8] sm:$0xff] %vm1238_vm1, %v730_v27  ;;  %1304 = vst.msk [vmem:[%s2590_s2 + $0x208] sm:$0xff] %vm1238_vm1, %v986_v28 }
  0xf1   :  { %v1585_v29 = vpop.f32.mrb[4].mxu0  ;;  %v1649_v30 = vpop.f32.mrb[4].mxu1 }
  0xf2   :  { %1245 = vst.msk [vmem:[%s2590_s2 + $0x30] sm:$0xff] %vm1238_vm1, %v1585_v29  ;;  %1309 = vst.msk [vmem:[%s2590_s2 + $0x230] sm:$0xff] %vm1238_vm1, %v1649_v30  ;;  %v743_v31 = vpop.f32.mrb[5].mxu0  ;;  %v999_v32 = vpop.f32.mrb[5].mxu1 }
  0xf3   :  { %1243 = vst.msk [vmem:[%s2590_s2 + $0x20] sm:$0xff] %vm1238_vm1, %v743_v31  ;;  %1307 = vst.msk [vmem:[%s2590_s2 + $0x220] sm:$0xff] %vm1238_vm1, %v999_v32  ;;  %v1586_v33 = vpop.f32.mrb[6].mxu0  ;;  %v1650_v34 = vpop.f32.mrb[6].mxu1 }
  0xf4   :  { %1246 = vst.msk [vmem:[%s2590_s2 + $0x38] sm:$0xff] %vm1238_vm1, %v1586_v33  ;;  %1310 = vst.msk [vmem:[%s2590_s2 + $0x238] sm:$0xff] %vm1238_vm1, %v1650_v34  ;;  %v746_v35 = vpop.f32.mrb[7].mxu0  ;;  %v1002_v36 = vpop.f32.mrb[7].mxu1 }
  0xf5   :  { %1244 = vst.msk [vmem:[%s2590_s2 + $0x28] sm:$0xff] %vm1238_vm1, %v746_v35  ;;  %1308 = vst.msk [vmem:[%s2590_s2 + $0x228] sm:$0xff] %vm1238_vm1, %v1002_v36 }
  0xf9   :  { %v1589_v37 = vpop.f32.mrb[8].mxu0  ;;  %v1653_v38 = vpop.f32.mrb[8].mxu1 }
  0xfa   :  { %1249 = vst.msk [vmem:[%s2590_s2 + $0x50] sm:$0xff] %vm1238_vm1, %v1589_v37  ;;  %1313 = vst.msk [vmem:[%s2590_s2 + $0x250] sm:$0xff] %vm1238_vm1, %v1653_v38  ;;  %v759_v39 = vpop.f32.mrb[9].mxu0  ;;  %v1015_v40 = vpop.f32.mrb[9].mxu1 }
  0xfb   :  { %1247 = vst.msk [vmem:[%s2590_s2 + $0x40] sm:$0xff] %vm1238_vm1, %v759_v39  ;;  %1311 = vst.msk [vmem:[%s2590_s2 + $0x240] sm:$0xff] %vm1238_vm1, %v1015_v40  ;;  %v1590_v41 = vpop.f32.mrb[10].mxu0  ;;  %v1654_v42 = vpop.f32.mrb[10].mxu1 }
  0xfc   :  { %1250 = vst.msk [vmem:[%s2590_s2 + $0x58] sm:$0xff] %vm1238_vm1, %v1590_v41  ;;  %1314 = vst.msk [vmem:[%s2590_s2 + $0x258] sm:$0xff] %vm1238_vm1, %v1654_v42  ;;  %v762_v43 = vpop.f32.mrb[11].mxu0  ;;  %v1018_v44 = vpop.f32.mrb[11].mxu1 }
  0xfd   :  { %1248 = vst.msk [vmem:[%s2590_s2 + $0x48] sm:$0xff] %vm1238_vm1, %v762_v43  ;;  %1312 = vst.msk [vmem:[%s2590_s2 + $0x248] sm:$0xff] %vm1238_vm1, %v1018_v44 }
 0x101   :  { %v1593_v45 = vpop.f32.mrb[12].mxu0  ;;  %v1657_v46 = vpop.f32.mrb[12].mxu1 }
 0x102   :  { %1253 = vst.msk [vmem:[%s2590_s2 + $0x70] sm:$0xff] %vm1238_vm1, %v1593_v45  ;;  %1317 = vst.msk [vmem:[%s2590_s2 + $0x270] sm:$0xff] %vm1238_vm1, %v1657_v46  ;;  %v775_v47 = vpop.f32.mrb[13].mxu0  ;;  %v1031_v48 = vpop.f32.mrb[13].mxu1 }
 0x103   :  { %1251 = vst.msk [vmem:[%s2590_s2 + $0x60] sm:$0xff] %vm1238_vm1, %v775_v47  ;;  %1315 = vst.msk [vmem:[%s2590_s2 + $0x260] sm:$0xff] %vm1238_vm1, %v1031_v48  ;;  %v1594_v49 = vpop.f32.mrb[14].mxu0  ;;  %v1658_v50 = vpop.f32.mrb[14].mxu1 }
 0x104   :  { %1254 = vst.msk [vmem:[%s2590_s2 + $0x78] sm:$0xff] %vm1238_vm1, %v1594_v49  ;;  %1318 = vst.msk [vmem:[%s2590_s2 + $0x278] sm:$0xff] %vm1238_vm1, %v1658_v50  ;;  %v778_v51 = vpop.f32.mrb[15].mxu0  ;;  %v1034_v52 = vpop.f32.mrb[15].mxu1 }
 0x105   :  { %1252 = vst.msk [vmem:[%s2590_s2 + $0x68] sm:$0xff] %vm1238_vm1, %v778_v51  ;;  %1316 = vst.msk [vmem:[%s2590_s2 + $0x268] sm:$0xff] %vm1238_vm1, %v1034_v52 }
 0x109   :  { %v1597_v53 = vpop.f32.mrb[16].mxu0  ;;  %v1661_v54 = vpop.f32.mrb[16].mxu1 }
 0x10a   :  { %1257 = vst.msk [vmem:[%s2590_s2 + $0x90] sm:$0xff] %vm1238_vm1, %v1597_v53  ;;  %1321 = vst.msk [vmem:[%s2590_s2 + $0x290] sm:$0xff] %vm1238_vm1, %v1661_v54  ;;  %v791_v55 = vpop.f32.mrb[17].mxu0  ;;  %v1047_v56 = vpop.f32.mrb[17].mxu1 }
 0x10b   :  { %1255 = vst.msk [vmem:[%s2590_s2 + $0x80] sm:$0xff] %vm1238_vm1, %v791_v55  ;;  %1319 = vst.msk [vmem:[%s2590_s2 + $0x280] sm:$0xff] %vm1238_vm1, %v1047_v56  ;;  %v1598_v57 = vpop.f32.mrb[18].mxu0  ;;  %v1662_v58 = vpop.f32.mrb[18].mxu1 }
 0x10c   :  { %1258 = vst.msk [vmem:[%s2590_s2 + $0x98] sm:$0xff] %vm1238_vm1, %v1598_v57  ;;  %1322 = vst.msk [vmem:[%s2590_s2 + $0x298] sm:$0xff] %vm1238_vm1, %v1662_v58  ;;  %v794_v59 = vpop.f32.mrb[19].mxu0  ;;  %v1050_v60 = vpop.f32.mrb[19].mxu1 }
 0x10d   :  { %1256 = vst.msk [vmem:[%s2590_s2 + $0x88] sm:$0xff] %vm1238_vm1, %v794_v59  ;;  %1320 = vst.msk [vmem:[%s2590_s2 + $0x288] sm:$0xff] %vm1238_vm1, %v1050_v60 }
 0x111   :  { %v1601_v61 = vpop.f32.mrb[20].mxu0  ;;  %v1665_v62 = vpop.f32.mrb[20].mxu1 }
 0x112   :  { %1261 = vst.msk [vmem:[%s2590_s2 + $0xb0] sm:$0xff] %vm1238_vm1, %v1601_v61  ;;  %1325 = vst.msk [vmem:[%s2590_s2 + $0x2b0] sm:$0xff] %vm1238_vm1, %v1665_v62  ;;  %v807_v63 = vpop.f32.mrb[21].mxu0  ;;  %v1063_v0 = vpop.f32.mrb[21].mxu1 }
 0x113   :  { %1259 = vst.msk [vmem:[%s2590_s2 + $0xa0] sm:$0xff] %vm1238_vm1, %v807_v63  ;;  %1323 = vst.msk [vmem:[%s2590_s2 + $0x2a0] sm:$0xff] %vm1238_vm1, %v1063_v0  ;;  %v1602_v1 = vpop.f32.mrb[22].mxu0  ;;  %v1666_v2 = vpop.f32.mrb[22].mxu1 }
 0x114   :  { %1262 = vst.msk [vmem:[%s2590_s2 + $0xb8] sm:$0xff] %vm1238_vm1, %v1602_v1  ;;  %1326 = vst.msk [vmem:[%s2590_s2 + $0x2b8] sm:$0xff] %vm1238_vm1, %v1666_v2  ;;  %v810_v3 = vpop.f32.mrb[23].mxu0  ;;  %v1066_v4 = vpop.f32.mrb[23].mxu1 }
 0x115   :  { %1260 = vst.msk [vmem:[%s2590_s2 + $0xa8] sm:$0xff] %vm1238_vm1, %v810_v3  ;;  %1324 = vst.msk [vmem:[%s2590_s2 + $0x2a8] sm:$0xff] %vm1238_vm1, %v1066_v4 }
 0x119   :  { %v1605_v5 = vpop.f32.mrb[24].mxu0  ;;  %v1669_v6 = vpop.f32.mrb[24].mxu1 }
 0x11a   :  { %1265 = vst.msk [vmem:[%s2590_s2 + $0xd0] sm:$0xff] %vm1238_vm1, %v1605_v5  ;;  %1329 = vst.msk [vmem:[%s2590_s2 + $0x2d0] sm:$0xff] %vm1238_vm1, %v1669_v6  ;;  %v823_v7 = vpop.f32.mrb[25].mxu0  ;;  %v1079_v8 = vpop.f32.mrb[25].mxu1 }
 0x11b   :  { %1263 = vst.msk [vmem:[%s2590_s2 + $0xc0] sm:$0xff] %vm1238_vm1, %v823_v7  ;;  %1327 = vst.msk [vmem:[%s2590_s2 + $0x2c0] sm:$0xff] %vm1238_vm1, %v1079_v8  ;;  %v1606_v9 = vpop.f32.mrb[26].mxu0  ;;  %v1670_v10 = vpop.f32.mrb[26].mxu1 }
 0x11c   :  { %1266 = vst.msk [vmem:[%s2590_s2 + $0xd8] sm:$0xff] %vm1238_vm1, %v1606_v9  ;;  %1330 = vst.msk [vmem:[%s2590_s2 + $0x2d8] sm:$0xff] %vm1238_vm1, %v1670_v10  ;;  %v826_v11 = vpop.f32.mrb[27].mxu0  ;;  %v1082_v12 = vpop.f32.mrb[27].mxu1 }
 0x11d   :  { %1264 = vst.msk [vmem:[%s2590_s2 + $0xc8] sm:$0xff] %vm1238_vm1, %v826_v11  ;;  %1328 = vst.msk [vmem:[%s2590_s2 + $0x2c8] sm:$0xff] %vm1238_vm1, %v1082_v12 }
 0x121   :  { %v1609_v13 = vpop.f32.mrb[28].mxu0  ;;  %v1673_v14 = vpop.f32.mrb[28].mxu1 }
 0x122   :  { %1269 = vst.msk [vmem:[%s2590_s2 + $0xf0] sm:$0xff] %vm1238_vm1, %v1609_v13  ;;  %1333 = vst.msk [vmem:[%s2590_s2 + $0x2f0] sm:$0xff] %vm1238_vm1, %v1673_v14  ;;  %v839_v15 = vpop.f32.mrb[29].mxu0  ;;  %v1095_v16 = vpop.f32.mrb[29].mxu1 }
 0x123   :  { %1267 = vst.msk [vmem:[%s2590_s2 + $0xe0] sm:$0xff] %vm1238_vm1, %v839_v15  ;;  %1331 = vst.msk [vmem:[%s2590_s2 + $0x2e0] sm:$0xff] %vm1238_vm1, %v1095_v16  ;;  %v1610_v17 = vpop.f32.mrb[30].mxu0  ;;  %v1674_v18 = vpop.f32.mrb[30].mxu1 }
 0x124   :  { %1270 = vst.msk [vmem:[%s2590_s2 + $0xf8] sm:$0xff] %vm1238_vm1, %v1610_v17  ;;  %1334 = vst.msk [vmem:[%s2590_s2 + $0x2f8] sm:$0xff] %vm1238_vm1, %v1674_v18  ;;  %v842_v19 = vpop.f32.mrb[31].mxu0  ;;  %v1098_v20 = vpop.f32.mrb[31].mxu1 }
 0x125   :  { %1268 = vst.msk [vmem:[%s2590_s2 + $0xe8] sm:$0xff] %vm1238_vm1, %v842_v19  ;;  %1332 = vst.msk [vmem:[%s2590_s2 + $0x2e8] sm:$0xff] %vm1238_vm1, %v1098_v20 }
 0x129   :  { %v1613_v21 = vpop.f32.mrb[32].mxu0  ;;  %v1677_v22 = vpop.f32.mrb[32].mxu1 }
 0x12a   :  { %1273 = vst.msk [vmem:[%s2590_s2 + $0x110] sm:$0xff] %vm1238_vm1, %v1613_v21  ;;  %1337 = vst.msk [vmem:[%s2590_s2 + $0x310] sm:$0xff] %vm1238_vm1, %v1677_v22  ;;  %v855_v23 = vpop.f32.mrb[33].mxu0  ;;  %v1111_v24 = vpop.f32.mrb[33].mxu1 }
 0x12b   :  { %1271 = vst.msk [vmem:[%s2590_s2 + $0x100] sm:$0xff] %vm1238_vm1, %v855_v23  ;;  %1335 = vst.msk [vmem:[%s2590_s2 + $0x300] sm:$0xff] %vm1238_vm1, %v1111_v24  ;;  %v1614_v25 = vpop.f32.mrb[34].mxu0  ;;  %v1678_v26 = vpop.f32.mrb[34].mxu1 }
 0x12c   :  { %1274 = vst.msk [vmem:[%s2590_s2 + $0x118] sm:$0xff] %vm1238_vm1, %v1614_v25  ;;  %1338 = vst.msk [vmem:[%s2590_s2 + $0x318] sm:$0xff] %vm1238_vm1, %v1678_v26  ;;  %v858_v27 = vpop.f32.mrb[35].mxu0  ;;  %v1114_v28 = vpop.f32.mrb[35].mxu1 }
 0x12d   :  { %1272 = vst.msk [vmem:[%s2590_s2 + $0x108] sm:$0xff] %vm1238_vm1, %v858_v27  ;;  %1336 = vst.msk [vmem:[%s2590_s2 + $0x308] sm:$0xff] %vm1238_vm1, %v1114_v28 }
 0x131   :  { %v1617_v29 = vpop.f32.mrb[36].mxu0  ;;  %v1681_v30 = vpop.f32.mrb[36].mxu1 }
 0x132   :  { %1277 = vst.msk [vmem:[%s2590_s2 + $0x130] sm:$0xff] %vm1238_vm1, %v1617_v29  ;;  %1341 = vst.msk [vmem:[%s2590_s2 + $0x330] sm:$0xff] %vm1238_vm1, %v1681_v30  ;;  %v871_v31 = vpop.f32.mrb[37].mxu0  ;;  %v1127_v32 = vpop.f32.mrb[37].mxu1 }
 0x133   :  { %1275 = vst.msk [vmem:[%s2590_s2 + $0x120] sm:$0xff] %vm1238_vm1, %v871_v31  ;;  %1339 = vst.msk [vmem:[%s2590_s2 + $0x320] sm:$0xff] %vm1238_vm1, %v1127_v32  ;;  %v1618_v33 = vpop.f32.mrb[38].mxu0  ;;  %v1682_v34 = vpop.f32.mrb[38].mxu1 }
 0x134   :  { %1278 = vst.msk [vmem:[%s2590_s2 + $0x138] sm:$0xff] %vm1238_vm1, %v1618_v33  ;;  %1342 = vst.msk [vmem:[%s2590_s2 + $0x338] sm:$0xff] %vm1238_vm1, %v1682_v34  ;;  %v874_v35 = vpop.f32.mrb[39].mxu0  ;;  %v1130_v36 = vpop.f32.mrb[39].mxu1 }
 0x135   :  { %1276 = vst.msk [vmem:[%s2590_s2 + $0x128] sm:$0xff] %vm1238_vm1, %v874_v35  ;;  %1340 = vst.msk [vmem:[%s2590_s2 + $0x328] sm:$0xff] %vm1238_vm1, %v1130_v36 }
 0x139   :  { %v1621_v37 = vpop.f32.mrb[40].mxu0  ;;  %v1685_v38 = vpop.f32.mrb[40].mxu1 }
 0x13a   :  { %1281 = vst.msk [vmem:[%s2590_s2 + $0x150] sm:$0xff] %vm1238_vm1, %v1621_v37  ;;  %1345 = vst.msk [vmem:[%s2590_s2 + $0x350] sm:$0xff] %vm1238_vm1, %v1685_v38  ;;  %v887_v39 = vpop.f32.mrb[41].mxu0  ;;  %v1143_v40 = vpop.f32.mrb[41].mxu1 }
 0x13b   :  { %1279 = vst.msk [vmem:[%s2590_s2 + $0x140] sm:$0xff] %vm1238_vm1, %v887_v39  ;;  %1343 = vst.msk [vmem:[%s2590_s2 + $0x340] sm:$0xff] %vm1238_vm1, %v1143_v40  ;;  %v1622_v41 = vpop.f32.mrb[42].mxu0  ;;  %v1686_v42 = vpop.f32.mrb[42].mxu1 }
 0x13c   :  { %1282 = vst.msk [vmem:[%s2590_s2 + $0x158] sm:$0xff] %vm1238_vm1, %v1622_v41  ;;  %1346 = vst.msk [vmem:[%s2590_s2 + $0x358] sm:$0xff] %vm1238_vm1, %v1686_v42  ;;  %v890_v43 = vpop.f32.mrb[43].mxu0  ;;  %v1146_v44 = vpop.f32.mrb[43].mxu1 }
 0x13d   :  { %1280 = vst.msk [vmem:[%s2590_s2 + $0x148] sm:$0xff] %vm1238_vm1, %v890_v43  ;;  %1344 = vst.msk [vmem:[%s2590_s2 + $0x348] sm:$0xff] %vm1238_vm1, %v1146_v44 }
 0x141   :  { %v1625_v45 = vpop.f32.mrb[44].mxu0  ;;  %v1689_v46 = vpop.f32.mrb[44].mxu1 }
 0x142   :  { %1285 = vst.msk [vmem:[%s2590_s2 + $0x170] sm:$0xff] %vm1238_vm1, %v1625_v45  ;;  %1349 = vst.msk [vmem:[%s2590_s2 + $0x370] sm:$0xff] %vm1238_vm1, %v1689_v46  ;;  %v903_v47 = vpop.f32.mrb[45].mxu0  ;;  %v1159_v48 = vpop.f32.mrb[45].mxu1 }
 0x143   :  { %1283 = vst.msk [vmem:[%s2590_s2 + $0x160] sm:$0xff] %vm1238_vm1, %v903_v47  ;;  %1347 = vst.msk [vmem:[%s2590_s2 + $0x360] sm:$0xff] %vm1238_vm1, %v1159_v48  ;;  %v1626_v49 = vpop.f32.mrb[46].mxu0  ;;  %v1690_v50 = vpop.f32.mrb[46].mxu1 }
 0x144   :  { %1286 = vst.msk [vmem:[%s2590_s2 + $0x178] sm:$0xff] %vm1238_vm1, %v1626_v49  ;;  %1350 = vst.msk [vmem:[%s2590_s2 + $0x378] sm:$0xff] %vm1238_vm1, %v1690_v50  ;;  %v906_v51 = vpop.f32.mrb[47].mxu0  ;;  %v1162_v52 = vpop.f32.mrb[47].mxu1 }
 0x145   :  { %1284 = vst.msk [vmem:[%s2590_s2 + $0x168] sm:$0xff] %vm1238_vm1, %v906_v51  ;;  %1348 = vst.msk [vmem:[%s2590_s2 + $0x368] sm:$0xff] %vm1238_vm1, %v1162_v52 }
 0x149   :  { %v1629_v53 = vpop.f32.mrb[48].mxu0  ;;  %v1693_v54 = vpop.f32.mrb[48].mxu1 }
 0x14a   :  { %1289 = vst.msk [vmem:[%s2590_s2 + $0x190] sm:$0xff] %vm1238_vm1, %v1629_v53  ;;  %1353 = vst.msk [vmem:[%s2590_s2 + $0x390] sm:$0xff] %vm1238_vm1, %v1693_v54  ;;  %v919_v55 = vpop.f32.mrb[49].mxu0  ;;  %v1175_v56 = vpop.f32.mrb[49].mxu1 }
 0x14b   :  { %1287 = vst.msk [vmem:[%s2590_s2 + $0x180] sm:$0xff] %vm1238_vm1, %v919_v55  ;;  %1351 = vst.msk [vmem:[%s2590_s2 + $0x380] sm:$0xff] %vm1238_vm1, %v1175_v56  ;;  %v1630_v57 = vpop.f32.mrb[50].mxu0  ;;  %v1694_v58 = vpop.f32.mrb[50].mxu1 }
 0x14c   :  { %1290 = vst.msk [vmem:[%s2590_s2 + $0x198] sm:$0xff] %vm1238_vm1, %v1630_v57  ;;  %1354 = vst.msk [vmem:[%s2590_s2 + $0x398] sm:$0xff] %vm1238_vm1, %v1694_v58  ;;  %v922_v59 = vpop.f32.mrb[51].mxu0  ;;  %v1178_v60 = vpop.f32.mrb[51].mxu1 }
 0x14d   :  { %1288 = vst.msk [vmem:[%s2590_s2 + $0x188] sm:$0xff] %vm1238_vm1, %v922_v59  ;;  %1352 = vst.msk [vmem:[%s2590_s2 + $0x388] sm:$0xff] %vm1238_vm1, %v1178_v60 }
 0x151   :  { %v1633_v61 = vpop.f32.mrb[52].mxu0  ;;  %v1697_v62 = vpop.f32.mrb[52].mxu1 }
 0x152   :  { %1293 = vst.msk [vmem:[%s2590_s2 + $0x1b0] sm:$0xff] %vm1238_vm1, %v1633_v61  ;;  %1357 = vst.msk [vmem:[%s2590_s2 + $0x3b0] sm:$0xff] %vm1238_vm1, %v1697_v62  ;;  %v935_v63 = vpop.f32.mrb[53].mxu0  ;;  %v1191_v0 = vpop.f32.mrb[53].mxu1 }
 0x153   :  { %1291 = vst.msk [vmem:[%s2590_s2 + $0x1a0] sm:$0xff] %vm1238_vm1, %v935_v63  ;;  %1355 = vst.msk [vmem:[%s2590_s2 + $0x3a0] sm:$0xff] %vm1238_vm1, %v1191_v0  ;;  %v1634_v1 = vpop.f32.mrb[54].mxu0  ;;  %v1698_v2 = vpop.f32.mrb[54].mxu1 }
 0x154   :  { %1294 = vst.msk [vmem:[%s2590_s2 + $0x1b8] sm:$0xff] %vm1238_vm1, %v1634_v1  ;;  %1358 = vst.msk [vmem:[%s2590_s2 + $0x3b8] sm:$0xff] %vm1238_vm1, %v1698_v2  ;;  %v938_v3 = vpop.f32.mrb[55].mxu0  ;;  %v1194_v4 = vpop.f32.mrb[55].mxu1 }
 0x155   :  { %1292 = vst.msk [vmem:[%s2590_s2 + $0x1a8] sm:$0xff] %vm1238_vm1, %v938_v3  ;;  %1356 = vst.msk [vmem:[%s2590_s2 + $0x3a8] sm:$0xff] %vm1238_vm1, %v1194_v4 }
 0x159   :  { %v1637_v5 = vpop.f32.mrb[56].mxu0  ;;  %v1701_v6 = vpop.f32.mrb[56].mxu1 }
 0x15a   :  { %1297 = vst.msk [vmem:[%s2590_s2 + $0x1d0] sm:$0xff] %vm1238_vm1, %v1637_v5  ;;  %1361 = vst.msk [vmem:[%s2590_s2 + $0x3d0] sm:$0xff] %vm1238_vm1, %v1701_v6  ;;  %v951_v7 = vpop.f32.mrb[57].mxu0  ;;  %v1207_v8 = vpop.f32.mrb[57].mxu1 }
 0x15b   :  { %1295 = vst.msk [vmem:[%s2590_s2 + $0x1c0] sm:$0xff] %vm1238_vm1, %v951_v7  ;;  %1359 = vst.msk [vmem:[%s2590_s2 + $0x3c0] sm:$0xff] %vm1238_vm1, %v1207_v8  ;;  %v1638_v9 = vpop.f32.mrb[58].mxu0  ;;  %v1702_v10 = vpop.f32.mrb[58].mxu1 }
 0x15c   :  { %1298 = vst.msk [vmem:[%s2590_s2 + $0x1d8] sm:$0xff] %vm1238_vm1, %v1638_v9  ;;  %1362 = vst.msk [vmem:[%s2590_s2 + $0x3d8] sm:$0xff] %vm1238_vm1, %v1702_v10  ;;  %v954_v11 = vpop.f32.mrb[59].mxu0  ;;  %v1210_v12 = vpop.f32.mrb[59].mxu1 }
 0x15d   :  { %1296 = vst.msk [vmem:[%s2590_s2 + $0x1c8] sm:$0xff] %vm1238_vm1, %v954_v11  ;;  %1360 = vst.msk [vmem:[%s2590_s2 + $0x3c8] sm:$0xff] %vm1238_vm1, %v1210_v12 }
 0x161   :  { %v1641_v13 = vpop.f32.mrb[60].mxu0  ;;  %v1705_v14 = vpop.f32.mrb[60].mxu1 }
 0x162   :  { %1301 = vst.msk [vmem:[%s2590_s2 + $0x1f0] sm:$0xff] %vm1238_vm1, %v1641_v13  ;;  %1365 = vst.msk [vmem:[%s2590_s2 + $0x3f0] sm:$0xff] %vm1238_vm1, %v1705_v14  ;;  %v967_v15 = vpop.f32.mrb[61].mxu0  ;;  %v1223_v16 = vpop.f32.mrb[61].mxu1 }
 0x163   :  { %1299 = vst.msk [vmem:[%s2590_s2 + $0x1e0] sm:$0xff] %vm1238_vm1, %v967_v15  ;;  %1363 = vst.msk [vmem:[%s2590_s2 + $0x3e0] sm:$0xff] %vm1238_vm1, %v1223_v16  ;;  %v1642_v17 = vpop.f32.mrb[62].mxu0  ;;  %v1706_v18 = vpop.f32.mrb[62].mxu1 }
 0x164   :  { %1302 = vst.msk [vmem:[%s2590_s2 + $0x1f8] sm:$0xff] %vm1238_vm1, %v1642_v17  ;;  %1366 = vst.msk [vmem:[%s2590_s2 + $0x3f8] sm:$0xff] %vm1238_vm1, %v1706_v18  ;;  %v970_v19 = vpop.f32.mrb[63].mxu0  ;;  %v1226_v20 = vpop.f32.mrb[63].mxu1 }
 0x165   :  { %1300 = vst.msk [vmem:[%s2590_s2 + $0x1e8] sm:$0xff] %vm1238_vm1, %v970_v19  ;;  %1364 = vst.msk [vmem:[%s2590_s2 + $0x3e8] sm:$0xff] %vm1238_vm1, %v1226_v20 }

// kernel: _lambda_.21
= control target key start
LH: loop header
LB: loop body
LE: loop exit
PB: predicated region body
PF: predicated region fallthrough
CT: control target
= control target key end

     0   :  { %vm16_vm0 = vcmask 64512   ;;  %s272_s0 = inlined_call_operand.vmem [shape: f32[64,8], index: 0, kind: input, shape index: {}]   ;;  %s273_s1 = inlined_call_operand.vmem [shape: f32[64,8], index: 1, kind: output, shape index: {}]  }
   0x1   :  { %v8_v0 = vld [vmem:[%s272_s0] sm:$0xff]  ;;  %v10_v1 = vld [vmem:[%s272_s0 + $0x10] sm:$0xff]  ;;  %v9_v2 = vld [vmem:[%s272_s0 + $0x8] sm:$0xff] }
   0x2   :  { %v17_v3 = vsel %vm16_vm0, %v8_v0, 0.0  ;;  %v23_v4 = vsel %vm16_vm0, %v10_v1, 0.0  ;;  %v11_v5 = vld [vmem:[%s272_s0 + $0x18] sm:$0xff]  ;;  %v20_v6 = vsel %vm16_vm0, %v9_v2, 0.0  ;;  %v12_v8 = vld [vmem:[%s272_s0 + $0x20] sm:$0xff]  ;;  %v13_v9 = vld [vmem:[%s272_s0 + $0x28] sm:$0xff] }
   0x3   :  { %18 = vadd.xlane.f32.xlu0 %v17_v3  ;;  %24 = vadd.xlane.f32.xlu1 %v23_v4  ;;  %v26_v7 = vsel %vm16_vm0, %v11_v5, 0.0  ;;  %v29_v10 = vsel %vm16_vm0, %v12_v8, 0.0  ;;  %v32_v11 = vsel %vm16_vm0, %v13_v9, 0.0  ;;  %v14_v12 = vld [vmem:[%s272_s0 + $0x30] sm:$0xff]  ;;  %v15_v13 = vld [vmem:[%s272_s0 + $0x38] sm:$0xff] }
   0x4   :  { %v35_v14 = vsel %vm16_vm0, %v14_v12, 0.0  ;;  %v38_v15 = vsel %vm16_vm0, %v15_v13, 0.0 }
   0x7   :  { %21 = vadd.xlane.f32.xlu0 %v20_v6  ;;  %27 = vadd.xlane.f32.xlu1 %v26_v7 }
   0xb   :  { %30 = vadd.xlane.f32.xlu0 %v29_v10  ;;  %33 = vadd.xlane.f32.xlu1 %v32_v11 }
   0xf   :  { %36 = vadd.xlane.f32.xlu0 %v35_v14  ;;  %39 = vadd.xlane.f32.xlu1 %v38_v15 }
  0x90   :  { %v19_v16 = vpop.xlane.xlu0 %18  ;;  %v25_v17 = vpop.xlane.xlu1 %24 }
  0x91   :  { %v42_v18 = vmul.f32 0.125, %v19_v16  ;;  %v44_v19 = vmul.f32 0.125, %v25_v17 }
  0x93   :  { %v192_v20 = vsub.f32 %v8_v0, %v42_v18  ;;  %v194_v21 = vsub.f32 %v10_v1, %v44_v19 }
  0x94   :  { %v22_v22 = vpop.xlane.xlu0 %21  ;;  %v28_v23 = vpop.xlane.xlu1 %27 }
  0x95   :  { %v43_v24 = vmul.f32 0.125, %v22_v22  ;;  %v45_v25 = vmul.f32 0.125, %v28_v23  ;;  %v58_v26 = vmul.f32 %v192_v20, %v192_v20  ;;  %v60_v27 = vmul.f32 %v194_v21, %v194_v21 }
  0x97   :  { %v200_v28 = vsub.f32 %v9_v2, %v43_v24  ;;  %v202_v29 = vsub.f32 %v11_v5, %v45_v25  ;;  %v66_v30 = vsel %vm16_vm0, %v58_v26, 0.0  ;;  %v72_v33 = vsel %vm16_vm0, %v60_v27, 0.0 }
  0x98   :  { %67 = vadd.xlane.f32.xlu0 %v66_v30  ;;  %v31_v31 = vpop.xlane.xlu0 %30  ;;  %v34_v32 = vpop.xlane.xlu1 %33 }
  0x99   :  { %v46_v34 = vmul.f32 0.125, %v31_v31  ;;  %v47_v35 = vmul.f32 0.125, %v34_v32  ;;  %v59_v36 = vmul.f32 %v200_v28, %v200_v28  ;;  %v61_v37 = vmul.f32 %v202_v29, %v202_v29 }
  0x9b   :  { %v210_v38 = vsub.f32 %v12_v8, %v46_v34  ;;  %v212_v39 = vsub.f32 %v13_v9, %v47_v35  ;;  %v69_v40 = vsel %vm16_vm0, %v59_v36, 0.0  ;;  %v75_v43 = vsel %vm16_vm0, %v61_v37, 0.0 }
  0x9c   :  { %73 = vadd.xlane.f32.xlu0 %v72_v33  ;;  %70 = vadd.xlane.f32.xlu1 %v69_v40  ;;  %v37_v41 = vpop.xlane.xlu0 %36  ;;  %v40_v42 = vpop.xlane.xlu1 %39 }
  0x9d   :  { %v48_v44 = vmul.f32 0.125, %v37_v41  ;;  %v49_v45 = vmul.f32 0.125, %v40_v42  ;;  %v62_v46 = vmul.f32 %v210_v38, %v210_v38  ;;  %v63_v47 = vmul.f32 %v212_v39, %v212_v39 }
  0x9f   :  { %v220_v48 = vsub.f32 %v14_v12, %v48_v44  ;;  %v222_v49 = vsub.f32 %v15_v13, %v49_v45  ;;  %v78_v50 = vsel %vm16_vm0, %v62_v46, 0.0  ;;  %v81_v51 = vsel %vm16_vm0, %v63_v47, 0.0 }
  0xa0   :  { %76 = vadd.xlane.f32.xlu1 %v75_v43  ;;  %79 = vadd.xlane.f32.xlu0 %v78_v50 }
  0xa1   :  { %v64_v52 = vmul.f32 %v220_v48, %v220_v48  ;;  %v65_v53 = vmul.f32 %v222_v49, %v222_v49 }
  0xa3   :  { %v84_v54 = vsel %vm16_vm0, %v64_v52, 0.0  ;;  %v87_v55 = vsel %vm16_vm0, %v65_v53, 0.0 }
  0xa4   :  { %82 = vadd.xlane.f32.xlu1 %v81_v51  ;;  %85 = vadd.xlane.f32.xlu0 %v84_v54 }
  0xa8   :  { %88 = vadd.xlane.f32.xlu1 %v87_v55 }
 0x125   :  { %v68_v56 = vpop.xlane.xlu0 %67 }
 0x126   :  { %v90_v57 = vmul.f32 0.125, %v68_v56 }
 0x128   :  { %v98_v58 = vadd.f32 1e-05, %v90_v57 }
 0x129   :  { %v71_v59 = vpop.xlane.xlu1 %70  ;;  %v74_v60 = vpop.xlane.xlu0 %73 }
 0x12a   :  { %134 = vrsqrt.f32 %v98_v58  ;;  %v91_v61 = vmul.f32 0.125, %v71_v59  ;;  %v92_v62 = vmul.f32 0.125, %v74_v60 }
 0x12c   :  { %v99_v63 = vadd.f32 1e-05, %v91_v61  ;;  %v100_v0 = vadd.f32 1e-05, %v92_v62 }
 0x12d   :  { %v77_v1 = vpop.xlane.xlu1 %76  ;;  %v80_v2 = vpop.xlane.xlu0 %79 }
 0x12e   :  { %136 = vrsqrt.f32 %v99_v63  ;;  %v93_v3 = vmul.f32 0.125, %v77_v1  ;;  %v94_v4 = vmul.f32 0.125, %v80_v2 }
 0x12f   :  { %138 = vrsqrt.f32 %v100_v0 }
 0x130   :  { %v101_v5 = vadd.f32 1e-05, %v93_v3  ;;  %v102_v6 = vadd.f32 1e-05, %v94_v4 }
 0x131   :  { %v83_v7 = vpop.xlane.xlu1 %82  ;;  %v86_v8 = vpop.xlane.xlu0 %85 }
 0x132   :  { %140 = vrsqrt.f32 %v101_v5  ;;  %v95_v9 = vmul.f32 0.125, %v83_v7  ;;  %v96_v10 = vmul.f32 0.125, %v86_v8 }
 0x133   :  { %142 = vrsqrt.f32 %v102_v6 }
 0x134   :  { %v135_v11 = vpop.eup %134  ;;  %v103_v12 = vadd.f32 1e-05, %v95_v9  ;;  %v104_v13 = vadd.f32 1e-05, %v96_v10 }
 0x135   :  { %v114_v14 = vmul.f32 %v135_v11, %v192_v20  ;;  %v89_v15 = vpop.xlane.xlu1 %88 }
 0x136   :  { %144 = vrsqrt.f32 %v103_v12  ;;  %v97_v16 = vmul.f32 0.125, %v89_v15 }
 0x137   :  { %122 = vst.msk [vmem:[%s273_s1] sm:$0xff] %vm16_vm0, %v114_v14  ;;  %146 = vrsqrt.f32 %v104_v13 }
 0x138   :  { %v137_v17 = vpop.eup %136  ;;  %v105_v18 = vadd.f32 1e-05, %v97_v16 }
 0x139   :  { %v139_v19 = vpop.eup %138  ;;  %v115_v22 = vmul.f32 %v137_v17, %v200_v28 }
 0x13a   :  { %v116_v23 = vmul.f32 %v139_v19, %v194_v21  ;;  %148 = vrsqrt.f32 %v105_v18 }
 0x13b   :  { %123 = vst.msk [vmem:[%s273_s1 + $0x8] sm:$0xff] %vm16_vm0, %v115_v22 }
 0x13c   :  { %v141_v20 = vpop.eup %140  ;;  %124 = vst.msk [vmem:[%s273_s1 + $0x10] sm:$0xff] %vm16_vm0, %v116_v23 }
 0x13d   :  { %v143_v24 = vpop.eup %142  ;;  %v117_v25 = vmul.f32 %v141_v20, %v202_v29 }
 0x13e   :  { %v118_v26 = vmul.f32 %v143_v24, %v210_v38 }
 0x13f   :  { %125 = vst.msk [vmem:[%s273_s1 + $0x18] sm:$0xff] %vm16_vm0, %v117_v25 }
 0x140   :  { %v145_v21 = vpop.eup %144  ;;  %126 = vst.msk [vmem:[%s273_s1 + $0x20] sm:$0xff] %vm16_vm0, %v118_v26 }
 0x141   :  { %v147_v27 = vpop.eup %146  ;;  %v119_v28 = vmul.f32 %v145_v21, %v212_v39 }
 0x142   :  { %v120_v30 = vmul.f32 %v147_v27, %v220_v48 }
 0x143   :  { %127 = vst.msk [vmem:[%s273_s1 + $0x28] sm:$0xff] %vm16_vm0, %v119_v28 }
 0x144   :  { %v149_v29 = vpop.eup %148  ;;  %128 = vst.msk [vmem:[%s273_s1 + $0x30] sm:$0xff] %vm16_vm0, %v120_v30 }
 0x145   :  { %v121_v31 = vmul.f32 %v149_v29, %v222_v49 }
 0x147   :  { %129 = vst.msk [vmem:[%s273_s1 + $0x38] sm:$0xff] %vm16_vm0, %v121_v31 }

// kernel: _lambda_.22
= control target key start
LH: loop header
LB: loop body
LE: loop exit
PB: predicated region body
PF: predicated region fallthrough
CT: control target
= control target key end

     0   :  { %v915_v3 = vmov 0   ;;  %vm637_vm0 = vcmask 64512   ;;  %s1347_s1 = inlined_call_operand.vmem [shape: bf16[128,8], index: 1, kind: input, shape index: {}]   ;;  %s1348_s0 = inlined_call_operand.vmem [shape: bf16[512,128], index: 0, kind: input, shape index: {}]   ;;  %s1349_s2 = inlined_call_operand.vmem [shape: f32[512,8], index: 2, kind: output, shape index: {}]  }
   0x1   :  { %v12_v0 = vld [vmem:[%s1347_s1] sm:$0xf]  ;;  %v13_v1 = vld [vmem:[%s1347_s1 + $0x4] sm:$0xf]  ;;  %v14_v2 = vld [vmem:[%s1347_s1 + $0x8] sm:$0xf] }
   0x2   :  { %v28_v4 = vmax.bf16 %v915_v3, %v12_v0  ;;  %v29_v5 = vmax.bf16 %v915_v3, %v13_v1  ;;  %v15_v6 = vld [vmem:[%s1347_s1 + $0xc] sm:$0xf]  ;;  %v30_v7 = vmax.bf16 %v915_v3, %v14_v2  ;;  %v16_v8 = vld [vmem:[%s1347_s1 + $0x10] sm:$0xf]  ;;  %v17_v9 = vld [vmem:[%s1347_s1 + $0x14] sm:$0xf] }
   0x3   :  { %v31_v10 = vmax.bf16 %v915_v3, %v15_v6  ;;  %v32_v12 = vmax.bf16 %v915_v3, %v16_v8  ;;  %v33_v13 = vmax.bf16 %v915_v3, %v17_v9  ;;  %v18_v15 = vld [vmem:[%s1347_s1 + $0x18] sm:$0xf]  ;;  %v19_v16 = vld [vmem:[%s1347_s1 + $0x1c] sm:$0xf]  ;;  %v20_v17 = vld [vmem:[%s1347_s1 + $0x20] sm:$0xf] }
   0x4   :  { %v738_v11 = vcombine.low %v28_v4, %v29_v5  ;;  %v883_v18 = vld [vmem:[%s1348_s0] sm:$0xff]   ;;  %v34_v20 = vmax.bf16 %v915_v3, %v18_v15  ;;  %v35_v21 = vmax.bf16 %v915_v3, %v19_v16  ;;  %v36_v25 = vmax.bf16 %v915_v3, %v20_v17  ;;  %v22_v27 = vld [vmem:[%s1347_s1 + $0x28] sm:$0xf]  ;;  %v23_v28 = vld [vmem:[%s1347_s1 + $0x2c] sm:$0xf] }
   0x5   :  { %v739_v14 = vcombine.low %v30_v7, %v31_v10  ;;  %v740_v19 = vcombine.low %v32_v12, %v33_v13  ;;  %v884_v22 = vld [vmem:[%s1348_s0 + $0x80] sm:$0xff]   ;;  %802 = vmatprep.mubr.bf16.mxu0 %v883_v18  ;;  %v38_v30 = vmax.bf16 %v915_v3, %v22_v27  ;;  %v39_v31 = vmax.bf16 %v915_v3, %v23_v28  ;;  %v24_v32 = vld [vmem:[%s1347_s1 + $0x30] sm:$0xf]  ;;  %v25_v33 = vld [vmem:[%s1347_s1 + $0x34] sm:$0xf] }
   0x6   :  { %786 = vmatprep.subr.bf16.mxu0 %v738_v11  ;;  %866 = vmatprep.subr.bf16.mxu1 %v738_v11  ;;  %v21_v23 = vld [vmem:[%s1347_s1 + $0x24] sm:$0xf]  ;;  %v741_v24 = vcombine.low %v34_v20, %v35_v21  ;;  %v40_v35 = vmax.bf16 %v915_v3, %v24_v32  ;;  %v41_v36 = vmax.bf16 %v915_v3, %v25_v33  ;;  %v26_v37 = vld [vmem:[%s1347_s1 + $0x38] sm:$0xf]  ;;  %v27_v38 = vld [vmem:[%s1347_s1 + $0x3c] sm:$0xf] }
   0x7   :  { %787 = vmatpush3.bf16.msra.mxu0 %v738_v11  ;;  %874 = vmatpush3.bf16.msra.mxu1 %v738_v11  ;;  %v37_v26 = vmax.bf16 %v915_v3, %v21_v23  ;;  %v743_v34 = vcombine.low %v38_v30, %v39_v31  ;;  %v42_v40 = vmax.bf16 %v915_v3, %v26_v37  ;;  %v885_v43 = vld [vmem:[%s1348_s0 + $0x8] sm:$0xff]   ;;  %v887_v45 = vld [vmem:[%s1348_s0 + $0x10] sm:$0xff]   ;;  %v889_v47 = vld [vmem:[%s1348_s0 + $0x18] sm:$0xff]  }
   0x8   :  { %788 = vmatprep.subr.bf16.mxu0 %v739_v14  ;;  %867 = vmatprep.subr.bf16.mxu1 %v739_v14  ;;  %v744_v39 = vcombine.low %v40_v35, %v41_v36  ;;  %v43_v41 = vmax.bf16 %v915_v3, %v27_v38  ;;  %v886_v44 = vld [vmem:[%s1348_s0 + $0x88] sm:$0xff]   ;;  %v888_v46 = vld [vmem:[%s1348_s0 + $0x90] sm:$0xff]   ;;  %v890_v48 = vld [vmem:[%s1348_s0 + $0x98] sm:$0xff]  }
   0x9   :  { %834 = vmatprep.mubr.bf16.mxu1 %v884_v22  ;;  %v742_v29 = vcombine.low %v36_v25, %v37_v26  ;;  %v891_v49 = vld [vmem:[%s1348_s0 + $0x20] sm:$0xff]   ;;  %v893_v51 = vld [vmem:[%s1348_s0 + $0x28] sm:$0xff]   ;;  %v895_v53 = vld [vmem:[%s1348_s0 + $0x30] sm:$0xff]  }
   0xa   :  { %v745_v42 = vcombine.low %v42_v40, %v43_v41  ;;  %v892_v50 = vld [vmem:[%s1348_s0 + $0xa0] sm:$0xff]   ;;  %v894_v52 = vld [vmem:[%s1348_s0 + $0xa8] sm:$0xff]   ;;  %v896_v54 = vld [vmem:[%s1348_s0 + $0xb0] sm:$0xff]  }
   0xb   :  { %789 = vmatpush3.bf16.msra.mxu0 %v739_v14  ;;  %875 = vmatpush3.bf16.msra.mxu1 %v739_v14  ;;  %v897_v55 = vld [vmem:[%s1348_s0 + $0x38] sm:$0xff]   ;;  %v899_v57 = vld [vmem:[%s1348_s0 + $0x40] sm:$0xff]   ;;  %v901_v59 = vld [vmem:[%s1348_s0 + $0x48] sm:$0xff]  }
   0xc   :  { %790 = vmatprep.subr.bf16.mxu0 %v740_v19  ;;  %868 = vmatprep.subr.bf16.mxu1 %v740_v19  ;;  %v898_v56 = vld [vmem:[%s1348_s0 + $0xb8] sm:$0xff]   ;;  %v900_v58 = vld [vmem:[%s1348_s0 + $0xc0] sm:$0xff]   ;;  %v902_v60 = vld [vmem:[%s1348_s0 + $0xc8] sm:$0xff]  }
   0xd   :  { %v903_v61 = vld [vmem:[%s1348_s0 + $0x50] sm:$0xff]   ;;  %v905_v63 = vld [vmem:[%s1348_s0 + $0x58] sm:$0xff]   ;;  %v907_v1 = vld [vmem:[%s1348_s0 + $0x60] sm:$0xff]  }
   0xe   :  { %v904_v62 = vld [vmem:[%s1348_s0 + $0xd0] sm:$0xff]   ;;  %v906_v0 = vld [vmem:[%s1348_s0 + $0xd8] sm:$0xff]   ;;  %v908_v2 = vld [vmem:[%s1348_s0 + $0xe0] sm:$0xff]  }
   0xf   :  { %791 = vmatpush3.bf16.msra.mxu0 %v740_v19  ;;  %876 = vmatpush3.bf16.msra.mxu1 %v740_v19  ;;  %v909_v3 = vld [vmem:[%s1348_s0 + $0x68] sm:$0xff]   ;;  %v911_v5 = vld [vmem:[%s1348_s0 + $0x70] sm:$0xff]   ;;  %v913_v7 = vld [vmem:[%s1348_s0 + $0x78] sm:$0xff]  }
  0x10   :  { %792 = vmatprep.subr.bf16.mxu0 %v741_v24  ;;  %869 = vmatprep.subr.bf16.mxu1 %v741_v24  ;;  %v910_v4 = vld [vmem:[%s1348_s0 + $0xe8] sm:$0xff]   ;;  %v912_v6 = vld [vmem:[%s1348_s0 + $0xf0] sm:$0xff]   ;;  %v914_v8 = vld [vmem:[%s1348_s0 + $0xf8] sm:$0xff]  }
  0x13   :  { %793 = vmatpush3.bf16.msra.mxu0 %v741_v24  ;;  %877 = vmatpush3.bf16.msra.mxu1 %v741_v24 }
  0x14   :  { %794 = vmatprep.subr.bf16.mxu0 %v742_v29  ;;  %870 = vmatprep.subr.bf16.mxu1 %v742_v29 }
  0x17   :  { %795 = vmatpush3.bf16.msra.mxu0 %v742_v29  ;;  %878 = vmatpush3.bf16.msra.mxu1 %v742_v29 }
  0x18   :  { %796 = vmatprep.subr.bf16.mxu0 %v743_v34  ;;  %871 = vmatprep.subr.bf16.mxu1 %v743_v34 }
  0x1b   :  { %797 = vmatpush3.bf16.msra.mxu0 %v743_v34  ;;  %879 = vmatpush3.bf16.msra.mxu1 %v743_v34 }
  0x1c   :  { %798 = vmatprep.subr.bf16.mxu0 %v744_v39  ;;  %872 = vmatprep.subr.bf16.mxu1 %v744_v39 }
  0x1f   :  { %799 = vmatpush3.bf16.msra.mxu0 %v744_v39  ;;  %880 = vmatpush3.bf16.msra.mxu1 %v744_v39 }
  0x20   :  { %800 = vmatprep.subr.bf16.mxu0 %v745_v42  ;;  %873 = vmatprep.subr.bf16.mxu1 %v745_v42 }
  0x23   :  { %801 = vmatpush3.bf16.msra.mxu0 %v745_v42  ;;  %881 = vmatpush3.bf16.msra.mxu1 %v745_v42 }
  0x26   :  { %803 = vmatmul.mubr.bf16.vlgmr.msra.gmra.mrb[0].mxu0 %v885_v43  ;;  %835 = vmatmul.mubr.bf16.vlgmr.msra.gmra.mrb[0].mxu1 %v886_v44 }
  0x27   :  { %806 = vmatprep.mubr.bf16.mxu0 %v887_v45  ;;  %838 = vmatprep.mubr.bf16.mxu1 %v888_v46 }
  0x2e   :  { %807 = vmatmul.mubr.bf16.gmra.mrb[4].mxu0 %v889_v47  ;;  %839 = vmatmul.mubr.bf16.gmra.mrb[4].mxu1 %v890_v48 }
  0x2f   :  { %810 = vmatprep.mubr.bf16.mxu0 %v891_v49  ;;  %842 = vmatprep.mubr.bf16.mxu1 %v892_v50 }
  0x36   :  { %811 = vmatmul.mubr.bf16.gmra.mrb[8].mxu0 %v893_v51  ;;  %843 = vmatmul.mubr.bf16.gmra.mrb[8].mxu1 %v894_v52 }
  0x37   :  { %814 = vmatprep.mubr.bf16.mxu0 %v895_v53  ;;  %846 = vmatprep.mubr.bf16.mxu1 %v896_v54 }
  0x3e   :  { %815 = vmatmul.mubr.bf16.gmra.mrb[12].mxu0 %v897_v55  ;;  %847 = vmatmul.mubr.bf16.gmra.mrb[12].mxu1 %v898_v56 }
  0x3f   :  { %818 = vmatprep.mubr.bf16.mxu0 %v899_v57  ;;  %850 = vmatprep.mubr.bf16.mxu1 %v900_v58 }
  0x46   :  { %819 = vmatmul.mubr.bf16.gmra.mrb[16].mxu0 %v901_v59  ;;  %851 = vmatmul.mubr.bf16.gmra.mrb[16].mxu1 %v902_v60 }
  0x47   :  { %822 = vmatprep.mubr.bf16.mxu0 %v903_v61  ;;  %854 = vmatprep.mubr.bf16.mxu1 %v904_v62 }
  0x4e   :  { %823 = vmatmul.mubr.bf16.gmra.mrb[20].mxu0 %v905_v63  ;;  %855 = vmatmul.mubr.bf16.gmra.mrb[20].mxu1 %v906_v0 }
  0x4f   :  { %826 = vmatprep.mubr.bf16.mxu0 %v907_v1  ;;  %858 = vmatprep.mubr.bf16.mxu1 %v908_v2 }
  0x56   :  { %827 = vmatmul.mubr.bf16.gmra.mrb[24].mxu0 %v909_v3  ;;  %859 = vmatmul.mubr.bf16.gmra.mrb[24].mxu1 %v910_v4 }
  0x57   :  { %830 = vmatprep.mubr.bf16.mxu0 %v911_v5  ;;  %862 = vmatprep.mubr.bf16.mxu1 %v912_v6 }
  0x5e   :  { %831 = vmatmul.mubr.bf16.gmra.mrb[28].mxu0 %v913_v7  ;;  %863 = vmatmul.mubr.bf16.gmra.mrb[28].mxu1 %v914_v8 }
  0xf9   :  { %v804_v9 = vpop.f32.mrb[0].mxu0  ;;  %v836_v10 = vpop.f32.mrb[0].mxu1 }
  0xfa   :  { %640 = vst.msk [vmem:[%s1349_s2 + $0x10] sm:$0xff] %vm637_vm0, %v804_v9  ;;  %672 = vst.msk [vmem:[%s1349_s2 + $0x110] sm:$0xff] %vm637_vm0, %v836_v10  ;;  %v382_v11 = vpop.f32.mrb[1].mxu0  ;;  %v510_v12 = vpop.f32.mrb[1].mxu1 }
  0xfb   :  { %638 = vst.msk [vmem:[%s1349_s2] sm:$0xff] %vm637_vm0, %v382_v11  ;;  %670 = vst.msk [vmem:[%s1349_s2 + $0x100] sm:$0xff] %vm637_vm0, %v510_v12  ;;  %v805_v13 = vpop.f32.mrb[2].mxu0  ;;  %v837_v14 = vpop.f32.mrb[2].mxu1 }
  0xfc   :  { %641 = vst.msk [vmem:[%s1349_s2 + $0x18] sm:$0xff] %vm637_vm0, %v805_v13  ;;  %673 = vst.msk [vmem:[%s1349_s2 + $0x118] sm:$0xff] %vm637_vm0, %v837_v14  ;;  %v385_v15 = vpop.f32.mrb[3].mxu0  ;;  %v513_v16 = vpop.f32.mrb[3].mxu1 }
  0xfd   :  { %639 = vst.msk [vmem:[%s1349_s2 + $0x8] sm:$0xff] %vm637_vm0, %v385_v15  ;;  %671 = vst.msk [vmem:[%s1349_s2 + $0x108] sm:$0xff] %vm637_vm0, %v513_v16 }
 0x101   :  { %v808_v17 = vpop.f32.mrb[4].mxu0  ;;  %v840_v18 = vpop.f32.mrb[4].mxu1 }
 0x102   :  { %644 = vst.msk [vmem:[%s1349_s2 + $0x30] sm:$0xff] %vm637_vm0, %v808_v17  ;;  %676 = vst.msk [vmem:[%s1349_s2 + $0x130] sm:$0xff] %vm637_vm0, %v840_v18  ;;  %v398_v19 = vpop.f32.mrb[5].mxu0  ;;  %v526_v20 = vpop.f32.mrb[5].mxu1 }
 0x103   :  { %642 = vst.msk [vmem:[%s1349_s2 + $0x20] sm:$0xff] %vm637_vm0, %v398_v19  ;;  %674 = vst.msk [vmem:[%s1349_s2 + $0x120] sm:$0xff] %vm637_vm0, %v526_v20  ;;  %v809_v21 = vpop.f32.mrb[6].mxu0  ;;  %v841_v22 = vpop.f32.mrb[6].mxu1 }
 0x104   :  { %645 = vst.msk [vmem:[%s1349_s2 + $0x38] sm:$0xff] %vm637_vm0, %v809_v21  ;;  %677 = vst.msk [vmem:[%s1349_s2 + $0x138] sm:$0xff] %vm637_vm0, %v841_v22  ;;  %v401_v23 = vpop.f32.mrb[7].mxu0  ;;  %v529_v24 = vpop.f32.mrb[7].mxu1 }
 0x105   :  { %643 = vst.msk [vmem:[%s1349_s2 + $0x28] sm:$0xff] %vm637_vm0, %v401_v23  ;;  %675 = vst.msk [vmem:[%s1349_s2 + $0x128] sm:$0xff] %vm637_vm0, %v529_v24 }
 0x109   :  { %v812_v25 = vpop.f32.mrb[8].mxu0  ;;  %v844_v26 = vpop.f32.mrb[8].mxu1 }
 0x10a   :  { %648 = vst.msk [vmem:[%s1349_s2 + $0x50] sm:$0xff] %vm637_vm0, %v812_v25  ;;  %680 = vst.msk [vmem:[%s1349_s2 + $0x150] sm:$0xff] %vm637_vm0, %v844_v26  ;;  %v414_v27 = vpop.f32.mrb[9].mxu0  ;;  %v542_v28 = vpop.f32.mrb[9].mxu1 }
 0x10b   :  { %646 = vst.msk [vmem:[%s1349_s2 + $0x40] sm:$0xff] %vm637_vm0, %v414_v27  ;;  %678 = vst.msk [vmem:[%s1349_s2 + $0x140] sm:$0xff] %vm637_vm0, %v542_v28  ;;  %v813_v29 = vpop.f32.mrb[10].mxu0  ;;  %v845_v30 = vpop.f32.mrb[10].mxu1 }
 0x10c   :  { %649 = vst.msk [vmem:[%s1349_s2 + $0x58] sm:$0xff] %vm637_vm0, %v813_v29  ;;  %681 = vst.msk [vmem:[%s1349_s2 + $0x158] sm:$0xff] %vm637_vm0, %v845_v30  ;;  %v417_v31 = vpop.f32.mrb[11].mxu0  ;;  %v545_v32 = vpop.f32.mrb[11].mxu1 }
 0x10d   :  { %647 = vst.msk [vmem:[%s1349_s2 + $0x48] sm:$0xff] %vm637_vm0, %v417_v31  ;;  %679 = vst.msk [vmem:[%s1349_s2 + $0x148] sm:$0xff] %vm637_vm0, %v545_v32 }
 0x111   :  { %v816_v33 = vpop.f32.mrb[12].mxu0  ;;  %v848_v34 = vpop.f32.mrb[12].mxu1 }
 0x112   :  { %652 = vst.msk [vmem:[%s1349_s2 + $0x70] sm:$0xff] %vm637_vm0, %v816_v33  ;;  %684 = vst.msk [vmem:[%s1349_s2 + $0x170] sm:$0xff] %vm637_vm0, %v848_v34  ;;  %v430_v35 = vpop.f32.mrb[13].mxu0  ;;  %v558_v36 = vpop.f32.mrb[13].mxu1 }
 0x113   :  { %650 = vst.msk [vmem:[%s1349_s2 + $0x60] sm:$0xff] %vm637_vm0, %v430_v35  ;;  %682 = vst.msk [vmem:[%s1349_s2 + $0x160] sm:$0xff] %vm637_vm0, %v558_v36  ;;  %v817_v37 = vpop.f32.mrb[14].mxu0  ;;  %v849_v38 = vpop.f32.mrb[14].mxu1 }
 0x114   :  { %653 = vst.msk [vmem:[%s1349_s2 + $0x78] sm:$0xff] %vm637_vm0, %v817_v37  ;;  %685 = vst.msk [vmem:[%s1349_s2 + $0x178] sm:$0xff] %vm637_vm0, %v849_v38  ;;  %v433_v39 = vpop.f32.mrb[15].mxu0  ;;  %v561_v40 = vpop.f32.mrb[15].mxu1 }
 0x115   :  { %651 = vst.msk [vmem:[%s1349_s2 + $0x68] sm:$0xff] %vm637_vm0, %v433_v39  ;;  %683 = vst.msk [vmem:[%s1349_s2 + $0x168] sm:$0xff] %vm637_vm0, %v561_v40 }
 0x119   :  { %v820_v41 = vpop.f32.mrb[16].mxu0  ;;  %v852_v42 = vpop.f32.mrb[16].mxu1 }
 0x11a   :  { %656 = vst.msk [vmem:[%s1349_s2 + $0x90] sm:$0xff] %vm637_vm0, %v820_v41  ;;  %688 = vst.msk [vmem:[%s1349_s2 + $0x190] sm:$0xff] %vm637_vm0, %v852_v42  ;;  %v446_v43 = vpop.f32.mrb[17].mxu0  ;;  %v574_v44 = vpop.f32.mrb[17].mxu1 }
 0x11b   :  { %654 = vst.msk [vmem:[%s1349_s2 + $0x80] sm:$0xff] %vm637_vm0, %v446_v43  ;;  %686 = vst.msk [vmem:[%s1349_s2 + $0x180] sm:$0xff] %vm637_vm0, %v574_v44  ;;  %v821_v45 = vpop.f32.mrb[18].mxu0  ;;  %v853_v46 = vpop.f32.mrb[18].mxu1 }
 0x11c   :  { %657 = vst.msk [vmem:[%s1349_s2 + $0x98] sm:$0xff] %vm637_vm0, %v821_v45  ;;  %689 = vst.msk [vmem:[%s1349_s2 + $0x198] sm:$0xff] %vm637_vm0, %v853_v46  ;;  %v449_v47 = vpop.f32.mrb[19].mxu0  ;;  %v577_v48 = vpop.f32.mrb[19].mxu1 }
 0x11d   :  { %655 = vst.msk [vmem:[%s1349_s2 + $0x88] sm:$0xff] %vm637_vm0, %v449_v47  ;;  %687 = vst.msk [vmem:[%s1349_s2 + $0x188] sm:$0xff] %vm637_vm0, %v577_v48 }
 0x121   :  { %v824_v49 = vpop.f32.mrb[20].mxu0  ;;  %v856_v50 = vpop.f32.mrb[20].mxu1 }
 0x122   :  { %660 = vst.msk [vmem:[%s1349_s2 + $0xb0] sm:$0xff] %vm637_vm0, %v824_v49  ;;  %692 = vst.msk [vmem:[%s1349_s2 + $0x1b0] sm:$0xff] %vm637_vm0, %v856_v50  ;;  %v462_v51 = vpop.f32.mrb[21].mxu0  ;;  %v590_v52 = vpop.f32.mrb[21].mxu1 }
 0x123   :  { %658 = vst.msk [vmem:[%s1349_s2 + $0xa0] sm:$0xff] %vm637_vm0, %v462_v51  ;;  %690 = vst.msk [vmem:[%s1349_s2 + $0x1a0] sm:$0xff] %vm637_vm0, %v590_v52  ;;  %v825_v53 = vpop.f32.mrb[22].mxu0  ;;  %v857_v54 = vpop.f32.mrb[22].mxu1 }
 0x124   :  { %661 = vst.msk [vmem:[%s1349_s2 + $0xb8] sm:$0xff] %vm637_vm0, %v825_v53  ;;  %693 = vst.msk [vmem:[%s1349_s2 + $0x1b8] sm:$0xff] %vm637_vm0, %v857_v54  ;;  %v465_v55 = vpop.f32.mrb[23].mxu0  ;;  %v593_v56 = vpop.f32.mrb[23].mxu1 }
 0x125   :  { %659 = vst.msk [vmem:[%s1349_s2 + $0xa8] sm:$0xff] %vm637_vm0, %v465_v55  ;;  %691 = vst.msk [vmem:[%s1349_s2 + $0x1a8] sm:$0xff] %vm637_vm0, %v593_v56 }
 0x129   :  { %v828_v57 = vpop.f32.mrb[24].mxu0  ;;  %v860_v58 = vpop.f32.mrb[24].mxu1 }
 0x12a   :  { %664 = vst.msk [vmem:[%s1349_s2 + $0xd0] sm:$0xff] %vm637_vm0, %v828_v57  ;;  %696 = vst.msk [vmem:[%s1349_s2 + $0x1d0] sm:$0xff] %vm637_vm0, %v860_v58  ;;  %v478_v59 = vpop.f32.mrb[25].mxu0  ;;  %v606_v60 = vpop.f32.mrb[25].mxu1 }
 0x12b   :  { %662 = vst.msk [vmem:[%s1349_s2 + $0xc0] sm:$0xff] %vm637_vm0, %v478_v59  ;;  %694 = vst.msk [vmem:[%s1349_s2 + $0x1c0] sm:$0xff] %vm637_vm0, %v606_v60  ;;  %v829_v61 = vpop.f32.mrb[26].mxu0  ;;  %v861_v62 = vpop.f32.mrb[26].mxu1 }
 0x12c   :  { %665 = vst.msk [vmem:[%s1349_s2 + $0xd8] sm:$0xff] %vm637_vm0, %v829_v61  ;;  %697 = vst.msk [vmem:[%s1349_s2 + $0x1d8] sm:$0xff] %vm637_vm0, %v861_v62  ;;  %v481_v63 = vpop.f32.mrb[27].mxu0  ;;  %v609_v0 = vpop.f32.mrb[27].mxu1 }
 0x12d   :  { %663 = vst.msk [vmem:[%s1349_s2 + $0xc8] sm:$0xff] %vm637_vm0, %v481_v63  ;;  %695 = vst.msk [vmem:[%s1349_s2 + $0x1c8] sm:$0xff] %vm637_vm0, %v609_v0 }
 0x131   :  { %v832_v1 = vpop.f32.mrb[28].mxu0  ;;  %v864_v2 = vpop.f32.mrb[28].mxu1 }
 0x132   :  { %668 = vst.msk [vmem:[%s1349_s2 + $0xf0] sm:$0xff] %vm637_vm0, %v832_v1  ;;  %700 = vst.msk [vmem:[%s1349_s2 + $0x1f0] sm:$0xff] %vm637_vm0, %v864_v2  ;;  %v494_v3 = vpop.f32.mrb[29].mxu0  ;;  %v622_v4 = vpop.f32.mrb[29].mxu1 }
 0x133   :  { %666 = vst.msk [vmem:[%s1349_s2 + $0xe0] sm:$0xff] %vm637_vm0, %v494_v3  ;;  %698 = vst.msk [vmem:[%s1349_s2 + $0x1e0] sm:$0xff] %vm637_vm0, %v622_v4  ;;  %v833_v5 = vpop.f32.mrb[30].mxu0  ;;  %v865_v6 = vpop.f32.mrb[30].mxu1 }
 0x134   :  { %669 = vst.msk [vmem:[%s1349_s2 + $0xf8] sm:$0xff] %vm637_vm0, %v833_v5  ;;  %701 = vst.msk [vmem:[%s1349_s2 + $0x1f8] sm:$0xff] %vm637_vm0, %v865_v6  ;;  %v497_v7 = vpop.f32.mrb[31].mxu0  ;;  %v625_v8 = vpop.f32.mrb[31].mxu1 }
 0x135   :  { %667 = vst.msk [vmem:[%s1349_s2 + $0xe8] sm:$0xff] %vm637_vm0, %v497_v7  ;;  %699 = vst.msk [vmem:[%s1349_s2 + $0x1e8] sm:$0xff] %vm637_vm0, %v625_v8 }

// kernel: _lambda_.23
= control target key start
LH: loop header
LB: loop body
LE: loop exit
PB: predicated region body
PF: predicated region fallthrough
CT: control target
= control target key end

     0   :  { %vm12_vm0 = vcmask 261120   ;;  %s128_s0 = inlined_call_operand.vmem [shape: f32[32,32], index: 0, kind: input, shape index: {}]   ;;  %s129_s1 = inlined_call_operand.vmem [shape: f32[32,32], index: 1, kind: output, shape index: {}]  }
   0x1   :  { %v8_v0 = vld [vmem:[%s128_s0] sm:$0xff]  ;;  %v10_v1 = vld [vmem:[%s128_s0 + $0x10] sm:$0xff]  ;;  %v9_v2 = vld [vmem:[%s128_s0 + $0x8] sm:$0xff] }
   0x2   :  { %v13_v3 = vsel %vm12_vm0, %v8_v0, 0.0  ;;  %v19_v4 = vsel %vm12_vm0, %v10_v1, 0.0  ;;  %v11_v5 = vld [vmem:[%s128_s0 + $0x18] sm:$0xff]  ;;  %v16_v6 = vsel %vm12_vm0, %v9_v2, 0.0 }
   0x3   :  { %14 = vadd.xlane.f32.xlu0 %v13_v3  ;;  %20 = vadd.xlane.f32.xlu1 %v19_v4  ;;  %v22_v7 = vsel %vm12_vm0, %v11_v5, 0.0 }
   0x7   :  { %17 = vadd.xlane.f32.xlu0 %v16_v6  ;;  %23 = vadd.xlane.f32.xlu1 %v22_v7 }
  0x90   :  { %v15_v8 = vpop.xlane.xlu0 %14  ;;  %v21_v9 = vpop.xlane.xlu1 %20 }
  0x91   :  { %v26_v10 = vmul.f32 0.03125, %v15_v8  ;;  %v28_v11 = vmul.f32 0.03125, %v21_v9 }
  0x93   :  { %v30_v12 = vsub.f32 %v8_v0, %v26_v10  ;;  %v32_v13 = vsub.f32 %v10_v1, %v28_v11 }
  0x94   :  { %v18_v14 = vpop.xlane.xlu0 %17  ;;  %v24_v15 = vpop.xlane.xlu1 %23 }
  0x95   :  { %v27_v16 = vmul.f32 0.03125, %v18_v14  ;;  %v29_v17 = vmul.f32 0.03125, %v24_v15  ;;  %v34_v18 = vmul.f32 %v30_v12, %v30_v12  ;;  %v36_v19 = vmul.f32 %v32_v13, %v32_v13 }
  0x97   :  { %v31_v20 = vsub.f32 %v9_v2, %v27_v16  ;;  %v33_v21 = vsub.f32 %v11_v5, %v29_v17  ;;  %v38_v22 = vsel %vm12_vm0, %v34_v18, 0.0  ;;  %v44_v23 = vsel %vm12_vm0, %v36_v19, 0.0 }
  0x98   :  { %39 = vadd.xlane.f32.xlu0 %v38_v22 }
  0x99   :  { %v35_v24 = vmul.f32 %v31_v20, %v31_v20  ;;  %v37_v25 = vmul.f32 %v33_v21, %v33_v21 }
  0x9b   :  { %v41_v26 = vsel %vm12_vm0, %v35_v24, 0.0  ;;  %v47_v27 = vsel %vm12_vm0, %v37_v25, 0.0 }
  0x9c   :  { %45 = vadd.xlane.f32.xlu0 %v44_v23  ;;  %42 = vadd.xlane.f32.xlu1 %v41_v26 }
  0xa0   :  { %48 = vadd.xlane.f32.xlu1 %v47_v27 }
 0x125   :  { %v40_v28 = vpop.xlane.xlu0 %39 }
 0x126   :  { %v50_v29 = vmul.f32 0.03125, %v40_v28 }
 0x128   :  { %v54_v30 = vadd.f32 1e-05, %v50_v29 }
 0x129   :  { %v43_v31 = vpop.xlane.xlu1 %42  ;;  %v46_v32 = vpop.xlane.xlu0 %45 }
 0x12a   :  { %74 = vrsqrt.f32 %v54_v30  ;;  %v51_v33 = vmul.f32 0.03125, %v43_v31  ;;  %v52_v34 = vmul.f32 0.03125, %v46_v32 }
 0x12c   :  { %v55_v35 = vadd.f32 1e-05, %v51_v33  ;;  %v56_v36 = vadd.f32 1e-05, %v52_v34 }
 0x12d   :  { %v49_v37 = vpop.xlane.xlu1 %48 }
 0x12e   :  { %76 = vrsqrt.f32 %v55_v35  ;;  %v53_v38 = vmul.f32 0.03125, %v49_v37 }
 0x12f   :  { %78 = vrsqrt.f32 %v56_v36 }
 0x130   :  { %v57_v39 = vadd.f32 1e-05, %v53_v38 }
 0x132   :  { %80 = vrsqrt.f32 %v57_v39 }
 0x134   :  { %v75_v40 = vpop.eup %74 }
 0x135   :  { %v62_v41 = vmul.f32 %v75_v40, %v30_v12 }
 0x137   :  { %66 = vst.msk [vmem:[%s129_s1] sm:$0xff] %vm12_vm0, %v62_v41 }
 0x138   :  { %v77_v42 = vpop.eup %76 }
 0x139   :  { %v79_v43 = vpop.eup %78  ;;  %v63_v44 = vmul.f32 %v77_v42, %v31_v20 }
 0x13a   :  { %v64_v45 = vmul.f32 %v79_v43, %v32_v13 }
 0x13b   :  { %67 = vst.msk [vmem:[%s129_s1 + $0x8] sm:$0xff] %vm12_vm0, %v63_v44 }
 0x13c   :  { %v81_v46 = vpop.eup %80  ;;  %68 = vst.msk [vmem:[%s129_s1 + $0x10] sm:$0xff] %vm12_vm0, %v64_v45 }
 0x13d   :  { %v65_v47 = vmul.f32 %v81_v46, %v33_v21 }
 0x13f   :  { %69 = vst.msk [vmem:[%s129_s1 + $0x18] sm:$0xff] %vm12_vm0, %v65_v47 }

// kernel: _lambda_.24
= control target key start
LH: loop header
LB: loop body
LE: loop exit
PB: predicated region body
PF: predicated region fallthrough
CT: control target
= control target key end

     0   :  { %v532_v3 = vmov 0   ;;  %vm164_vm0 = vcmask 523264   ;;  %vm374_vm1 = vcmask 261120   ;;  %s764_s1 = inlined_call_operand.vmem [shape: bf16[64,32], index: 1, kind: input, shape index: {}]   ;;  %s765_s0 = inlined_call_operand.vmem [shape: bf16[256,64], index: 0, kind: input, shape index: {}]   ;;  %s766_s2 = inlined_call_operand.vmem [shape: f32[256,32], index: 2, kind: output, shape index: {}]  }
   0x1   :  { %v12_v0 = vld [vmem:[%s764_s1] sm:$0xf]  ;;  %v13_v1 = vld [vmem:[%s764_s1 + $0x4] sm:$0xf]  ;;  %v14_v2 = vld [vmem:[%s764_s1 + $0x8] sm:$0xf] }
   0x2   :  { %v20_v4 = vmax.bf16 %v532_v3, %v12_v0  ;;  %v21_v5 = vmax.bf16 %v532_v3, %v13_v1  ;;  %v15_v6 = vld [vmem:[%s764_s1 + $0xc] sm:$0xf]  ;;  %v22_v7 = vmax.bf16 %v532_v3, %v14_v2  ;;  %v16_v8 = vld [vmem:[%s764_s1 + $0x10] sm:$0xf]  ;;  %v17_v9 = vld [vmem:[%s764_s1 + $0x14] sm:$0xf] }
   0x3   :  { %v23_v10 = vmax.bf16 %v532_v3, %v15_v6  ;;  %v18_v11 = vld [vmem:[%s764_s1 + $0x18] sm:$0xf]  ;;  %v19_v12 = vld [vmem:[%s764_s1 + $0x1c] sm:$0xf]  ;;  %v24_v14 = vmax.bf16 %v532_v3, %v16_v8  ;;  %v25_v15 = vmax.bf16 %v532_v3, %v17_v9  ;;  %v516_v16 = vld [vmem:[%s765_s0] sm:$0xff]  }
   0x4   :  { %v427_v13 = vcombine.low %v20_v4, %v21_v5  ;;  %v517_v18 = vld [vmem:[%s765_s0 + $0x40] sm:$0xff]   ;;  %v26_v20 = vmax.bf16 %v532_v3, %v18_v11  ;;  %v27_v21 = vmax.bf16 %v532_v3, %v19_v12  ;;  %475 = vmatprep.mubr.msk.bf16.mxu0 %vm164_vm0, %v516_v16  ;;  %v518_v23 = vld [vmem:[%s765_s0 + $0x8] sm:$0xff]   ;;  %v520_v25 = vld [vmem:[%s765_s0 + $0x10] sm:$0xff]  }
   0x5   :  { %v428_v17 = vcombine.low %v22_v7, %v23_v10  ;;  %v429_v19 = vcombine.low %v24_v14, %v25_v15  ;;  %491 = vmatprep.mubr.msk.bf16.mxu1 %vm164_vm0, %v517_v18  ;;  %v519_v24 = vld [vmem:[%s765_s0 + $0x48] sm:$0xff]   ;;  %v521_v26 = vld [vmem:[%s765_s0 + $0x50] sm:$0xff]   ;;  %v522_v27 = vld [vmem:[%s765_s0 + $0x18] sm:$0xff]  }
   0x6   :  { %467 = vmatprep.subr.bf16.mxu0 %v427_v13  ;;  %507 = vmatprep.subr.bf16.mxu1 %v427_v13  ;;  %v430_v22 = vcombine.low %v26_v20, %v27_v21  ;;  %v523_v28 = vld [vmem:[%s765_s0 + $0x58] sm:$0xff]   ;;  %v524_v29 = vld [vmem:[%s765_s0 + $0x20] sm:$0xff]   ;;  %v526_v31 = vld [vmem:[%s765_s0 + $0x28] sm:$0xff]  }
   0x7   :  { %468 = vmatpush3.bf16.msra.mxu0 %v427_v13  ;;  %511 = vmatpush3.bf16.msra.mxu1 %v427_v13  ;;  %v525_v30 = vld [vmem:[%s765_s0 + $0x60] sm:$0xff]   ;;  %v527_v32 = vld [vmem:[%s765_s0 + $0x68] sm:$0xff]   ;;  %v528_v33 = vld [vmem:[%s765_s0 + $0x30] sm:$0xff]  }
   0x8   :  { %469 = vmatprep.subr.bf16.mxu0 %v428_v17  ;;  %508 = vmatprep.subr.bf16.mxu1 %v428_v17  ;;  %v529_v34 = vld [vmem:[%s765_s0 + $0x70] sm:$0xff]   ;;  %v530_v35 = vld [vmem:[%s765_s0 + $0x38] sm:$0xff]  }
   0x9   :  { %v531_v36 = vld [vmem:[%s765_s0 + $0x78] sm:$0xff]  }
   0xb   :  { %470 = vmatpush3.bf16.msra.mxu0 %v428_v17  ;;  %512 = vmatpush3.bf16.msra.mxu1 %v428_v17 }
   0xc   :  { %471 = vmatprep.subr.bf16.mxu0 %v429_v19  ;;  %509 = vmatprep.subr.bf16.mxu1 %v429_v19 }
   0xf   :  { %472 = vmatpush3.bf16.msra.mxu0 %v429_v19  ;;  %513 = vmatpush3.bf16.msra.mxu1 %v429_v19 }
  0x10   :  { %473 = vmatprep.subr.bf16.mxu0 %v430_v22  ;;  %510 = vmatprep.subr.bf16.mxu1 %v430_v22 }
  0x13   :  { %474 = vmatpush3.bf16.msra.mxu0 %v430_v22  ;;  %514 = vmatpush3.bf16.msra.mxu1 %v430_v22 }
  0x16   :  { %476 = vmatmul.mubr.msk.bf16.vlgmr.msra.gmra.mrb[0].mxu0 %vm164_vm0, %v518_v23  ;;  %492 = vmatmul.mubr.msk.bf16.vlgmr.msra.gmra.mrb[0].mxu1 %vm164_vm0, %v519_v24 }
  0x17   :  { %479 = vmatprep.mubr.msk.bf16.mxu0 %vm164_vm0, %v520_v25  ;;  %495 = vmatprep.mubr.msk.bf16.mxu1 %vm164_vm0, %v521_v26 }
  0x1e   :  { %480 = vmatmul.mubr.msk.bf16.gmra.mrb[4].mxu0 %vm164_vm0, %v522_v27  ;;  %496 = vmatmul.mubr.msk.bf16.gmra.mrb[4].mxu1 %vm164_vm0, %v523_v28 }
  0x1f   :  { %483 = vmatprep.mubr.msk.bf16.mxu0 %vm164_vm0, %v524_v29  ;;  %499 = vmatprep.mubr.msk.bf16.mxu1 %vm164_vm0, %v525_v30 }
  0x26   :  { %484 = vmatmul.mubr.msk.bf16.gmra.mrb[8].mxu0 %vm164_vm0, %v526_v31  ;;  %500 = vmatmul.mubr.msk.bf16.gmra.mrb[8].mxu1 %vm164_vm0, %v527_v32 }
  0x27   :  { %487 = vmatprep.mubr.msk.bf16.mxu0 %vm164_vm0, %v528_v33  ;;  %503 = vmatprep.mubr.msk.bf16.mxu1 %vm164_vm0, %v529_v34 }
  0x2e   :  { %488 = vmatmul.mubr.msk.bf16.gmra.mrb[12].mxu0 %vm164_vm0, %v530_v35  ;;  %504 = vmatmul.mubr.msk.bf16.gmra.mrb[12].mxu1 %vm164_vm0, %v531_v36 }
  0xe9   :  { %v477_v37 = vpop.f32.mrb[0].mxu0  ;;  %v493_v38 = vpop.f32.mrb[0].mxu1 }
  0xea   :  { %377 = vst.msk [vmem:[%s766_s2 + $0x10] sm:$0xff] %vm374_vm1, %v477_v37  ;;  %393 = vst.msk [vmem:[%s766_s2 + $0x90] sm:$0xff] %vm374_vm1, %v493_v38  ;;  %v247_v39 = vpop.f32.mrb[1].mxu0  ;;  %v311_v40 = vpop.f32.mrb[1].mxu1 }
  0xeb   :  { %375 = vst.msk [vmem:[%s766_s2] sm:$0xff] %vm374_vm1, %v247_v39  ;;  %391 = vst.msk [vmem:[%s766_s2 + $0x80] sm:$0xff] %vm374_vm1, %v311_v40  ;;  %v478_v41 = vpop.f32.mrb[2].mxu0  ;;  %v494_v42 = vpop.f32.mrb[2].mxu1 }
  0xec   :  { %378 = vst.msk [vmem:[%s766_s2 + $0x18] sm:$0xff] %vm374_vm1, %v478_v41  ;;  %394 = vst.msk [vmem:[%s766_s2 + $0x98] sm:$0xff] %vm374_vm1, %v494_v42  ;;  %v250_v43 = vpop.f32.mrb[3].mxu0  ;;  %v314_v44 = vpop.f32.mrb[3].mxu1 }
  0xed   :  { %376 = vst.msk [vmem:[%s766_s2 + $0x8] sm:$0xff] %vm374_vm1, %v250_v43  ;;  %392 = vst.msk [vmem:[%s766_s2 + $0x88] sm:$0xff] %vm374_vm1, %v314_v44 }
  0xf1   :  { %v481_v45 = vpop.f32.mrb[4].mxu0  ;;  %v497_v46 = vpop.f32.mrb[4].mxu1 }
  0xf2   :  { %381 = vst.msk [vmem:[%s766_s2 + $0x30] sm:$0xff] %vm374_vm1, %v481_v45  ;;  %397 = vst.msk [vmem:[%s766_s2 + $0xb0] sm:$0xff] %vm374_vm1, %v497_v46  ;;  %v263_v47 = vpop.f32.mrb[5].mxu0  ;;  %v327_v48 = vpop.f32.mrb[5].mxu1 }
  0xf3   :  { %379 = vst.msk [vmem:[%s766_s2 + $0x20] sm:$0xff] %vm374_vm1, %v263_v47  ;;  %395 = vst.msk [vmem:[%s766_s2 + $0xa0] sm:$0xff] %vm374_vm1, %v327_v48  ;;  %v482_v49 = vpop.f32.mrb[6].mxu0  ;;  %v498_v50 = vpop.f32.mrb[6].mxu1 }
  0xf4   :  { %382 = vst.msk [vmem:[%s766_s2 + $0x38] sm:$0xff] %vm374_vm1, %v482_v49  ;;  %398 = vst.msk [vmem:[%s766_s2 + $0xb8] sm:$0xff] %vm374_vm1, %v498_v50  ;;  %v266_v51 = vpop.f32.mrb[7].mxu0  ;;  %v330_v52 = vpop.f32.mrb[7].mxu1 }
  0xf5   :  { %380 = vst.msk [vmem:[%s766_s2 + $0x28] sm:$0xff] %vm374_vm1, %v266_v51  ;;  %396 = vst.msk [vmem:[%s766_s2 + $0xa8] sm:$0xff] %vm374_vm1, %v330_v52 }
  0xf9   :  { %v485_v53 = vpop.f32.mrb[8].mxu0  ;;  %v501_v54 = vpop.f32.mrb[8].mxu1 }
  0xfa   :  { %385 = vst.msk [vmem:[%s766_s2 + $0x50] sm:$0xff] %vm374_vm1, %v485_v53  ;;  %401 = vst.msk [vmem:[%s766_s2 + $0xd0] sm:$0xff] %vm374_vm1, %v501_v54  ;;  %v279_v55 = vpop.f32.mrb[9].mxu0  ;;  %v343_v56 = vpop.f32.mrb[9].mxu1 }
  0xfb   :  { %383 = vst.msk [vmem:[%s766_s2 + $0x40] sm:$0xff] %vm374_vm1, %v279_v55  ;;  %399 = vst.msk [vmem:[%s766_s2 + $0xc0] sm:$0xff] %vm374_vm1, %v343_v56  ;;  %v486_v57 = vpop.f32.mrb[10].mxu0  ;;  %v502_v58 = vpop.f32.mrb[10].mxu1 }
  0xfc   :  { %386 = vst.msk [vmem:[%s766_s2 + $0x58] sm:$0xff] %vm374_vm1, %v486_v57  ;;  %402 = vst.msk [vmem:[%s766_s2 + $0xd8] sm:$0xff] %vm374_vm1, %v502_v58  ;;  %v282_v59 = vpop.f32.mrb[11].mxu0  ;;  %v346_v60 = vpop.f32.mrb[11].mxu1 }
  0xfd   :  { %384 = vst.msk [vmem:[%s766_s2 + $0x48] sm:$0xff] %vm374_vm1, %v282_v59  ;;  %400 = vst.msk [vmem:[%s766_s2 + $0xc8] sm:$0xff] %vm374_vm1, %v346_v60 }
 0x101   :  { %v489_v61 = vpop.f32.mrb[12].mxu0  ;;  %v505_v62 = vpop.f32.mrb[12].mxu1 }
 0x102   :  { %389 = vst.msk [vmem:[%s766_s2 + $0x70] sm:$0xff] %vm374_vm1, %v489_v61  ;;  %405 = vst.msk [vmem:[%s766_s2 + $0xf0] sm:$0xff] %vm374_vm1, %v505_v62  ;;  %v295_v63 = vpop.f32.mrb[13].mxu0  ;;  %v359_v0 = vpop.f32.mrb[13].mxu1 }
 0x103   :  { %387 = vst.msk [vmem:[%s766_s2 + $0x60] sm:$0xff] %vm374_vm1, %v295_v63  ;;  %403 = vst.msk [vmem:[%s766_s2 + $0xe0] sm:$0xff] %vm374_vm1, %v359_v0  ;;  %v490_v1 = vpop.f32.mrb[14].mxu0  ;;  %v506_v2 = vpop.f32.mrb[14].mxu1 }
 0x104   :  { %390 = vst.msk [vmem:[%s766_s2 + $0x78] sm:$0xff] %vm374_vm1, %v490_v1  ;;  %406 = vst.msk [vmem:[%s766_s2 + $0xf8] sm:$0xff] %vm374_vm1, %v506_v2  ;;  %v298_v3 = vpop.f32.mrb[15].mxu0  ;;  %v362_v4 = vpop.f32.mrb[15].mxu1 }
 0x105   :  { %388 = vst.msk [vmem:[%s766_s2 + $0x68] sm:$0xff] %vm374_vm1, %v298_v3  ;;  %404 = vst.msk [vmem:[%s766_s2 + $0xe8] sm:$0xff] %vm374_vm1, %v362_v4 }

// kernel: _lambda_.25
= control target key start
LH: loop header
LB: loop body
LE: loop exit
PB: predicated region body
PF: predicated region fallthrough
CT: control target
= control target key end

     0   :  { %s65_s0 = inlined_call_operand.vmem [shape: f32[16,128], index: 0, kind: input, shape index: {}]   ;;  %s66_s1 = inlined_call_operand.vmem [shape: f32[16,128], index: 1, kind: output, shape index: {}]  }
   0x1   :  { %v8_v0 = vld [vmem:[%s65_s0] sm:$0xff]  ;;  %v9_v1 = vld [vmem:[%s65_s0 + $0x8] sm:$0xff] }
   0x2   :  { %10 = vadd.xlane.f32.xlu0 %v8_v0 }
   0x6   :  { %12 = vadd.xlane.f32.xlu0 %v9_v1 }
  0x8f   :  { %v11_v2 = vpop.xlane.xlu0 %10 }
  0x90   :  { %v15_v3 = vmul.f32 0.0078125, %v11_v2 }
  0x92   :  { %v17_v4 = vsub.f32 %v8_v0, %v15_v3 }
  0x93   :  { %v13_v5 = vpop.xlane.xlu0 %12 }
  0x94   :  { %v16_v6 = vmul.f32 0.0078125, %v13_v5  ;;  %v19_v7 = vmul.f32 %v17_v4, %v17_v4 }
  0x96   :  { %v18_v8 = vsub.f32 %v9_v1, %v16_v6  ;;  %21 = vadd.xlane.f32.xlu1 %v19_v7 }
  0x98   :  { %v20_v9 = vmul.f32 %v18_v8, %v18_v8 }
  0x9a   :  { %23 = vadd.xlane.f32.xlu1 %v20_v9 }
 0x123   :  { %v22_v10 = vpop.xlane.xlu1 %21 }
 0x124   :  { %v25_v11 = vmul.f32 0.0078125, %v22_v10 }
 0x126   :  { %v27_v12 = vadd.f32 1e-05, %v25_v11 }
 0x127   :  { %v24_v13 = vpop.xlane.xlu1 %23 }
 0x128   :  { %39 = vrsqrt.f32 %v27_v12  ;;  %v26_v14 = vmul.f32 0.0078125, %v24_v13 }
 0x12a   :  { %v28_v15 = vadd.f32 1e-05, %v26_v14 }
 0x12c   :  { %41 = vrsqrt.f32 %v28_v15 }
 0x132   :  { %v40_v16 = vpop.eup %39 }
 0x133   :  { %v31_v17 = vmul.f32 %v40_v16, %v17_v4 }
 0x135   :  { %33 = vst [vmem:[%s66_s1] sm:$0xff] %v31_v17 }
 0x136   :  { %v42_v18 = vpop.eup %41 }
 0x137   :  { %v32_v19 = vmul.f32 %v42_v18, %v18_v8 }
 0x139   :  { %34 = vst [vmem:[%s66_s1 + $0x8] sm:$0xff] %v32_v19 }

// kernel: _lambda_.26
= control target key start
LH: loop header
LB: loop body
LE: loop exit
PB: predicated region body
PF: predicated region fallthrough
CT: control target
= control target key end

     0   :  { %vm88_vm0 = vcmask 261120   ;;  %v291_v3 = vmov 0   ;;  %s399_s1 = inlined_call_operand.vmem [shape: bf16[32,128], index: 1, kind: input, shape index: {}]   ;;  %s400_s0 = inlined_call_operand.vmem [shape: bf16[128,32], index: 0, kind: input, shape index: {}]   ;;  %s401_s2 = inlined_call_operand.vmem [shape: f32[128,128], index: 2, kind: output, shape index: {}]  }
   0x1   :  { %v12_v0 = vld [vmem:[%s399_s1] sm:$0xf]  ;;  %v13_v1 = vld [vmem:[%s399_s1 + $0x4] sm:$0xf]  ;;  %v14_v2 = vld [vmem:[%s399_s1 + $0x8] sm:$0xf] }
   0x2   :  { %v16_v4 = vmax.bf16 %v291_v3, %v12_v0  ;;  %v17_v5 = vmax.bf16 %v291_v3, %v13_v1  ;;  %v15_v6 = vld [vmem:[%s399_s1 + $0xc] sm:$0xf]  ;;  %v18_v7 = vmax.bf16 %v291_v3, %v14_v2  ;;  %v283_v9 = vld [vmem:[%s400_s0] sm:$0xff]   ;;  %v287_v15 = vld [vmem:[%s400_s0 + $0x10] sm:$0xff]  }
   0x3   :  { %v19_v8 = vmax.bf16 %v291_v3, %v15_v6  ;;  %262 = vmatprep.mubr.msk.bf16.mxu0 %vm88_vm0, %v283_v9  ;;  %v284_v12 = vld [vmem:[%s400_s0 + $0x20] sm:$0xff]   ;;  %v285_v13 = vld [vmem:[%s400_s0 + $0x8] sm:$0xff]   ;;  %v288_v16 = vld [vmem:[%s400_s0 + $0x30] sm:$0xff]  }
   0x4   :  { %v238_v10 = vcombine.low %v16_v4, %v17_v5  ;;  %270 = vmatprep.mubr.msk.bf16.mxu1 %vm88_vm0, %v284_v12  ;;  %v286_v14 = vld [vmem:[%s400_s0 + $0x28] sm:$0xff]   ;;  %v289_v17 = vld [vmem:[%s400_s0 + $0x18] sm:$0xff]  }
   0x5   :  { %v239_v11 = vcombine.low %v18_v7, %v19_v8  ;;  %v290_v18 = vld [vmem:[%s400_s0 + $0x38] sm:$0xff]  }
   0x6   :  { %258 = vmatprep.subr.bf16.mxu0 %v238_v10  ;;  %278 = vmatprep.subr.bf16.mxu1 %v238_v10 }
   0x7   :  { %259 = vmatpush3.bf16.msra.mxu0 %v238_v10  ;;  %280 = vmatpush3.bf16.msra.mxu1 %v238_v10 }
   0x8   :  { %260 = vmatprep.subr.bf16.mxu0 %v239_v11  ;;  %279 = vmatprep.subr.bf16.mxu1 %v239_v11 }
   0xb   :  { %261 = vmatpush3.bf16.msra.mxu0 %v239_v11  ;;  %281 = vmatpush3.bf16.msra.mxu1 %v239_v11 }
   0xe   :  { %263 = vmatmul.mubr.msk.bf16.vlgmr.msra.gmra.mrb[0].mxu0 %vm88_vm0, %v285_v13  ;;  %271 = vmatmul.mubr.msk.bf16.vlgmr.msra.gmra.mrb[0].mxu1 %vm88_vm0, %v286_v14 }
   0xf   :  { %266 = vmatprep.mubr.msk.bf16.mxu0 %vm88_vm0, %v287_v15  ;;  %274 = vmatprep.mubr.msk.bf16.mxu1 %vm88_vm0, %v288_v16 }
  0x16   :  { %267 = vmatmul.mubr.msk.bf16.gmra.mrb[4].mxu0 %vm88_vm0, %v289_v17  ;;  %275 = vmatmul.mubr.msk.bf16.gmra.mrb[4].mxu1 %vm88_vm0, %v290_v18 }
  0xe1   :  { %v264_v19 = vpop.f32.mrb[0].mxu0  ;;  %v272_v20 = vpop.f32.mrb[0].mxu1 }
  0xe2   :  { %212 = vst [vmem:[%s401_s2 + $0x10] sm:$0xff] %v264_v19  ;;  %220 = vst [vmem:[%s401_s2 + $0x50] sm:$0xff] %v272_v20  ;;  %v147_v21 = vpop.f32.mrb[1].mxu0  ;;  %v179_v22 = vpop.f32.mrb[1].mxu1 }
  0xe3   :  { %210 = vst [vmem:[%s401_s2] sm:$0xff] %v147_v21  ;;  %218 = vst [vmem:[%s401_s2 + $0x40] sm:$0xff] %v179_v22  ;;  %v265_v23 = vpop.f32.mrb[2].mxu0  ;;  %v273_v24 = vpop.f32.mrb[2].mxu1 }
  0xe4   :  { %213 = vst [vmem:[%s401_s2 + $0x18] sm:$0xff] %v265_v23  ;;  %221 = vst [vmem:[%s401_s2 + $0x58] sm:$0xff] %v273_v24  ;;  %v150_v25 = vpop.f32.mrb[3].mxu0  ;;  %v182_v26 = vpop.f32.mrb[3].mxu1 }
  0xe5   :  { %211 = vst [vmem:[%s401_s2 + $0x8] sm:$0xff] %v150_v25  ;;  %219 = vst [vmem:[%s401_s2 + $0x48] sm:$0xff] %v182_v26 }
  0xe9   :  { %v268_v27 = vpop.f32.mrb[4].mxu0  ;;  %v276_v28 = vpop.f32.mrb[4].mxu1 }
  0xea   :  { %216 = vst [vmem:[%s401_s2 + $0x30] sm:$0xff] %v268_v27  ;;  %224 = vst [vmem:[%s401_s2 + $0x70] sm:$0xff] %v276_v28  ;;  %v163_v29 = vpop.f32.mrb[5].mxu0  ;;  %v195_v30 = vpop.f32.mrb[5].mxu1 }
  0xeb   :  { %214 = vst [vmem:[%s401_s2 + $0x20] sm:$0xff] %v163_v29  ;;  %222 = vst [vmem:[%s401_s2 + $0x60] sm:$0xff] %v195_v30  ;;  %v269_v31 = vpop.f32.mrb[6].mxu0  ;;  %v277_v32 = vpop.f32.mrb[6].mxu1 }
  0xec   :  { %217 = vst [vmem:[%s401_s2 + $0x38] sm:$0xff] %v269_v31  ;;  %225 = vst [vmem:[%s401_s2 + $0x78] sm:$0xff] %v277_v32  ;;  %v166_v33 = vpop.f32.mrb[7].mxu0  ;;  %v198_v34 = vpop.f32.mrb[7].mxu1 }
  0xed   :  { %215 = vst [vmem:[%s401_s2 + $0x28] sm:$0xff] %v166_v33  ;;  %223 = vst [vmem:[%s401_s2 + $0x68] sm:$0xff] %v198_v34 }

// kernel: _lambda_.27
= control target key start
LH: loop header
LB: loop body
LE: loop exit
PB: predicated region body
PF: predicated region fallthrough
CT: control target
= control target key end

     0   :  { %s83_s0 = inlined_call_operand.vmem [shape: f32[8,512], index: 0, kind: input, shape index: {}]   ;;  %s84_s1 = inlined_call_operand.vmem [shape: f32[8,512], index: 1, kind: output, shape index: {}]  }
   0x1   :  { %v8_v0 = vld [vmem:[%s83_s0] sm:$0xff]  ;;  %v9_v1 = vld [vmem:[%s83_s0 + $0x8] sm:$0xff]  ;;  %v10_v2 = vld [vmem:[%s83_s0 + $0x10] sm:$0xff] }
   0x2   :  { %v12_v3 = vadd.f32 %v9_v1, %v8_v0  ;;  %v11_v4 = vld [vmem:[%s83_s0 + $0x18] sm:$0xff] }
   0x4   :  { %v13_v5 = vadd.f32 %v12_v3, %v10_v2 }
   0x6   :  { %v14_v6 = vadd.f32 %v13_v5, %v11_v4 }
   0x8   :  { %15 = vadd.xlane.f32.xlu0 %v14_v6 }
  0x95   :  { %v16_v7 = vpop.xlane.xlu0 %15 }
  0x96   :  { %v18_v8 = vmul.f32 0.001953125, %v16_v7 }
  0x98   :  { %v19_v9 = vsub.f32 %v8_v0, %v18_v8  ;;  %v20_v10 = vsub.f32 %v9_v1, %v18_v8  ;;  %v21_v11 = vsub.f32 %v10_v2, %v18_v8  ;;  %v22_v12 = vsub.f32 %v11_v4, %v18_v8 }
  0x9a   :  { %v23_v13 = vmul.f32 %v19_v9, %v19_v9  ;;  %v24_v14 = vmul.f32 %v20_v10, %v20_v10  ;;  %v25_v15 = vmul.f32 %v21_v11, %v21_v11  ;;  %v26_v17 = vmul.f32 %v22_v12, %v22_v12 }
  0x9c   :  { %v27_v16 = vadd.f32 %v24_v14, %v23_v13 }
  0x9e   :  { %v28_v18 = vadd.f32 %v27_v16, %v25_v15 }
  0xa0   :  { %v29_v19 = vadd.f32 %v28_v18, %v26_v17 }
  0xa2   :  { %30 = vadd.xlane.f32.xlu0 %v29_v19 }
 0x12f   :  { %v31_v20 = vpop.xlane.xlu0 %30 }
 0x130   :  { %v32_v21 = vmul.f32 0.001953125, %v31_v20 }
 0x132   :  { %v33_v22 = vadd.f32 1e-05, %v32_v21 }
 0x134   :  { %47 = vrsqrt.f32 %v33_v22 }
 0x13e   :  { %v48_v23 = vpop.eup %47 }
 0x13f   :  { %v35_v24 = vmul.f32 %v48_v23, %v19_v9  ;;  %v36_v25 = vmul.f32 %v48_v23, %v20_v10  ;;  %v37_v26 = vmul.f32 %v48_v23, %v21_v11  ;;  %v38_v27 = vmul.f32 %v48_v23, %v22_v12 }
 0x141   :  { %39 = vst [vmem:[%s84_s1] sm:$0xff] %v35_v24  ;;  %40 = vst [vmem:[%s84_s1 + $0x8] sm:$0xff] %v36_v25 }
 0x142   :  { %41 = vst [vmem:[%s84_s1 + $0x10] sm:$0xff] %v37_v26  ;;  %42 = vst [vmem:[%s84_s1 + $0x18] sm:$0xff] %v38_v27 }

// kernel: _lambda_.28
= control target key start
LH: loop header
LB: loop body
LE: loop exit
PB: predicated region body
PF: predicated region fallthrough
CT: control target
= control target key end

     0   :  { %v242_v3 = vmov 0   ;;  %vm61_vm0 = vcmask 130048   ;;  %s351_s1 = inlined_call_operand.vmem [shape: bf16[16,512], index: 1, kind: input, shape index: {}]   ;;  %s352_s0 = inlined_call_operand.vmem [shape: bf16[48,16], index: 0, kind: input, shape index: {}]   ;;  %s353_s2 = inlined_call_operand.vmem [shape: f32[48,512], index: 2, kind: output, shape index: {}]  }
   0x1   :  { %v12_v0 = vld [vmem:[%s351_s1] sm:$0xff]  ;;  %v14_v1 = vld [vmem:[%s351_s1 + $0x10] sm:$0xff]  ;;  %v13_v2 = vld [vmem:[%s351_s1 + $0x8] sm:$0xff]  ;;  %103 = vmatprep.mubr.bf16.mxu0 %v242_v3  ;;  %166 = vmatprep.mubr.bf16.mxu1 %v242_v3 }
   0x2   :  { %v16_v4 = vmax.bf16 %v242_v3, %v12_v0  ;;  %v18_v5 = vmax.bf16 %v242_v3, %v14_v1  ;;  %v15_v6 = vld [vmem:[%s351_s1 + $0x18] sm:$0xff]  ;;  %v17_v7 = vmax.bf16 %v242_v3, %v13_v2  ;;  %v239_v13 = vld [vmem:[%s352_s0] sm:$0xff]   ;;  %v240_v14 = vld [vmem:[%s352_s0 + $0x8] sm:$0xff]  }
   0x3   :  { %v19_v8 = vmax.bf16 %v242_v3, %v15_v6  ;;  %v241_v15 = vld [vmem:[%s352_s0 + $0x10] sm:$0xff]  }
   0x4   :  { %v229_v9 = vcombine.high %v16_v4, %v18_v5  ;;  %v228_v10 = vcombine.low %v16_v4, %v18_v5 }
   0x5   :  { %v231_v11 = vcombine.high %v17_v7, %v19_v8  ;;  %v230_v12 = vcombine.low %v17_v7, %v19_v8 }
   0x6   :  { %71 = vmatprep.subr.bf16.mxu0 %v229_v9 }
   0x7   :  { %134 = vmatprep.subr.bf16.mxu1 %v231_v11  ;;  %72 = vmatpush1.bf16.msra.mxu0 %v228_v10 }
   0x8   :  { %135 = vmatpush1.bf16.msra.mxu1 %v230_v12 }
   0xa   :  { %232 = vmatmul.mubr.msk.bf16.vlgmr.msra.gmra.mrb[0].mxu0 %vm61_vm0, %v239_v13 }
   0xb   :  { %235 = vmatmul.mubr.msk.bf16.vlgmr.msra.gmra.mrb[0].mxu1 %vm61_vm0, %v239_v13  ;;  %113 = vmatprep.mubr.bf16.mxu0 %v242_v3 }
   0xc   :  { %176 = vmatprep.mubr.bf16.mxu1 %v242_v3 }
  0x12   :  { %233 = vmatmul.mubr.msk.bf16.gmra.mrb[4].mxu0 %vm61_vm0, %v240_v14 }
  0x13   :  { %236 = vmatmul.mubr.msk.bf16.gmra.mrb[4].mxu1 %vm61_vm0, %v240_v14  ;;  %123 = vmatprep.mubr.bf16.mxu0 %v242_v3 }
  0x14   :  { %186 = vmatprep.mubr.bf16.mxu1 %v242_v3 }
  0x1a   :  { %234 = vmatmul.mubr.msk.bf16.gmra.mrb[8].mxu0 %vm61_vm0, %v241_v15 }
  0x1b   :  { %237 = vmatmul.mubr.msk.bf16.gmra.mrb[8].mxu1 %vm61_vm0, %v241_v15 }
  0xdd   :  { %v105_v16 = vpop.f32.mrb[0].mxu0 }
  0xde   :  { %197 = vst [vmem:[%s353_s2] sm:$0xff] %v105_v16  ;;  %v168_v17 = vpop.f32.mrb[0].mxu1  ;;  %v107_v18 = vpop.f32.mrb[1].mxu0 }
  0xdf   :  { %199 = vst [vmem:[%s353_s2 + $0x10] sm:$0xff] %v168_v17  ;;  %198 = vst [vmem:[%s353_s2 + $0x8] sm:$0xff] %v107_v18  ;;  %v170_v19 = vpop.f32.mrb[1].mxu1  ;;  %v109_v20 = vpop.f32.mrb[2].mxu0 }
  0xe0   :  { %200 = vst [vmem:[%s353_s2 + $0x18] sm:$0xff] %v170_v19  ;;  %201 = vst [vmem:[%s353_s2 + $0x20] sm:$0xff] %v109_v20  ;;  %v172_v21 = vpop.f32.mrb[2].mxu1  ;;  %v111_v22 = vpop.f32.mrb[3].mxu0 }
  0xe1   :  { %203 = vst [vmem:[%s353_s2 + $0x30] sm:$0xff] %v172_v21  ;;  %202 = vst [vmem:[%s353_s2 + $0x28] sm:$0xff] %v111_v22  ;;  %v174_v23 = vpop.f32.mrb[3].mxu1 }
  0xe2   :  { %204 = vst [vmem:[%s353_s2 + $0x38] sm:$0xff] %v174_v23 }
  0xe5   :  { %v115_v24 = vpop.f32.mrb[4].mxu0 }
  0xe6   :  { %205 = vst [vmem:[%s353_s2 + $0x40] sm:$0xff] %v115_v24  ;;  %v178_v25 = vpop.f32.mrb[4].mxu1  ;;  %v117_v26 = vpop.f32.mrb[5].mxu0 }
  0xe7   :  { %207 = vst [vmem:[%s353_s2 + $0x50] sm:$0xff] %v178_v25  ;;  %206 = vst [vmem:[%s353_s2 + $0x48] sm:$0xff] %v117_v26  ;;  %v180_v27 = vpop.f32.mrb[5].mxu1  ;;  %v119_v28 = vpop.f32.mrb[6].mxu0 }
  0xe8   :  { %208 = vst [vmem:[%s353_s2 + $0x58] sm:$0xff] %v180_v27  ;;  %209 = vst [vmem:[%s353_s2 + $0x60] sm:$0xff] %v119_v28  ;;  %v182_v29 = vpop.f32.mrb[6].mxu1  ;;  %v121_v30 = vpop.f32.mrb[7].mxu0 }
  0xe9   :  { %211 = vst [vmem:[%s353_s2 + $0x70] sm:$0xff] %v182_v29  ;;  %210 = vst [vmem:[%s353_s2 + $0x68] sm:$0xff] %v121_v30  ;;  %v184_v31 = vpop.f32.mrb[7].mxu1 }
  0xea   :  { %212 = vst [vmem:[%s353_s2 + $0x78] sm:$0xff] %v184_v31 }
  0xed   :  { %v125_v32 = vpop.f32.mrb[8].mxu0 }
  0xee   :  { %213 = vst [vmem:[%s353_s2 + $0x80] sm:$0xff] %v125_v32  ;;  %v188_v33 = vpop.f32.mrb[8].mxu1  ;;  %v127_v34 = vpop.f32.mrb[9].mxu0 }
  0xef   :  { %215 = vst [vmem:[%s353_s2 + $0x90] sm:$0xff] %v188_v33  ;;  %214 = vst [vmem:[%s353_s2 + $0x88] sm:$0xff] %v127_v34  ;;  %v190_v35 = vpop.f32.mrb[9].mxu1  ;;  %v129_v36 = vpop.f32.mrb[10].mxu0 }
  0xf0   :  { %216 = vst [vmem:[%s353_s2 + $0x98] sm:$0xff] %v190_v35  ;;  %217 = vst [vmem:[%s353_s2 + $0xa0] sm:$0xff] %v129_v36  ;;  %v192_v37 = vpop.f32.mrb[10].mxu1  ;;  %v131_v38 = vpop.f32.mrb[11].mxu0 }
  0xf1   :  { %219 = vst [vmem:[%s353_s2 + $0xb0] sm:$0xff] %v192_v37  ;;  %218 = vst [vmem:[%s353_s2 + $0xa8] sm:$0xff] %v131_v38  ;;  %v194_v39 = vpop.f32.mrb[11].mxu1 }
  0xf2   :  { %220 = vst [vmem:[%s353_s2 + $0xb8] sm:$0xff] %v194_v39 }

// kernel: _lambda_.29
= control target key start
LH: loop header
LB: loop body
LE: loop exit
PB: predicated region body
PF: predicated region fallthrough
CT: control target
= control target key end

     0   :  { %v79_v0 = vmov 0   ;;  %v80_v2 = vmov 839922192   ;;  %v27_v4 = vlaneseq  ;;  %s147_s1 = inlined_call_operand.vmem [shape: f32[3,1], index: 1, kind: input, shape index: {}]   ;;  %s148_s0 = inlined_call_operand.vmem [shape: f32[3,2048], index: 0, kind: input, shape index: {}]   ;;  %s149_s2 = inlined_call_operand.vmem [shape: f32[3,2048], index: 2, kind: output, shape index: {}]  }
   0x1   :  { %62 = vset.pattern.permute.xlu0 %v79_v0  ;;  %v19_v1 = vld [vmem:[%s147_s1] sm:$0x7]  ;;  %v25_v3 = vunpack.c.l.s4 %v80_v2  ;;  %v12_v10 = vld [vmem:[%s148_s0 + $0x8] sm:$0x77]  ;;  %v13_v11 = vld [vmem:[%s148_s0 + $0x10] sm:$0x77] }
   0x2   :  { %22 = vperm.xlu0 %62, %v19_v1   ;;  %v28_v6 = vshrl.u32 %v27_v4, 7  ;;  %v11_v9 = vld [vmem:[%s148_s0] sm:$0x77]  ;;  %v14_v12 = vld [vmem:[%s148_s0 + $0x18] sm:$0x77] }
   0x3   :  { %v26_v5 = vunpack.c.0.s8 %v25_v3  ;;  %v15_v14 = vld [vmem:[%s148_s0 + $0x20] sm:$0x77]  ;;  %v16_v15 = vld [vmem:[%s148_s0 + $0x28] sm:$0x77]  ;;  %v17_v19 = vld [vmem:[%s148_s0 + $0x30] sm:$0x77] }
   0x4   :  { %v18_v21 = vld [vmem:[%s148_s0 + $0x38] sm:$0x77] }
   0x5   :  { %v29_v7 = vsub.s32 %v26_v5, %v28_v6 }
  0x81   :  { %v23_v8 = vpop.permute.xlu0 %22 }
  0x82   :  { %v30_v13 = vrot.slane %v23_v8, %v29_v7 }
  0x84   :  { %v32_v16 = vadd.f32 %v30_v13, %v11_v9  ;;  %v33_v17 = vadd.f32 %v30_v13, %v12_v10  ;;  %v34_v18 = vadd.f32 %v30_v13, %v13_v11  ;;  %v35_v20 = vadd.f32 %v30_v13, %v14_v12 }
  0x85   :  { %v36_v22 = vadd.f32 %v30_v13, %v15_v14  ;;  %v37_v23 = vadd.f32 %v30_v13, %v16_v15  ;;  %v38_v24 = vadd.f32 %v30_v13, %v17_v19  ;;  %v39_v25 = vadd.f32 %v30_v13, %v18_v21 }
  0x86   :  { %63 = vtanh.f32 %v32_v16 }
  0x87   :  { %65 = vtanh.f32 %v33_v17 }
  0x88   :  { %67 = vtanh.f32 %v34_v18 }
  0x89   :  { %69 = vtanh.f32 %v35_v20 }
  0x8a   :  { %71 = vtanh.f32 %v36_v22 }
  0x8b   :  { %73 = vtanh.f32 %v37_v23 }
  0x8c   :  { %75 = vtanh.f32 %v38_v24 }
  0x8d   :  { %77 = vtanh.f32 %v39_v25 }
  0x90   :  { %v64_v26 = vpop.eup %63 }
  0x91   :  { %v66_v27 = vpop.eup %65  ;;  %48 = vst [vmem:[%s149_s2] sm:$0x77] %v64_v26 }
  0x92   :  { %v68_v28 = vpop.eup %67  ;;  %49 = vst [vmem:[%s149_s2 + $0x8] sm:$0x77] %v66_v27 }
  0x93   :  { %v70_v29 = vpop.eup %69  ;;  %50 = vst [vmem:[%s149_s2 + $0x10] sm:$0x77] %v68_v28 }
  0x94   :  { %v72_v30 = vpop.eup %71  ;;  %51 = vst [vmem:[%s149_s2 + $0x18] sm:$0x77] %v70_v29 }
  0x95   :  { %v74_v31 = vpop.eup %73  ;;  %52 = vst [vmem:[%s149_s2 + $0x20] sm:$0x77] %v72_v30 }
  0x96   :  { %v76_v32 = vpop.eup %75  ;;  %53 = vst [vmem:[%s149_s2 + $0x28] sm:$0x77] %v74_v31 }
  0x97   :  { %v78_v33 = vpop.eup %77  ;;  %54 = vst [vmem:[%s149_s2 + $0x30] sm:$0x77] %v76_v32 }
  0x98   :  { %55 = vst [vmem:[%s149_s2 + $0x38] sm:$0x77] %v78_v33 }

</bundles_post_ra>
